<compile_context>
chip_gen: v5e
topology: v5e:2x2
jax: 0.10.0
libtpu: 0.0.40
codegen_flags: <defaults>
</compile_context>

<pallas_src>
import jax
import jax.numpy as jnp
from jax import lax
from jax.experimental import pallas as pl
from jax.experimental.pallas import tpu as pltpu


def _patch_fusion_kernel(tokens_ref, whead_ref, bias_ref, treal_ref, out_ref):
    """One (Bt, Tp, F) slab of batch rows per grid step.

    tokens_ref : (Bt, Tp, F)  f32/bf16  VMEM   (Tp = T padded to the sublane tile)
    whead_ref  : (F, 128)     f32       VMEM   [logit-diff | W_final^T | zeros]
    bias_ref   : (1,)         f32       SMEM   b_fc[1] - b_fc[0]
    treal_ref  : (1,)         i32       SMEM   number of real (unpadded) tokens
    out_ref    : (1, Bt, 2)   f32       VMEM
    """
    f32 = jnp.float32
    tokens = tokens_ref[...]                                      # (Bt, Tp, F)
    Bt, Tp, F_ = tokens.shape
    tok_f32 = tokens.astype(f32)

    t_real = treal_ref[0]
    b_fc = bias_ref[0]

    # ---- fused head projection on the MXU ----------------------------------
    # Lane-dense (F,128) weight -> one unmasked matmul pass; cols >=3 are zero.
    # HIGHEST keeps the argmax decision at f32 fidelity; the matmul is tiny.
    proj = jnp.dot(tokens.reshape(Bt * Tp, F_), whead_ref[...],
                   precision=lax.Precision.HIGHEST,
                   preferred_element_type=f32).reshape(Bt, Tp, 128)

    ids = lax.broadcasted_iota(jnp.int32, (Bt, Tp, 1), 1)
    valid = ids < t_real                                          # (Bt, Tp, 1)

    # ---- first-occurrence argmax over tokens, on the RAW logit --------------
    # (sigmoid is monotone, so argmax(logit) == argmax(cancer prob))
    logit = proj[:, :, 0:1] + b_fc                                # (Bt, Tp, 1)
    logit_m = jnp.where(valid, logit, -1e30)                      # mask padded tokens
    maxv = jnp.max(logit_m, axis=1, keepdims=True)                # (Bt, 1, 1)
    first = jnp.min(jnp.where(logit_m >= maxv, ids, Tp), axis=1, keepdims=True)
    one_hot = (ids == first).astype(f32)                          # (Bt, Tp, 1)

    # ---- gather the argmax token (VPU multiply + sublane reduce) ------------
    q = jnp.sum(one_hot * tok_f32, axis=1)                        # (Bt, F)

    # ---- ONLY the argmax token's attention row ------------------------------
    # cos(q, token_t) = (q . token_t) * rsqrt(|q|^2) * rsqrt(|token_t|^2)
    norm2 = jnp.sum(tok_f32 * tok_f32, axis=-1)                   # (Bt, Tp)
    inv_tok = jnp.where(norm2 > 0.0, lax.rsqrt(norm2), 0.0)       # guard padded zeros
    inv_q = jnp.sum(one_hot[:, :, 0] * inv_tok, axis=1, keepdims=True)   # (Bt, 1)
    dots = jnp.sum(q[:, None, :] * tok_f32, axis=-1)              # (Bt, Tp)
    scores = dots * inv_tok * inv_q                               # cosines in [-1, 1]
    scores = jnp.where(valid[:, :, 0], scores, -1e30)

    # row softmax; denominator through the EUP reciprocal, not a VPU divide.
    row = jnp.exp(scores - jnp.max(scores, axis=-1, keepdims=True))
    row = row * pl.reciprocal(jnp.sum(row, axis=-1, keepdims=True), approx=True)

    # ---- cancer prob (2-class softmax == sigmoid of the logit diff) ---------
    cancer = pl.reciprocal(1.0 + jnp.exp(-logit[:, :, 0]), approx=True)   # (Bt, Tp)

    # ---- re-weight the attention row, renormalize, fuse with W_final --------
    a = row * cancer                                              # (Bt, Tp)
    a = a * pl.reciprocal(jnp.sum(a, axis=-1, keepdims=True), approx=True)
    # out = sum_t a_t * (token_t @ W_final^T)  (bias added in the wrapper)
    out_ref[0] = jnp.sum(a[:, :, None] * proj[:, :, 1:3], axis=1)  # (Bt, 2)


def _vmem_plan():
    """Generation-aware (vmem_limit_bytes, slab budget, 2-TensorCore flag)."""
    cap = 128 << 20
    try:
        c = int(pltpu.get_tpu_info().vmem_capacity_bytes)
        if c > 0:
            cap = c
    except Exception:
        pass
    kind = ""
    try:
        kind = jax.devices()[0].device_kind.lower()
    except Exception:
        pass
    two_cores = ("v7" in kind) or ("7x" in kind) or ("v4" in kind)
    # ~65% of physical VMEM as the scoped limit (leaves compiler scratch headroom):
    #   v7x (64 MiB)  -> ~42 MiB limit;  v5e/v6e (128 MiB) -> ~83 MiB limit.
    vmem_limit = max(32 << 20, min(int(cap * 0.65), cap - (8 << 20)))
    slab_budget = int(vmem_limit * 0.6)
    return vmem_limit, slab_budget, two_cores


def _choose_block_b(B, Tp, F, token_itemsize, *, vmem_budget_bytes, two_cores):
    """Batch rows per grid step, from LAYOUT-AWARE (lane/sublane padded) sizes."""
    Fl = -(-F // 128) * 128            # feature dim padded to 128 lanes
    Tl = -(-Tp // 128) * 128           # (Bt, T) vectors: T padded to 128 lanes
    per_row = (
        2 * Tp * Fl * token_itemsize   # double-buffered input token slab
        + 3 * Tp * Fl * 4              # f32 upcast + two broadcast-product temps
        + Tp * 128 * 4                 # (T, 128) f32 head projection
        + 8 * Tl * 4                   # (T,)-lane vectors: logits/scores/row/a/...
    )
    bt = max(1, min(B, vmem_budget_bytes // max(per_row, 1)))
    if two_cores and B >= 2:
        bt = min(bt, max(1, B // 2))   # keep >= 2 grid steps so both TCs get work
    while bt > 1 and B % bt:
        bt -= 1
    return bt


def patch_fusion_attention(x, wfc, bfc, wfin, bfin, *, block_b=None, token_dtype=None):
    """x: (B, ..., F) features-last.  wfc/wfin: (2, F) torch-Linear layout.

    token_dtype=jnp.bfloat16 halves the HBM token read (biggest win on v5e) but
    can flip the argmax for near-tied tokens vs. an f32 reference; default f32.
    """
    x = jnp.asarray(x)
    B = x.shape[0]
    F_ = x.shape[-1]
    tok_dt = jnp.dtype(token_dtype) if token_dtype is not None else jnp.dtype(jnp.float32)
    tokens = x.reshape(B, -1, F_).astype(tok_dt)
    T = tokens.shape[1]

    # Pad T to the sublane tile so the in-kernel (Bt*T, F) reshape is a no-op;
    # padded tokens are masked in-kernel via the t_real SMEM scalar.
    sub = 16 if tok_dt.itemsize == 2 else 8
    Tp = -(-T // sub) * sub
    if Tp != T:
        tokens = jnp.pad(tokens, ((0, 0), (0, Tp - T), (0, 0)))

    wfc = jnp.asarray(wfc, jnp.float32)
    bfc = jnp.asarray(bfc, jnp.float32)
    wfin = jnp.asarray(wfin, jnp.float32)
    bfin = jnp.asarray(bfin, jnp.float32)

    # Fused, lane-dense head weight (F, 128): col 0 = w_fc[1]-w_fc[0], cols 1..2 = W_final^T.
    whead = jnp.zeros((F_, 128), jnp.float32)
    whead = whead.at[:, 0].set(wfc[1] - wfc[0])
    whead = whead.at[:, 1:3].set(wfin.T)
    bias_fc = jnp.reshape(bfc[1] - bfc[0], (1,)).astype(jnp.float32)    # SMEM scalar
    t_real = jnp.asarray([T], jnp.int32)                                # SMEM scalar

    vmem_limit, slab_budget, two_cores = _vmem_plan()
    if block_b is None:
        Bt = _choose_block_b(B, Tp, F_, tok_dt.itemsize,
                             vmem_budget_bytes=slab_budget, two_cores=two_cores)
    else:
        if B % block_b:
            raise ValueError(f"block_b={block_b} must divide batch size {B}")
        Bt = block_b
    grid = (B // Bt,)

    out3 = pl.pallas_call(
        _patch_fusion_kernel,
        # output laid out (num_blocks, Bt, 2) so the block covers the array's
        # trailing dims exactly (keeps the (8,128) block rule satisfied for any Bt).
        out_shape=jax.ShapeDtypeStruct((B // Bt, Bt, 2), jnp.float32),
        grid=grid,
        in_specs=[
            pl.BlockSpec((Bt, Tp, F_), lambda i: (i, 0, 0)),            # token slab
            pl.BlockSpec((F_, 128), lambda i: (0, 0)),                  # fused head (shared)
            pl.BlockSpec(memory_space=pltpu.MemorySpace.SMEM),          # fc bias scalar
            pl.BlockSpec(memory_space=pltpu.MemorySpace.SMEM),          # real token count
        ],
        out_specs=pl.BlockSpec((1, Bt, 2), lambda i: (i, 0, 0)),
        compiler_params=pltpu.CompilerParams(
            dimension_semantics=("parallel",),
            vmem_limit_bytes=vmem_limit),
    )(tokens, whead, bias_fc, t_real)

    # final Linear bias added here (cheap (B,2) add, fused by XLA)
    return out3.reshape(B, 2) + bfin[None, :]


def _reference(x, wfc, bfc, wfin, bfin):
    """Pure-JAX replica of the PyTorch forward (f32, HIGHEST precision)."""
    HI = lax.Precision.HIGHEST
    B, F_ = x.shape[0], x.shape[-1]
    tokens = x.reshape(B, -1, F_)
    nt = tokens / jnp.linalg.norm(tokens, axis=-1, keepdims=True)
    att = jax.nn.softmax(
        jnp.einsum('btf,bTf->btT', nt, nt, precision=HI), axis=-1)
    probs = jax.nn.softmax(
        jnp.einsum('btf,cf->btc', tokens, wfc, precision=HI) + bfc, axis=-1)[..., 1]
    idx = jnp.argmax(probs, axis=1)
    att_idx = att[jnp.arange(B), idx]                     # (B, T)
    a = att_idx * probs
    a = a / jnp.sum(a, axis=-1, keepdims=True)
    xf = jnp.einsum('bt,btf->bf', a, tokens, precision=HI)
    return jnp.einsum('bf,cf->bc', xf, wfin, precision=HI) + bfin


if __name__ == "__main__":
    key = jax.random.PRNGKey(0)
    kx, k1, k2, k3, k4, kx2 = jax.random.split(key, 6)

    # small shapes: batch=8, spatial patch grid 4x8, nfeatures=32 -> T=32 tokens
    B, P1, P2, F_ = 8, 4, 8, 32
    x = jax.random.normal(kx, (B, P1, P2, F_), jnp.float32)

    # deterministic torch-Linear-style init (uniform +/- 1/sqrt(fan_in))
    bound = 1.0 / (F_ ** 0.5)
    wfc = jax.random.uniform(k1, (2, F_), jnp.float32, -bound, bound)
    bfc = jax.random.uniform(k2, (2,), jnp.float32, -bound, bound)
    wfin = jax.random.uniform(k3, (2, F_), jnp.float32, -bound, bound)
    bfin = jax.random.uniform(k4, (2,), jnp.float32, -bound, bound)

    out = jax.block_until_ready(patch_fusion_attention(x, wfc, bfc, wfin, bfin))
    ref = _reference(x, wfc, bfc, wfin, bfin)
    assert out.shape == (B, 2), out.shape
    # Tolerance reflects the approximate EUP reciprocals vs. the f32/HIGHEST ref.
    assert jnp.allclose(out, ref, rtol=1e-2, atol=1e-2), (out, ref)

    # second case: T = 3*5 = 15 (not a multiple of 8) exercises the wrapper-side
    # sublane padding + in-kernel masking path.
    B2 = 4
    x2 = jax.random.normal(kx2, (B2, 3, 5, F_), jnp.float32)
    out2 = jax.block_until_ready(patch_fusion_attention(x2, wfc, bfc, wfin, bfin))
    ref2 = _reference(x2, wfc, bfc, wfin, bfin)
    assert out2.shape == (B2, 2), out2.shape
    assert jnp.allclose(out2, ref2, rtol=1e-2, atol=1e-2), (out2, ref2)

    # bf16-token path (halves the HBM read): smoke test only — the argmax can
    # legitimately flip for near-tied tokens vs. the f32 reference, so we check
    # shape/finiteness rather than tight numerics (per review correctness note).
    out_bf16 = jax.block_until_ready(
        patch_fusion_attention(x, wfc, bfc, wfin, bfin, token_dtype=jnp.bfloat16))
    assert out_bf16.shape == (B, 2)
    assert bool(jnp.all(jnp.isfinite(out_bf16)))

    print("KERNEL_OK")
</pallas_src>

<mosaic_0001>
module attributes {stable_mosaic.version = 11 : i64} {
  func.func @_patch_fusion_kernel(%arg0: i32, %arg1: memref<8x32x32xf32, #tpu.memory_space<vmem>>, %arg2: memref<32x128xf32, #tpu.memory_space<vmem>>, %arg3: memref<1xf32, #tpu.memory_space<smem>>, %arg4: memref<1xi32, #tpu.memory_space<smem>>, %arg5: memref<1x8x2xf32, #tpu.memory_space<vmem>>) attributes {dimension_semantics = [#tpu.dimension_semantics<parallel>], iteration_bounds = array<i64: 1>, scalar_prefetch = 0 : i64, scratch_operands = 0 : i64, tpu.core_type = #tpu.core_type<tc>, window_params = [{transform_indices = @transform_0, window_bounds = array<i64: 8, 32, 32>}, {pipeline_mode = #tpu.pipeline_mode<synchronous>, transform_indices = @transform_1, window_bounds = array<i64: 32, 128>}, {transform_indices = @transform_2, window_bounds = array<i64: 1>}, {transform_indices = @transform_3, window_bounds = array<i64: 1>}, {transform_indices = @transform_4, window_bounds = array<i64: 1, 8, 2>}]} {
    %c0 = arith.constant 0 : index
    %c0_0 = arith.constant 0 : index
    %c0_1 = arith.constant 0 : index
    %0 = vector.load %arg1[%c0, %c0_0, %c0_1] : memref<8x32x32xf32, #tpu.memory_space<vmem>>, vector<8x32x32xf32>
    %c0_2 = arith.constant 0 : index
    %1 = memref.load %arg4[%c0_2] : memref<1xi32, #tpu.memory_space<smem>>
    %c0_3 = arith.constant 0 : index
    %2 = memref.load %arg3[%c0_3] : memref<1xf32, #tpu.memory_space<smem>>
    %3 = vector.shape_cast %0 : vector<8x32x32xf32> to vector<256x32xf32>
    %c0_4 = arith.constant 0 : index
    %c0_5 = arith.constant 0 : index
    %4 = vector.load %arg2[%c0_4, %c0_5] : memref<32x128xf32, #tpu.memory_space<vmem>>, vector<32x128xf32>
    %cst = arith.constant dense<0.000000e+00> : vector<256x128xf32>
    %5 = tpu.matmul %3, %4, %cst {dimension_numbers = #tpu.dot_dimension_numbers<[1], [0], [0], [1], [0, 0, 1, 1], [], []>, precision = #tpu.contract_precision<fp32>} : vector<256x32xf32>, vector<32x128xf32>, vector<256x128xf32> -> vector<256x128xf32>
    %6 = vector.shape_cast %5 : vector<256x128xf32> to vector<8x32x128xf32>
    %7 = tpu.iota {dimensions = array<i32: 1>} : vector<8x32x1xi32>
    %8 = vector.broadcast %1 : i32 to vector<8x32x1xi32>
    %9 = arith.cmpi slt, %7, %8 : vector<8x32x1xi32>
    %10 = vector.extract_strided_slice %6 {offsets = [0, 0, 0], sizes = [8, 32, 1], strides = [1, 1, 1]} : vector<8x32x128xf32> to vector<8x32x1xf32>
    %11 = vector.broadcast %2 : f32 to vector<8x32x1xf32>
    %12 = arith.addf %10, %11 : vector<8x32x1xf32>
    %cst_6 = arith.constant -1.000000e+30 : f32
    %13 = vector.broadcast %cst_6 : f32 to vector<8x32x1xf32>
    %14 = arith.select %9, %12, %13 : vector<8x32x1xi1>, vector<8x32x1xf32>
    %cst_7 = arith.constant dense<0xFF800000> : vector<8x1xf32>
    %15 = vector.multi_reduction <maximumf>, %14, %cst_7 [1] : vector<8x32x1xf32> to vector<8x1xf32>
    %16 = vector.shape_cast %15 : vector<8x1xf32> to vector<8x1x1xf32>
    %17 = vector.broadcast %16 : vector<8x1x1xf32> to vector<8x32x1xf32>
    %18 = arith.cmpf oge, %14, %17 : vector<8x32x1xf32>
    %c32_i32 = arith.constant 32 : i32
    %19 = vector.broadcast %c32_i32 : i32 to vector<8x32x1xi32>
    %20 = arith.select %18, %7, %19 : vector<8x32x1xi1>, vector<8x32x1xi32>
    %cst_8 = arith.constant dense<2147483647> : vector<8x1xi32>
    %21 = vector.multi_reduction <minsi>, %20, %cst_8 [1] : vector<8x32x1xi32> to vector<8x1xi32>
    %22 = vector.shape_cast %21 : vector<8x1xi32> to vector<8x1x1xi32>
    %23 = vector.broadcast %22 : vector<8x1x1xi32> to vector<8x32x1xi32>
    %24 = arith.cmpi eq, %7, %23 : vector<8x32x1xi32>
    %25 = arith.extui %24 : vector<8x32x1xi1> to vector<8x32x1xi32>
    %26 = arith.sitofp %25 : vector<8x32x1xi32> to vector<8x32x1xf32>
    %27 = vector.broadcast %26 : vector<8x32x1xf32> to vector<8x32x32xf32>
    %28 = arith.mulf %27, %0 : vector<8x32x32xf32>
    %cst_9 = arith.constant dense<0.000000e+00> : vector<8x32xf32>
    %29 = vector.multi_reduction <add>, %28, %cst_9 [1] : vector<8x32x32xf32> to vector<8x32xf32>
    %30 = arith.mulf %0, %0 : vector<8x32x32xf32>
    %cst_10 = arith.constant dense<0.000000e+00> : vector<8x32xf32>
    %31 = vector.multi_reduction <add>, %30, %cst_10 [2] : vector<8x32x32xf32> to vector<8x32xf32>
    %cst_11 = arith.constant 0.000000e+00 : f32
    %32 = vector.broadcast %cst_11 : f32 to vector<8x32xf32>
    %33 = arith.cmpf ogt, %31, %32 : vector<8x32xf32>
    %34 = math.rsqrt %31 : vector<8x32xf32>
    %cst_12 = arith.constant 0.000000e+00 : f32
    %35 = vector.broadcast %cst_12 : f32 to vector<8x32xf32>
    %36 = arith.select %33, %34, %35 : vector<8x32xi1>, vector<8x32xf32>
    %37 = vector.shape_cast %26 : vector<8x32x1xf32> to vector<8x32xf32>
    %38 = arith.mulf %37, %36 : vector<8x32xf32>
    %cst_13 = arith.constant dense<0.000000e+00> : vector<8xf32>
    %39 = vector.multi_reduction <add>, %38, %cst_13 [1] : vector<8x32xf32> to vector<8xf32>
    %40 = vector.shape_cast %39 : vector<8xf32> to vector<8x1xf32>
    %41 = vector.shape_cast %29 : vector<8x32xf32> to vector<8x1x32xf32>
    %42 = vector.broadcast %41 : vector<8x1x32xf32> to vector<8x32x32xf32>
    %43 = arith.mulf %42, %0 : vector<8x32x32xf32>
    %cst_14 = arith.constant dense<0.000000e+00> : vector<8x32xf32>
    %44 = vector.multi_reduction <add>, %43, %cst_14 [2] : vector<8x32x32xf32> to vector<8x32xf32>
    %45 = arith.mulf %44, %36 : vector<8x32xf32>
    %46 = vector.broadcast %40 : vector<8x1xf32> to vector<8x32xf32>
    %47 = arith.mulf %45, %46 : vector<8x32xf32>
    %48 = vector.shape_cast %9 : vector<8x32x1xi1> to vector<8x32xi1>
    %cst_15 = arith.constant -1.000000e+30 : f32
    %49 = vector.broadcast %cst_15 : f32 to vector<8x32xf32>
    %50 = arith.select %48, %47, %49 : vector<8x32xi1>, vector<8x32xf32>
    %cst_16 = arith.constant dense<0xFF800000> : vector<8xf32>
    %51 = vector.multi_reduction <maximumf>, %50, %cst_16 [1] : vector<8x32xf32> to vector<8xf32>
    %52 = vector.shape_cast %51 : vector<8xf32> to vector<8x1xf32>
    %53 = vector.broadcast %52 : vector<8x1xf32> to vector<8x32xf32>
    %54 = arith.subf %50, %53 : vector<8x32xf32>
    %55 = math.exp %54 : vector<8x32xf32>
    %cst_17 = arith.constant dense<0.000000e+00> : vector<8xf32>
    %56 = vector.multi_reduction <add>, %55, %cst_17 [1] : vector<8x32xf32> to vector<8xf32>
    %57 = vector.shape_cast %56 : vector<8xf32> to vector<8x1xf32>
    %58 = tpu.reciprocal %57 {approx = true} : vector<8x1xf32> -> vector<8x1xf32>
    %59 = vector.broadcast %58 : vector<8x1xf32> to vector<8x32xf32>
    %60 = arith.mulf %55, %59 : vector<8x32xf32>
    %61 = vector.shape_cast %12 : vector<8x32x1xf32> to vector<8x32xf32>
    %cst_18 = arith.constant 0.000000e+00 : f32
    %62 = vector.broadcast %cst_18 : f32 to vector<8x32xf32>
    %63 = arith.subf %62, %61 : vector<8x32xf32>
    %64 = math.exp %63 : vector<8x32xf32>
    %cst_19 = arith.constant 1.000000e+00 : f32
    %65 = vector.broadcast %cst_19 : f32 to vector<8x32xf32>
    %66 = arith.addf %65, %64 : vector<8x32xf32>
    %67 = tpu.reciprocal %66 {approx = true} : vector<8x32xf32> -> vector<8x32xf32>
    %68 = arith.mulf %60, %67 : vector<8x32xf32>
    %cst_20 = arith.constant dense<0.000000e+00> : vector<8xf32>
    %69 = vector.multi_reduction <add>, %68, %cst_20 [1] : vector<8x32xf32> to vector<8xf32>
    %70 = vector.shape_cast %69 : vector<8xf32> to vector<8x1xf32>
    %71 = tpu.reciprocal %70 {approx = true} : vector<8x1xf32> -> vector<8x1xf32>
    %72 = vector.broadcast %71 : vector<8x1xf32> to vector<8x32xf32>
    %73 = arith.mulf %68, %72 : vector<8x32xf32>
    %74 = vector.shape_cast %73 : vector<8x32xf32> to vector<8x32x1xf32>
    %75 = vector.extract_strided_slice %6 {offsets = [0, 0, 1], sizes = [8, 32, 2], strides = [1, 1, 1]} : vector<8x32x128xf32> to vector<8x32x2xf32>
    %76 = vector.broadcast %74 : vector<8x32x1xf32> to vector<8x32x2xf32>
    %77 = arith.mulf %76, %75 : vector<8x32x2xf32>
    %cst_21 = arith.constant dense<0.000000e+00> : vector<8x2xf32>
    %78 = vector.multi_reduction <add>, %77, %cst_21 [1] : vector<8x32x2xf32> to vector<8x2xf32>
    %c0_22 = arith.constant 0 : index
    %c0_23 = arith.constant 0 : index
    %c0_24 = arith.constant 0 : index
    %79 = vector.load %arg5[%c0_22, %c0_23, %c0_24] : memref<1x8x2xf32, #tpu.memory_space<vmem>>, vector<1x8x2xf32>
    %80 = vector.shape_cast %79 : vector<1x8x2xf32> to vector<8x2xf32>
    %81 = vector.shape_cast %78 : vector<8x2xf32> to vector<1x8x2xf32>
    tpu.vector_store %arg5[%c0_22, %c0_23, %c0_24], %81 {strides = array<i32>} : memref<1x8x2xf32, #tpu.memory_space<vmem>>, vector<1x8x2xf32>,
    return
  }
  func.func @transform_0(%arg0: i32) -> (i32, i32, i32) {
    %c0_i32 = arith.constant 0 : i32
    %c0_i32_0 = arith.constant 0 : i32
    %c0_i32_1 = arith.constant 0 : i32
    return %arg0, %c0_i32, %c0_i32_0 : i32, i32, i32
  }
  func.func @transform_1(%arg0: i32) -> (i32, i32) {
    %c0_i32 = arith.constant 0 : i32
    %c0_i32_0 = arith.constant 0 : i32
    %c0_i32_1 = arith.constant 0 : i32
    return %c0_i32, %c0_i32_0 : i32, i32
  }
  func.func @transform_2(%arg0: i32) -> i32 {
    %c0_i32 = arith.constant 0 : i32
    %c0_i32_0 = arith.constant 0 : i32
    return %c0_i32 : i32
  }
  func.func @transform_3(%arg0: i32) -> i32 {
    %c0_i32 = arith.constant 0 : i32
    %c0_i32_0 = arith.constant 0 : i32
    return %c0_i32 : i32
  }
  func.func @transform_4(%arg0: i32) -> (i32, i32, i32) {
    %c0_i32 = arith.constant 0 : i32
    %c0_i32_0 = arith.constant 0 : i32
    %c0_i32_1 = arith.constant 0 : i32
    return %arg0, %c0_i32, %c0_i32_0 : i32, i32, i32
  }
}

</mosaic_0001>

<bundles_post_ra>
// kernel: tpu_custom_call.1
= control target key start
LH: loop header
LB: loop body
LE: loop exit
PB: predicated region body
PF: predicated region fallthrough
CT: control target
= control target key end

     0   :  { %11 = vsyncpa [#allocation5], 0  ;;  %s8587_s0 = inlined_call_operand.hbm [shape: f32[8,32,32], index: 0, kind: input, shape index: {}]   ;;  %s8588_s1 = inlined_call_operand.hbm [shape: f32[32,128], index: 1, kind: input, shape index: {}]   ;;  %s8589_s2 = inlined_call_operand.<no memory space> [shape: f32[1], index: 2, kind: input, shape index: {}]   ;;  %s8590_s3 = inlined_call_operand.<no memory space> [shape: s32[1], index: 3, kind: input, shape index: {}]   ;;  %s8591_s4 = inlined_call_operand.vmem [shape: f32[1,8,2], index: 4, kind: output, shape index: {}]  }
   0x1   :  { %s17_s17 = sshll.u32 %s8587_s0, 4  ;;  %s18_s17 = int_to_ptr.hbm [resolvable:$true] %s17_s17 }
   0x2   :  { %12 = vsyncpa [#allocation7], 0  ;;  %s4903_s18 = smov [#allocation4]   ;;  %s30_s22 = sshll.u32 %s8588_s1, 4  ;;  %s31_s22 = int_to_ptr.hbm [resolvable:$true] %s30_s22 }
   0x3   :  { %s19_s19 = sshll.u32 %s4903_s18, 4  ;;  %s4904_s23 = smov 128   ;;  %s20_s19 = int_to_ptr.vmem [resolvable:$true] %s19_s19 }
   0x4   :  { %s4905_s24 = smov 8   ;;  %s4906_s25 = smov [#allocation6]  }
   0x5   :  { %25 = dma.hbm_to_vmem [thread:$0]  %s18_s17, 4096, %s20_s19, [#allocation5], %s4904_s23, %s4904_s23, %s4905_s24  }
   0x6   :  { %s32_s26 = sshll.u32 %s4906_s25, 4  ;;  %s33_s26 = int_to_ptr.vmem [resolvable:$true] %s32_s26 }
   0x7   :  { %38 = dma.hbm_to_vmem [thread:$0]  %s31_s22, 512, %s33_s26, [#allocation7], %s4904_s23, %s4904_s23, %s4905_s24  }
   0x8   :  { %4899 = dma.done.wait [#allocation5], 4096  }
   0x9   :  { %4900 = vsyncadd [#allocation5], 4294963200 }
   0xa   :  { %4901 = dma.done.wait [#allocation7], 512  }
   0xb   :  { %4902 = vsyncadd [#allocation7], 4294966784  ;;  %vm89_vm0 = vcmask 261120   ;;  %v88_v0 = vld [vmem:[#allocation6 + $0x18] sm:$0xff]  ;;  %v87_v1 = vld [vmem:[#allocation6 + $0x10] sm:$0xff]  ;;  %vm1407_vm4 = vcmask 7168  }
   0xc   :  { %v86_v2 = vld [vmem:[#allocation6 + $0x8] sm:$0xff]  ;;  %v4941_v3 = vand.u32 4294901760, %v88_v0  ;;  %v4943_v4 = vand.u32 4294901760, %v87_v1  ;;  %v85_v6 = vld [vmem:[#allocation6] sm:$0xff]  ;;  %v69_v13 = vld [vmem:[#allocation4 + $0x90] sm:$0xff] }
   0xd   :  { %v4945_v5 = vand.u32 4294901760, %v86_v2  ;;  %v4947_v7 = vld [vmem:[#allocation4 + $0x80] sm:$0xff]  ;;  %v4949_v8 = vld [vmem:[#allocation4 + $0x88] sm:$0xff]  ;;  %v4951_v9 = vand.u32 4294901760, %v85_v6  ;;  %v145_v21 = vsel %vm89_vm0, %v69_v13, 0  ;;  %v4998_v37 = vld [vmem:[#allocation4 + $0x10] sm:$0xff] }
   0xe   :  { %v139_v10 = vsel %vm89_vm0, %v4947_v7, 0  ;;  %v142_v11 = vsel %vm89_vm0, %v4949_v8, 0  ;;  %v4957_v12 = vld [vmem:[#allocation4] sm:$0xff]  ;;  %4460 = vmatpush.msra.mxu2 %v4941_v3  ;;  %v476_v14 = vsub.f32 %v88_v0, %v4941_v3  ;;  %v482_v16 = vsub.f32 %v87_v1, %v4943_v4  ;;  %199 = vmatpush.msra.mxu0 %v4941_v3  ;;  %v4996_v36 = vld [vmem:[#allocation4 + $0x8] sm:$0xff]  ;;  %v5009_v46 = vld [vmem:[#allocation4 + $0x98] sm:$0xff] }
   0xf   :  { %v4961_v15 = vand.u32 4294901760, %v139_v10  ;;  %v488_v17 = vsub.f32 %v86_v2, %v4945_v5  ;;  %v4967_v18 = vsub.f32 %v85_v6, %v4951_v9  ;;  %v4969_v19 = vand.u32 4294901760, %v142_v11  ;;  %8817 = vst [vmem:[#allocation15_spill] sm:$0xff] %v5009_v46  ;;  %v5031_v57 = vld [vmem:[#allocation4 + $0x18] sm:$0xff]  ;;  %v5049_v1 = vld [vmem:[#allocation4 + $0xa0] sm:$0xff] }
  0x10   :  { %v91_v20 = vsel %vm89_vm0, %v4957_v12, 0  ;;  %4461 = vmatpush.msra.mxu2 %v4943_v4  ;;  %v477_v22 = vand.u32 4294901760, %v476_v14  ;;  %v483_v24 = vand.u32 4294901760, %v482_v16  ;;  %201 = vmatpush.msra.mxu0 %v4943_v4  ;;  %v4994_v35 = vand.u32 4294901760, %v145_v21  ;;  %8820 = vst [vmem:[#allocation18_spill] sm:$0xff] %v5049_v1 }
  0x11   :  { %8812 = vst [vmem:[#allocation10_spill] sm:$0xff] %v4961_v15  ;;  %v4976_v23 = vsub.f32 %v139_v10, %v4961_v15  ;;  %v489_v25 = vand.u32 4294901760, %v488_v17  ;;  %v495_v26 = vand.u32 4294901760, %v4967_v18  ;;  %v4981_v27 = vsub.f32 %v142_v11, %v4969_v19 }
  0x12   :  { %8813 = vst [vmem:[#allocation11_spill] sm:$0xff] %v4969_v19  ;;  %v4983_v28 = vand.u32 4294901760, %v91_v20  ;;  %4462 = vmatpush.msra.mxu2 %v4945_v5  ;;  %v478_v29 = vsub.f32 %v476_v14, %v477_v22  ;;  %v484_v31 = vsub.f32 %v482_v16, %v483_v24  ;;  %203 = vmatpush.msra.mxu0 %v4945_v5  ;;  %v94_v45 = vsel %vm89_vm0, %v4996_v36, 0 }
  0x13   :  { %8814 = vst [vmem:[#allocation12_spill] sm:$0xff] %v4976_v23  ;;  %v8597_v30 = vand.u32 4294901760, %v4976_v23  ;;  %v490_v32 = vsub.f32 %v488_v17, %v489_v25  ;;  %v496_v33 = vsub.f32 %v4967_v18, %v495_v26  ;;  %v8596_v41 = vand.u32 4294901760, %v4981_v27 }
  0x14   :  { %8815 = vst [vmem:[#allocation13_spill] sm:$0xff] %v4981_v27  ;;  %v4992_v34 = vsub.f32 %v91_v20, %v4983_v28  ;;  %4463 = vmatpush.msra.mxu2 %v4951_v9  ;;  %v479_v38 = vand.u32 4294901760, %v478_v29  ;;  %v485_v40 = vand.u32 4294901760, %v484_v31  ;;  %205 = vmatpush.msra.mxu0 %v4951_v9  ;;  %v97_v47 = vsel %vm89_vm0, %v4998_v37, 0  ;;  %v5099_v31 = vld [vmem:[#allocation4 + $0x28] sm:$0xff] }
  0x15   :  { %8816 = vst [vmem:[#allocation14_spill] sm:$0xff] %v4994_v35  ;;  %v337_v39 = vsub.f32 %v4976_v23, %v8597_v30  ;;  %v491_v44 = vand.u32 4294901760, %v490_v32  ;;  %v5016_v49 = vand.u32 4294901760, %v94_v45  ;;  %v497_v50 = vand.u32 4294901760, %v496_v33 }
  0x16   :  { %642 = vmatpush.msrb.mxu2 %v476_v14  ;;  %v8605_v42 = vand.u32 4294901760, %v4992_v34  ;;  %1041 = vmatpush.msrb.mxu0 %v477_v22  ;;  %v345_v51 = vsub.f32 %v4981_v27, %v8596_v41  ;;  %v5022_v52 = vsub.f32 %v145_v21, %v4994_v35  ;;  %v5024_v53 = vand.u32 4294901760, %v97_v47  ;;  %v5066_v14 = vld [vmem:[#allocation4 + $0x20] sm:$0xff]  ;;  %v5086_v22 = vld [vmem:[#allocation4 + $0xa8] sm:$0xff] }
  0x17   :  { %4464 = vmatpush.msra.mxu3 %v479_v38  ;;  %v338_v43 = vand.u32 4294901760, %v337_v39  ;;  %480 = vmatpush.msra.mxu1 %v479_v38  ;;  %v5027_v55 = vsub.f32 %v94_v45, %v5016_v49  ;;  %v148_v56 = vsel %vm89_vm0, %v5009_v46, 0  ;;  %v100_v63 = vsel %vm89_vm0, %v5031_v57, 0  ;;  %8823 = vst [vmem:[#allocation21_spill] sm:$0xff] %v5086_v22  ;;  %v5183_v41 = vld [vmem:[#allocation4 + $0x40] sm:$0xff] }
  0x18   :  { %v209_v48 = vsub.f32 %v4992_v34, %v8605_v42  ;;  %645 = vmatpush.msrb.mxu2 %v482_v16  ;;  %1045 = vmatpush.msrb.mxu0 %v483_v24  ;;  %8818 = vst [vmem:[#allocation16_spill] sm:$0xff] %v5022_v52  ;;  %v5035_v59 = vsub.f32 %v97_v47, %v5024_v53  ;;  %v346_v60 = vand.u32 4294901760, %v345_v51  ;;  %v8595_v61 = vand.u32 4294901760, %v5022_v52 }
  0x19   :  { %339 = vmatmul.f32.vlgmr.msra.gmra.mxu2 %v338_v43  ;;  %4465 = vmatpush.msra.mxu3 %v485_v40  ;;  %v8604_v58 = vand.u32 4294901760, %v5027_v55  ;;  %v5038_v62 = vand.u32 4294901760, %v148_v56  ;;  %v5053_v10 = vand.u32 4294901760, %v100_v63  ;;  %v106_v43 = vsel %vm89_vm0, %v5099_v31, 0 }
  0x1a   :  { %486 = vmatpush.msra.mxu1 %v485_v40  ;;  %v210_v54 = vand.u32 4294901760, %v209_v48  ;;  %648 = vmatpush.msrb.mxu2 %v488_v17  ;;  %v8603_v6 = vand.u32 4294901760, %v5035_v59  ;;  %v353_v11 = vsub.f32 %v5022_v52, %v8595_v61  ;;  %v5117_v48 = vand.u32 4294901760, %v106_v43 }
  0x1b   :  { %4466 = vmatpush.msra.mxu3 %v491_v44  ;;  %1049 = vmatpush.msrb.mxu0 %v489_v25  ;;  %8819 = vst [vmem:[#allocation17_spill] sm:$0xff] %v5038_v62  ;;  %v217_v0 = vsub.f32 %v5027_v55, %v8604_v58  ;;  %v5061_v13 = vsub.f32 %v148_v56, %v5038_v62  ;;  %v5127_v56 = vld [vmem:[#allocation4 + $0x30] sm:$0xff]  ;;  %v5211_v58 = vld [vmem:[#allocation4 + $0x48] sm:$0xff] }
  0x1c   :  { %492 = vmatpush.msra.mxu1 %v491_v44  ;;  %211 = vmatmul.f32.vlgmr.msra.gmra.mxu0 %v210_v54  ;;  %v225_v16 = vsub.f32 %v5035_v59, %v8603_v6  ;;  %v5074_v17 = vsub.f32 %v100_v63, %v5053_v10  ;;  %v5114_v44 = vld [vmem:[#allocation4 + $0xb0] sm:$0xff]  ;;  %v5133_v63 = vsub.f32 %v106_v43, %v5117_v48 }
  0x1d   :  { %4467 = vmatpush.msra.mxu3 %v497_v50  ;;  %651 = vmatpush.msrb.mxu2 %v4967_v18  ;;  %v218_v2 = vand.u32 4294901760, %v217_v0  ;;  %8821 = vst [vmem:[#allocation19_spill] sm:$0xff] %v5061_v13  ;;  %v354_v18 = vand.u32 4294901760, %v353_v11  ;;  %v8594_v20 = vand.u32 4294901760, %v5061_v13  ;;  %v157_v54 = vsel %vm89_vm0, %v5114_v44, 0 }
  0x1e   :  { %564 = vmatmul.f32.vlgmr.msra.gmra.mxu3 %v4961_v15  ;;  %498 = vmatpush.msra.mxu1 %v497_v50  ;;  %v226_v24 = vand.u32 4294901760, %v225_v16  ;;  %8826 = vst [vmem:[#allocation24_spill] sm:$0xff] %v5114_v44  ;;  %v5136_v11 = vand.u32 4294901760, %v157_v54  ;;  %v5142_v16 = vld [vmem:[#allocation4 + $0xb8] sm:$0xff]  ;;  %v5351_v15 = vld [vmem:[#allocation4 + $0x70] sm:$0xff] }
  0x1f   :  { %826 = vmatpush.msrb.mxu3 %v4941_v3  ;;  %500 = vmatmul.f32.vlgmr.msra.gmra.mxu1 %v4983_v28  ;;  %8829 = vst [vmem:[#allocation27_spill] sm:$0xff] %v5142_v16 }
  0x20   :  { %1196 = vmatpush.msrb.mxu1 %v4941_v3  ;;  %1053 = vmatpush.msrb.mxu0 %v495_v26  ;;  %v151_v3 = vsel %vm89_vm0, %v5049_v1, 0  ;;  %v361_v26 = vsub.f32 %v5061_v13, %v8594_v20  ;;  %8828 = vst [vmem:[#allocation26_spill] sm:$0xff] %v5136_v11  ;;  %v5267_v13 = vld [vmem:[#allocation4 + $0x58] sm:$0xff] }
  0x21   :  { %347 = vmatmul.f32.gmra.mxu2 %v346_v60  ;;  %828 = vmatpush.msrb.mxu3 %v4943_v4  ;;  %v5078_v21 = vand.u32 4294901760, %v151_v3 }
  0x22   :  { %1198 = vmatpush.msrb.mxu1 %v4943_v4  ;;  %v103_v4 = vsel %vm89_vm0, %v5066_v14, 0  ;;  %v362_v38 = vand.u32 4294901760, %v361_v26 }
  0x23   :  { %830 = vmatpush.msrb.mxu3 %v4945_v5  ;;  %8822 = vst [vmem:[#allocation20_spill] sm:$0xff] %v5078_v21  ;;  %v5089_v25 = vand.u32 4294901760, %v103_v4  ;;  %v5095_v29 = vsub.f32 %v151_v3, %v5078_v21  ;;  %v109_v3 = vsel %vm89_vm0, %v5127_v56, 0 }
  0x24   :  { %219 = vmatmul.f32.gmra.mxu0 %v218_v2  ;;  %1200 = vmatpush.msrb.mxu1 %v4945_v5  ;;  %v8602_v5 = vand.u32 4294901760, %v5074_v17 }
  0x25   :  { %832 = vmatpush.msrb.mxu3 %v4951_v9  ;;  %8824 = vst [vmem:[#allocation22_spill] sm:$0xff] %v5095_v29  ;;  %v5105_v33 = vsub.f32 %v103_v4, %v5089_v25  ;;  %v8593_v39 = vand.u32 4294901760, %v5095_v29  ;;  %v8598_v4 = vand.u32 4294901760, %v5133_v63 }
  0x26   :  { %568 = vmatmul.f32.gmra.mxu3 %v4969_v19  ;;  %1202 = vmatpush.msrb.mxu1 %v4951_v9  ;;  %v154_v9 = vsel %vm89_vm0, %v5086_v22, 0  ;;  %v233_v32 = vsub.f32 %v5074_v17, %v8602_v5 }
  0x27   :  { %504 = vmatmul.f32.gmra.mxu1 %v5016_v49  ;;  %v5108_v40 = vand.u32 4294901760, %v154_v9  ;;  %v8600_v47 = vand.u32 4294901760, %v5105_v33  ;;  %v369_v50 = vsub.f32 %v5095_v29, %v8593_v39  ;;  %v249_v43 = vsub.f32 %v5133_v63, %v8598_v4 }
  0x28   :  { %v234_v45 = vand.u32 4294901760, %v233_v32  ;;  %v160_v32 = vsel %vm89_vm0, %v5142_v16, 0  ;;  %v5379_v16 = vld [vmem:[#allocation4 + $0x78] sm:$0xff] }
  0x29   :  { %355 = vmatmul.f32.gmra.mxu2 %v354_v18  ;;  %8825 = vst [vmem:[#allocation23_spill] sm:$0xff] %v5108_v40  ;;  %v5123_v51 = vsub.f32 %v154_v9, %v5108_v40  ;;  %v241_v60 = vsub.f32 %v5105_v33, %v8600_v47  ;;  %v370_v0 = vand.u32 4294901760, %v369_v50  ;;  %v5151_v9 = vsub.f32 %v157_v54, %v5136_v11 }
  0x2a   :  { %8852 = vst [vmem:[#allocation50_spill] sm:$0xff] %v5379_v16 }
  0x2b   :  { %8827 = vst [vmem:[#allocation25_spill] sm:$0xff] %v5123_v51  ;;  %v8592_v2 = vand.u32 4294901760, %v5123_v51  ;;  %v242_v18 = vand.u32 4294901760, %v241_v60  ;;  %v8599_v60 = vand.u32 4294901760, %v5151_v9 }
  0x2c   :  { %227 = vmatmul.f32.gmra.mxu0 %v226_v24  ;;  %v5145_v24 = vand.u32 4294901760, %v109_v3  ;;  %8830 = vst [vmem:[#allocation28_spill] sm:$0xff] %v5151_v9 }
  0x2d   :  { %v377_v26 = vsub.f32 %v5123_v51, %v8592_v2  ;;  %v250_v2 = vand.u32 4294901760, %v249_v43  ;;  %v5239_v51 = vld [vmem:[#allocation4 + $0x50] sm:$0xff] }
  0x2e   :  { %572 = vmatmul.f32.gmra.mxu3 %v4994_v35 }
  0x2f   :  { %508 = vmatmul.f32.gmra.mxu1 %v5024_v53  ;;  %v378_v50 = vand.u32 4294901760, %v377_v26 }
  0x31   :  { %363 = vmatmul.f32.gmra.mxu2 %v362_v38  ;;  %v5155_v38 = vld [vmem:[#allocation4 + $0x38] sm:$0xff] }
  0x32   :  { %v112_v54 = vsel %vm89_vm0, %v5155_v38, 0 }
  0x33   :  { %v5173_v20 = vand.u32 4294901760, %v112_v54 }
  0x34   :  { %235 = vmatmul.f32.gmra.mxu0 %v234_v45  ;;  %v5161_v45 = vsub.f32 %v109_v3, %v5145_v24  ;;  %v385_v3 = vsub.f32 %v5151_v9, %v8599_v60 }
  0x35   :  { %v5189_v30 = vsub.f32 %v112_v54, %v5173_v20 }
  0x36   :  { %576 = vmatmul.f32.gmra.mxu3 %v5038_v62  ;;  %v8601_v39 = vand.u32 4294901760, %v5161_v45 }
  0x37   :  { %512 = vmatmul.f32.gmra.mxu1 %v5053_v10 }
  0x38   :  { %v257_v43 = vsub.f32 %v5161_v45, %v8601_v39  ;;  %v8611_v39 = vand.u32 4294901760, %v5189_v30 }
  0x39   :  { %371 = vmatmul.f32.gmra.mxu2 %v370_v0  ;;  %v5164_v0 = vand.u32 4294901760, %v160_v32 }
  0x3a   :  { %v258_v47 = vand.u32 4294901760, %v257_v43  ;;  %v265_v43 = vsub.f32 %v5189_v30, %v8611_v39 }
  0x3b   :  { %8831 = vst [vmem:[#allocation29_spill] sm:$0xff] %v5164_v0  ;;  %v5179_v26 = vsub.f32 %v160_v32, %v5164_v0  ;;  %v115_v32 = vsel %vm89_vm0, %v5183_v41, 0 }
  0x3c   :  { %243 = vmatmul.f32.gmra.mxu0 %v242_v18  ;;  %v5170_v18 = vld [vmem:[#allocation4 + $0xc0] sm:$0xff]  ;;  %v5201_v5 = vand.u32 4294901760, %v115_v32 }
  0x3d   :  { %8832 = vst [vmem:[#allocation30_spill] sm:$0xff] %v5170_v18  ;;  %v163_v61 = vsel %vm89_vm0, %v5170_v18, 0  ;;  %v8608_v4 = vand.u32 4294901760, %v5179_v26  ;;  %v5295_v18 = vld [vmem:[#allocation4 + $0x60] sm:$0xff] }
  0x3e   :  { %580 = vmatmul.f32.gmra.mxu3 %v5078_v21  ;;  %8833 = vst [vmem:[#allocation31_spill] sm:$0xff] %v5179_v26  ;;  %v5192_v60 = vand.u32 4294901760, %v163_v61  ;;  %v5217_v42 = vsub.f32 %v115_v32, %v5201_v5 }
  0x3f   :  { %516 = vmatmul.f32.gmra.mxu1 %v5089_v25  ;;  %v393_v54 = vsub.f32 %v5179_v26, %v8608_v4  ;;  %v266_v26 = vand.u32 4294901760, %v265_v43 }
  0x40   :  { %8834 = vst [vmem:[#allocation32_spill] sm:$0xff] %v5192_v60  ;;  %v8625_v39 = vand.u32 4294901760, %v5217_v42 }
  0x41   :  { %379 = vmatmul.f32.gmra.mxu2 %v378_v50  ;;  %v386_v50 = vand.u32 4294901760, %v385_v3  ;;  %v5207_v3 = vsub.f32 %v163_v61, %v5192_v60  ;;  %v118_v61 = vsel %vm89_vm0, %v5211_v58, 0 }
  0x42   :  { %v273_v43 = vsub.f32 %v5217_v42, %v8625_v39 }
  0x43   :  { %8836 = vst [vmem:[#allocation34_spill] sm:$0xff] %v5207_v3  ;;  %v8622_v9 = vand.u32 4294901760, %v5207_v3 }
  0x44   :  { %251 = vmatmul.f32.gmra.mxu0 %v250_v2  ;;  %v5198_v2 = vld [vmem:[#allocation4 + $0xc8] sm:$0xff] }
  0x45   :  { %8835 = vst [vmem:[#allocation33_spill] sm:$0xff] %v5198_v2  ;;  %v166_v6 = vsel %vm89_vm0, %v5198_v2, 0  ;;  %v401_v32 = vsub.f32 %v5207_v3, %v8622_v9  ;;  %v274_v3 = vand.u32 4294901760, %v273_v43  ;;  %v5323_v2 = vld [vmem:[#allocation4 + $0x68] sm:$0xff] }
  0x46   :  { %584 = vmatmul.f32.gmra.mxu3 %v5108_v40  ;;  %v5220_v4 = vand.u32 4294901760, %v166_v6  ;;  %v5229_v40 = vand.u32 4294901760, %v118_v61 }
  0x47   :  { %520 = vmatmul.f32.gmra.mxu1 %v5117_v48 }
  0x48   :  { %8837 = vst [vmem:[#allocation35_spill] sm:$0xff] %v5220_v4  ;;  %v5245_v21 = vsub.f32 %v118_v61, %v5229_v40 }
  0x49   :  { %387 = vmatmul.f32.gmra.mxu2 %v386_v50  ;;  %v394_v50 = vand.u32 4294901760, %v393_v54  ;;  %v5235_v54 = vsub.f32 %v166_v6, %v5220_v4  ;;  %v121_v6 = vsel %vm89_vm0, %v5239_v51, 0 }
  0x4a   :  { %v8639_v39 = vand.u32 4294901760, %v5245_v21  ;;  %v5257_v62 = vand.u32 4294901760, %v121_v6 }
  0x4b   :  { %8839 = vst [vmem:[#allocation37_spill] sm:$0xff] %v5235_v54  ;;  %v8636_v29 = vand.u32 4294901760, %v5235_v54 }
  0x4c   :  { %259 = vmatmul.f32.gmra.mxu0 %v258_v47  ;;  %v5226_v47 = vld [vmem:[#allocation4 + $0xd0] sm:$0xff]  ;;  %v281_v43 = vsub.f32 %v5245_v21, %v8639_v39  ;;  %v5273_v35 = vsub.f32 %v121_v6, %v5257_v62 }
  0x4d   :  { %8838 = vst [vmem:[#allocation36_spill] sm:$0xff] %v5226_v47  ;;  %v409_v61 = vsub.f32 %v5235_v54, %v8636_v29 }
  0x4e   :  { %588 = vmatmul.f32.gmra.mxu3 %v5136_v11  ;;  %v169_v11 = vsel %vm89_vm0, %v5226_v47, 0  ;;  %v282_v54 = vand.u32 4294901760, %v281_v43  ;;  %v8651_v39 = vand.u32 4294901760, %v5273_v35 }
  0x4f   :  { %524 = vmatmul.f32.gmra.mxu1 %v5145_v24  ;;  %v5248_v9 = vand.u32 4294901760, %v169_v11 }
  0x50   :  { %v289_v43 = vsub.f32 %v5273_v35, %v8651_v39 }
  0x51   :  { %395 = vmatmul.f32.gmra.mxu2 %v394_v50  ;;  %v402_v50 = vand.u32 4294901760, %v401_v32  ;;  %8840 = vst [vmem:[#allocation38_spill] sm:$0xff] %v5248_v9  ;;  %v5263_v32 = vsub.f32 %v169_v11, %v5248_v9  ;;  %v124_v11 = vsel %vm89_vm0, %v5267_v13, 0 }
  0x53   :  { %8842 = vst [vmem:[#allocation40_spill] sm:$0xff] %v5263_v32  ;;  %v8648_v52 = vand.u32 4294901760, %v5263_v32 }
  0x54   :  { %267 = vmatmul.f32.gmra.mxu0 %v266_v26  ;;  %v5254_v26 = vld [vmem:[#allocation4 + $0xd8] sm:$0xff] }
  0x55   :  { %8841 = vst [vmem:[#allocation39_spill] sm:$0xff] %v5254_v26  ;;  %v417_v6 = vsub.f32 %v5263_v32, %v8648_v52  ;;  %v290_v32 = vand.u32 4294901760, %v289_v43 }
  0x56   :  { %592 = vmatmul.f32.gmra.mxu3 %v5164_v0  ;;  %v172_v0 = vsel %vm89_vm0, %v5254_v26, 0  ;;  %v5285_v26 = vand.u32 4294901760, %v124_v11 }
  0x57   :  { %528 = vmatmul.f32.gmra.mxu1 %v5173_v20  ;;  %v5276_v29 = vand.u32 4294901760, %v172_v0 }
  0x58   :  { %v5301_v19 = vsub.f32 %v124_v11, %v5285_v26 }
  0x59   :  { %403 = vmatmul.f32.gmra.mxu2 %v402_v50  ;;  %v410_v50 = vand.u32 4294901760, %v409_v61  ;;  %8843 = vst [vmem:[#allocation41_spill] sm:$0xff] %v5276_v29  ;;  %v5291_v61 = vsub.f32 %v172_v0, %v5276_v29  ;;  %v127_v0 = vsel %vm89_vm0, %v5295_v18, 0 }
  0x5a   :  { %v8661_v39 = vand.u32 4294901760, %v5301_v19 }
  0x5b   :  { %8845 = vst [vmem:[#allocation43_spill] sm:$0xff] %v5291_v61  ;;  %v8658_v27 = vand.u32 4294901760, %v5291_v61 }
  0x5c   :  { %275 = vmatmul.f32.gmra.mxu0 %v274_v3  ;;  %v5282_v3 = vld [vmem:[#allocation4 + $0xe0] sm:$0xff]  ;;  %v297_v43 = vsub.f32 %v5301_v19, %v8661_v39 }
  0x5d   :  { %8844 = vst [vmem:[#allocation42_spill] sm:$0xff] %v5282_v3  ;;  %v425_v11 = vsub.f32 %v5291_v61, %v8658_v27 }
  0x5e   :  { %596 = vmatmul.f32.gmra.mxu3 %v5192_v60  ;;  %v175_v60 = vsel %vm89_vm0, %v5282_v3, 0  ;;  %v5313_v3 = vand.u32 4294901760, %v127_v0  ;;  %v298_v61 = vand.u32 4294901760, %v297_v43 }
  0x5f   :  { %532 = vmatmul.f32.gmra.mxu1 %v5201_v5  ;;  %v5304_v52 = vand.u32 4294901760, %v175_v60 }
  0x60   :  { %v5329_v47 = vsub.f32 %v127_v0, %v5313_v3 }
  0x61   :  { %411 = vmatmul.f32.gmra.mxu2 %v410_v50  ;;  %v418_v50 = vand.u32 4294901760, %v417_v6  ;;  %8846 = vst [vmem:[#allocation44_spill] sm:$0xff] %v5304_v52  ;;  %v5319_v6 = vsub.f32 %v175_v60, %v5304_v52  ;;  %v130_v60 = vsel %vm89_vm0, %v5323_v2, 0 }
  0x62   :  { %v8673_v39 = vand.u32 4294901760, %v5329_v47 }
  0x63   :  { %8848 = vst [vmem:[#allocation46_spill] sm:$0xff] %v5319_v6  ;;  %v8670_v22 = vand.u32 4294901760, %v5319_v6 }
  0x64   :  { %283 = vmatmul.f32.gmra.mxu0 %v282_v54  ;;  %v5310_v54 = vld [vmem:[#allocation4 + $0xe8] sm:$0xff]  ;;  %v305_v43 = vsub.f32 %v5329_v47, %v8673_v39 }
  0x65   :  { %8847 = vst [vmem:[#allocation45_spill] sm:$0xff] %v5310_v54  ;;  %v433_v0 = vsub.f32 %v5319_v6, %v8670_v22 }
  0x66   :  { %600 = vmatmul.f32.gmra.mxu3 %v5220_v4  ;;  %v178_v4 = vsel %vm89_vm0, %v5310_v54, 0  ;;  %v5341_v54 = vand.u32 4294901760, %v130_v60  ;;  %v306_v6 = vand.u32 4294901760, %v305_v43 }
  0x67   :  { %536 = vmatmul.f32.gmra.mxu1 %v5229_v40  ;;  %v5332_v27 = vand.u32 4294901760, %v178_v4 }
  0x68   :  { %v5357_v23 = vsub.f32 %v130_v60, %v5341_v54 }
  0x69   :  { %419 = vmatmul.f32.gmra.mxu2 %v418_v50  ;;  %v426_v50 = vand.u32 4294901760, %v425_v11  ;;  %v5347_v11 = vsub.f32 %v178_v4, %v5332_v27  ;;  %v133_v4 = vsel %vm89_vm0, %v5351_v15, 0 }
  0x6a   :  { %v8684_v39 = vand.u32 4294901760, %v5357_v23 }
  0x6b   :  { %8850 = vst [vmem:[#allocation48_spill] sm:$0xff] %v5347_v11  ;;  %v8680_v44 = vand.u32 4294901760, %v5347_v11 }
  0x6c   :  { %291 = vmatmul.f32.gmra.mxu0 %v290_v32  ;;  %v5338_v32 = vld [vmem:[#allocation4 + $0xf0] sm:$0xff]  ;;  %v313_v43 = vsub.f32 %v5357_v23, %v8684_v39 }
  0x6d   :  { %8849 = vst [vmem:[#allocation47_spill] sm:$0xff] %v5338_v32  ;;  %v441_v60 = vsub.f32 %v5347_v11, %v8680_v44 }
  0x6e   :  { %604 = vmatmul.f32.gmra.mxu3 %v5248_v9  ;;  %v181_v9 = vsel %vm89_vm0, %v5338_v32, 0  ;;  %v5369_v32 = vand.u32 4294901760, %v133_v4 }
  0x6f   :  { %540 = vmatmul.f32.gmra.mxu1 %v5257_v62  ;;  %v5360_v22 = vand.u32 4294901760, %v181_v9 }
  0x70   :  { %v5385_v46 = vsub.f32 %v133_v4, %v5369_v32 }
  0x71   :  { %427 = vmatmul.f32.gmra.mxu2 %v426_v50  ;;  %v434_v50 = vand.u32 4294901760, %v433_v0  ;;  %v5375_v0 = vsub.f32 %v181_v9, %v5360_v22  ;;  %v136_v9 = vsel %vm89_vm0, %v5379_v16, 0 }
  0x72   :  { %v8691_v11 = vand.u32 4294901760, %v5385_v46 }
  0x73   :  { %v8688_v1 = vand.u32 4294901760, %v5375_v0 }
  0x74   :  { %299 = vmatmul.f32.gmra.mxu0 %v298_v61  ;;  %v5366_v61 = vld [vmem:[#allocation4 + $0xf8] sm:$0xff]  ;;  %v321_v39 = vsub.f32 %v5385_v46, %v8691_v11  ;;  %v8857_v11 = vand.u32 4294901760, %v5027_v55 }
  0x75   :  { %8851 = vst [vmem:[#allocation49_spill] sm:$0xff] %v5366_v61  ;;  %v449_v4 = vsub.f32 %v5375_v0, %v8688_v1 }
  0x76   :  { %608 = vmatmul.f32.gmra.mxu3 %v5276_v29  ;;  %v184_v29 = vsel %vm89_vm0, %v5366_v61, 0  ;;  %v5395_v61 = vand.u32 4294901760, %v136_v9 }
  0x77   :  { %544 = vmatmul.f32.gmra.mxu1 %v5285_v26  ;;  %v5388_v44 = vand.u32 4294901760, %v184_v29 }
  0x79   :  { %435 = vmatmul.f32.gmra.mxu2 %v434_v50  ;;  %v442_v50 = vand.u32 4294901760, %v441_v60  ;;  %8853 = vst [vmem:[#allocation51_spill] sm:$0xff] %v5388_v44  ;;  %v5401_v60 = vsub.f32 %v184_v29, %v5388_v44 }
  0x7b   :  { %8854 = vst [vmem:[#allocation52_spill] sm:$0xff] %v5401_v60  ;;  %v8689_v16 = vand.u32 4294901760, %v5401_v60 }
  0x7c   :  { %307 = vmatmul.f32.gmra.mxu0 %v306_v6  ;;  %v314_v6 = vand.u32 4294901760, %v313_v43  ;;  %v450_v43 = vand.u32 4294901760, %v449_v4 }
  0x7d   :  { %v457_v29 = vsub.f32 %v5401_v60, %v8689_v16  ;;  %v8943_v60 = vld [vmem:[#allocation26_spill] sm:$0xff] }
  0x7e   :  { %612 = vmatmul.f32.gmra.mxu3 %v5304_v52  ;;  %v5407_v52 = vsub.f32 %v136_v9, %v5395_v61 }
  0x7f   :  { %548 = vmatmul.f32.gmra.mxu1 %v5313_v3 }
  0x80   :  { %v8690_v1 = vand.u32 4294901760, %v5407_v52 }
  0x81   :  { %443 = vmatmul.f32.gmra.mxu2 %v442_v50  ;;  %v322_v50 = vand.u32 4294901760, %v321_v39 }
  0x82   :  { %v329_v9 = vsub.f32 %v5407_v52, %v8690_v1 }
  0x84   :  { %315 = vmatmul.f32.gmra.mxu0 %v314_v6  ;;  %v458_v6 = vand.u32 4294901760, %v457_v29  ;;  %v330_v4 = vand.u32 4294901760, %v329_v9  ;;  %v8855_v29 = vand.u32 4294901760, %v4992_v34 }
  0x86   :  { %616 = vmatmul.f32.gmra.mxu3 %v5332_v27 }
  0x87   :  { %552 = vmatmul.f32.gmra.mxu1 %v5341_v54 }
  0x89   :  { %451 = vmatmul.f32.gmra.mxu2 %v450_v43 }
  0x8c   :  { %323 = vmatmul.f32.gmra.mxu0 %v322_v50 }
  0x8e   :  { %620 = vmatmul.f32.gmra.mxu3 %v5360_v22 }
  0x8f   :  { %556 = vmatmul.f32.gmra.mxu1 %v5369_v32 }
  0x91   :  { %459 = vmatmul.f32.gmra.mxu2 %v458_v6 }
  0x94   :  { %331 = vmatmul.f32.gmra.mxu0 %v330_v4 }
  0x96   :  { %624 = vmatmul.f32.gmra.mxu3 %v5388_v44 }
  0x97   :  { %560 = vmatmul.f32.gmra.mxu1 %v5395_v61 }
  0x99   :  { %654 = vmatmul.f32.vlgmr.msrb.gmra.mxu2 %v4992_v34  ;;  %v5424_v39 = vpop.f32.mrf.mxu0 }
  0x9c   :  { %v340_v43 = vpop.f32.mrf.mxu2  ;;  %v5426_v50 = vpop.f32.mrf.mxu1  ;;  %1055 = vmatmul.f32.vlgmr.msrb.gmra.mxu0 %v4983_v28 }
  0x9e   :  { %836 = vmatmul.f32.vlgmr.msrb.gmra.mxu3 %v8855_v29 }
  0x9f   :  { %1204 = vmatmul.f32.vlgmr.msrb.gmra.mxu1 %v4983_v28 }
  0xa1   :  { %659 = vmatmul.f32.gmra.mxu2 %v5027_v55  ;;  %v565_v9 = vpop.f32.mrf.mxu3  ;;  %v5433_v6 = vpop.f32.mrf.mxu0 }
  0xa2   :  { %v5435_v4 = vadd.f32 %v565_v9, %v340_v43  ;;  %v8859_v9 = vand.u32 4294901760, %v5035_v59 }
  0xa4   :  { %8856 = vst [vmem:[#allocation53_spill] sm:$0xff] %v5435_v4  ;;  %v348_v16 = vpop.f32.mrf.mxu2  ;;  %v5437_v1 = vpop.f32.mrf.mxu1  ;;  %1059 = vmatmul.f32.gmra.mxu0 %v5016_v49 }
  0xa6   :  { %842 = vmatmul.f32.gmra.mxu3 %v8857_v11 }
  0xa7   :  { %1208 = vmatmul.f32.gmra.mxu1 %v5016_v49 }
  0xa9   :  { %664 = vmatmul.f32.gmra.mxu2 %v5035_v59  ;;  %v569_v28 = vpop.f32.mrf.mxu3  ;;  %v5444_v34 = vpop.f32.mrf.mxu0 }
  0xaa   :  { %v5446_v29 = vadd.f32 %v569_v28, %v348_v16  ;;  %v8861_v28 = vand.u32 4294901760, %v5074_v17 }
  0xac   :  { %8858 = vst [vmem:[#allocation54_spill] sm:$0xff] %v5446_v29  ;;  %v356_v44 = vpop.f32.mrf.mxu2  ;;  %v5448_v43 = vpop.f32.mrf.mxu1  ;;  %1063 = vmatmul.f32.gmra.mxu0 %v5024_v53 }
  0xae   :  { %848 = vmatmul.f32.gmra.mxu3 %v8859_v9 }
  0xaf   :  { %1212 = vmatmul.f32.gmra.mxu1 %v5024_v53  ;;  %v2121_v53 = vmul.f32 %v4996_v36, %v4996_v36  ;;  %v2122_v36 = vmul.f32 %v4998_v37, %v4998_v37 }
  0xb1   :  { %669 = vmatmul.f32.gmra.mxu2 %v5074_v17  ;;  %v573_v49 = vpop.f32.mrf.mxu3  ;;  %v5455_v55 = vpop.f32.mrf.mxu0  ;;  %v2123_v17 = vmul.f32 %v5031_v57, %v5031_v57 }
  0xb2   :  { %v5457_v11 = vadd.f32 %v573_v49, %v356_v44  ;;  %v2155_v49 = vsel %vm89_vm0, %v2121_v53, 0.0 }
  0xb3   :  { %2156 = vadd.xlane.f32.xlu2 %v2155_v49 }
  0xb4   :  { %8860 = vst [vmem:[#allocation55_spill] sm:$0xff] %v5457_v11  ;;  %v364_v4 = vpop.f32.mrf.mxu2  ;;  %v5459_v16 = vpop.f32.mrf.mxu1  ;;  %1067 = vmatmul.f32.gmra.mxu0 %v5053_v10 }
  0xb6   :  { %854 = vmatmul.f32.gmra.mxu3 %v8861_v28 }
  0xb7   :  { %1216 = vmatmul.f32.gmra.mxu1 %v5053_v10  ;;  %v8863_v10 = vand.u32 4294901760, %v5105_v33 }
  0xb9   :  { %674 = vmatmul.f32.gmra.mxu2 %v5105_v33  ;;  %v577_v59 = vpop.f32.mrf.mxu3  ;;  %v5468_v9 = vpop.f32.mrf.mxu0  ;;  %v2158_v33 = vsel %vm89_vm0, %v2122_v36, 0.0 }
  0xba   :  { %v5470_v44 = vadd.f32 %v577_v59, %v364_v4  ;;  %v2120_v4 = vmul.f32 %v4957_v12, %v4957_v12  ;;  %2159 = vadd.xlane.f32.xlu0 %v2158_v33  ;;  %v8865_v12 = vand.u32 4294901760, %v5133_v63 }
  0xbc   :  { %8862 = vst [vmem:[#allocation56_spill] sm:$0xff] %v5470_v44  ;;  %v372_v11 = vpop.f32.mrf.mxu2  ;;  %v5473_v29 = vpop.f32.mrf.mxu1  ;;  %1071 = vmatmul.f32.gmra.mxu0 %v5089_v25  ;;  %v2152_v49 = vsel %vm89_vm0, %v2120_v4, 0.0 }
  0xbd   :  { %2153 = vadd.xlane.f32.xlu1 %v2152_v49 }
  0xbe   :  { %860 = vmatmul.f32.gmra.mxu3 %v8863_v10 }
  0xbf   :  { %1220 = vmatmul.f32.gmra.mxu1 %v5089_v25  ;;  %v2161_v25 = vsel %vm89_vm0, %v2123_v17, 0.0 }
  0xc0   :  { %2162 = vadd.xlane.f32.xlu2 %v2161_v25 }
  0xc1   :  { %679 = vmatmul.f32.gmra.mxu2 %v5133_v63  ;;  %v581_v28 = vpop.f32.mrf.mxu3  ;;  %v5486_v53 = vpop.f32.mrf.mxu0 }
  0xc2   :  { %v5488_v59 = vadd.f32 %v581_v28, %v372_v11  ;;  %v8867_v28 = vand.u32 4294901760, %v5161_v45 }
  0xc4   :  { %8864 = vst [vmem:[#allocation57_spill] sm:$0xff] %v5488_v59  ;;  %v380_v37 = vpop.f32.mrf.mxu2  ;;  %v5493_v57 = vpop.f32.mrf.mxu1  ;;  %1075 = vmatmul.f32.gmra.mxu0 %v5117_v48 }
  0xc6   :  { %866 = vmatmul.f32.gmra.mxu3 %v8865_v12 }
  0xc7   :  { %1224 = vmatmul.f32.gmra.mxu1 %v5117_v48 }
  0xc9   :  { %684 = vmatmul.f32.gmra.mxu2 %v5161_v45  ;;  %v585_v11 = vpop.f32.mrf.mxu3  ;;  %v5500_v10 = vpop.f32.mrf.mxu0 }
  0xca   :  { %v5502_v36 = vadd.f32 %v585_v11, %v380_v37  ;;  %v8869_v37 = vand.u32 4294901760, %v5189_v30 }
  0xcc   :  { %8866 = vst [vmem:[#allocation58_spill] sm:$0xff] %v5502_v36  ;;  %v388_v17 = vpop.f32.mrf.mxu2  ;;  %v5504_v4 = vpop.f32.mrf.mxu1  ;;  %1079 = vmatmul.f32.gmra.mxu0 %v5145_v24 }
  0xce   :  { %872 = vmatmul.f32.gmra.mxu3 %v8867_v28 }
  0xcf   :  { %1228 = vmatmul.f32.gmra.mxu1 %v5145_v24  ;;  %v2124_v24 = vmul.f32 %v5066_v14, %v5066_v14  ;;  %v2126_v14 = vmul.f32 %v5127_v56, %v5127_v56 }
  0xd1   :  { %689 = vmatmul.f32.gmra.mxu2 %v5189_v30  ;;  %v589_v48 = vpop.f32.mrf.mxu3  ;;  %v5511_v63 = vpop.f32.mrf.mxu0  ;;  %v8871_v30 = vand.u32 4294901760, %v5217_v42 }
  0xd2   :  { %v5513_v33 = vadd.f32 %v589_v48, %v388_v17  ;;  %v2164_v17 = vsel %vm89_vm0, %v2124_v24, 0.0 }
  0xd3   :  { %2165 = vadd.xlane.f32.xlu1 %v2164_v17 }
  0xd4   :  { %8868 = vst [vmem:[#allocation59_spill] sm:$0xff] %v5513_v33  ;;  %v396_v25 = vpop.f32.mrf.mxu2  ;;  %v5515_v49 = vpop.f32.mrf.mxu1  ;;  %1083 = vmatmul.f32.gmra.mxu0 %v5173_v20  ;;  %v8942_v33 = vld [vmem:[#allocation28_spill] sm:$0xff] }
  0xd6   :  { %878 = vmatmul.f32.gmra.mxu3 %v8869_v37 }
  0xd7   :  { %1232 = vmatmul.f32.gmra.mxu1 %v5173_v20  ;;  %v2125_v20 = vmul.f32 %v5099_v31, %v5099_v31 }
  0xd9   :  { %694 = vmatmul.f32.gmra.mxu2 %v5217_v42  ;;  %v593_v45 = vpop.f32.mrf.mxu3  ;;  %v5524_v12 = vpop.f32.mrf.mxu0  ;;  %v2170_v42 = vsel %vm89_vm0, %v2126_v14, 0.0 }
  0xda   :  { %v5526_v11 = vadd.f32 %v593_v45, %v396_v25  ;;  %v2127_v25 = vmul.f32 %v5155_v38, %v5155_v38  ;;  %2171 = vadd.xlane.f32.xlu0 %v2170_v42  ;;  %v8873_v38 = vand.u32 4294901760, %v5245_v21 }
  0xdc   :  { %8870 = vst [vmem:[#allocation60_spill] sm:$0xff] %v5526_v11  ;;  %v404_v28 = vpop.f32.mrf.mxu2  ;;  %v5529_v48 = vpop.f32.mrf.mxu1  ;;  %1087 = vmatmul.f32.gmra.mxu0 %v5201_v5  ;;  %v2173_v17 = vsel %vm89_vm0, %v2127_v25, 0.0 }
  0xdd   :  { %2174 = vadd.xlane.f32.xlu1 %v2173_v17 }
  0xde   :  { %884 = vmatmul.f32.gmra.mxu3 %v8871_v30 }
  0xdf   :  { %1236 = vmatmul.f32.gmra.mxu1 %v5201_v5  ;;  %v2167_v5 = vsel %vm89_vm0, %v2125_v20, 0.0 }
  0xe0   :  { %2168 = vadd.xlane.f32.xlu2 %v2167_v5 }
  0xe1   :  { %699 = vmatmul.f32.gmra.mxu2 %v5245_v21  ;;  %v597_v37 = vpop.f32.mrf.mxu3  ;;  %v5542_v24 = vpop.f32.mrf.mxu0  ;;  %v2128_v21 = vmul.f32 %v5183_v41, %v5183_v41  ;;  %v2131_v41 = vmul.f32 %v5267_v13, %v5267_v13  ;;  %v2129_v13 = vmul.f32 %v5211_v58, %v5211_v58 }
  0xe2   :  { %v5544_v45 = vadd.f32 %v597_v37, %v404_v28  ;;  %v8875_v37 = vand.u32 4294901760, %v5273_v35 }
  0xe3   :  { %v2176_v17 = vsel %vm89_vm0, %v2128_v21, 0.0  ;;  %v2185_v21 = vsel %vm89_vm0, %v2131_v41, 0.0 }
  0xe4   :  { %8872 = vst [vmem:[#allocation61_spill] sm:$0xff] %v5544_v45  ;;  %v412_v56 = vpop.f32.mrf.mxu2  ;;  %v5549_v31 = vpop.f32.mrf.mxu1  ;;  %1091 = vmatmul.f32.gmra.mxu0 %v5229_v40  ;;  %v8940_v45 = vld [vmem:[#allocation23_spill] sm:$0xff] }
  0xe6   :  { %890 = vmatmul.f32.gmra.mxu3 %v8873_v38 }
  0xe7   :  { %1240 = vmatmul.f32.gmra.mxu1 %v5229_v40 }
  0xe8   :  { %2177 = vadd.xlane.f32.xlu2 %v2176_v17  ;;  %v2179_v17 = vsel %vm89_vm0, %v2129_v13, 0.0  ;;  %v2136_v13 = vmul.f32 %v4947_v7, %v4947_v7 }
  0xe9   :  { %704 = vmatmul.f32.gmra.mxu2 %v5273_v35  ;;  %v601_v28 = vpop.f32.mrf.mxu3  ;;  %v5556_v30 = vpop.f32.mrf.mxu0  ;;  %v8877_v35 = vand.u32 4294901760, %v5301_v19  ;;  %2180 = vadd.xlane.f32.xlu0 %v2179_v17 }
  0xea   :  { %v5558_v14 = vadd.f32 %v601_v28, %v412_v56 }
  0xec   :  { %8874 = vst [vmem:[#allocation62_spill] sm:$0xff] %v5558_v14  ;;  %v420_v20 = vpop.f32.mrf.mxu2  ;;  %v5560_v25 = vpop.f32.mrf.mxu1  ;;  %1095 = vmatmul.f32.gmra.mxu0 %v5257_v62 }
  0xee   :  { %896 = vmatmul.f32.gmra.mxu3 %v8875_v37 }
  0xef   :  { %1244 = vmatmul.f32.gmra.mxu1 %v5257_v62  ;;  %v2130_v62 = vmul.f32 %v5239_v51, %v5239_v51  ;;  %v8879_v51 = vand.u32 4294901760, %v5329_v47 }
  0xf0   :  { %2186 = vadd.xlane.f32.xlu2 %v2185_v21 }
  0xf1   :  { %709 = vmatmul.f32.gmra.mxu2 %v5301_v19  ;;  %v605_v40 = vpop.f32.mrf.mxu3  ;;  %v5569_v42 = vpop.f32.mrf.mxu0  ;;  %v2182_v19 = vsel %vm89_vm0, %v2130_v62, 0.0 }
  0xf2   :  { %v5571_v5 = vadd.f32 %v605_v40, %v420_v20  ;;  %2183 = vadd.xlane.f32.xlu1 %v2182_v19 }
  0xf4   :  { %8876 = vst [vmem:[#allocation63_spill] sm:$0xff] %v5571_v5  ;;  %v428_v56 = vpop.f32.mrf.mxu2  ;;  %v5574_v38 = vpop.f32.mrf.mxu1  ;;  %1099 = vmatmul.f32.gmra.mxu0 %v5285_v26 }
  0xf6   :  { %902 = vmatmul.f32.gmra.mxu3 %v8877_v35  ;;  %v2133_v35 = vmul.f32 %v5323_v2, %v5323_v2  ;;  %v8881_v2 = vand.u32 4294901760, %v5357_v23 }
  0xf7   :  { %1248 = vmatmul.f32.gmra.mxu1 %v5285_v26 }
  0xf9   :  { %714 = vmatmul.f32.gmra.mxu2 %v5329_v47  ;;  %v609_v28 = vpop.f32.mrf.mxu3  ;;  %v5585_v20 = vpop.f32.mrf.mxu0 }
  0xfa   :  { %v5587_v37 = vadd.f32 %v609_v28, %v428_v56  ;;  %v2134_v56 = vmul.f32 %v5351_v15, %v5351_v15  ;;  %v2132_v15 = vmul.f32 %v5295_v18, %v5295_v18 }
  0xfc   :  { %8878 = vst [vmem:[#allocation64_spill] sm:$0xff] %v5587_v37  ;;  %v436_v26 = vpop.f32.mrf.mxu2  ;;  %v5591_v40 = vpop.f32.mrf.mxu1  ;;  %1103 = vmatmul.f32.gmra.mxu0 %v5313_v3  ;;  %v2194_v47 = vsel %vm89_vm0, %v2134_v56, 0.0  ;;  %v2188_v19 = vsel %vm89_vm0, %v2132_v15, 0.0  ;;  %v8887_v15 = vld [vmem:[#allocation15_spill] sm:$0xff]  ;;  %v8907_v37 = vld [vmem:[#allocation16_spill] sm:$0xff] }
  0xfd   :  { %2195 = vadd.xlane.f32.xlu2 %v2194_v47  ;;  %2189 = vadd.xlane.f32.xlu0 %v2188_v19  ;;  %v8909_v5 = vand.u32 4294901760, %v8907_v37 }
  0xfe   :  { %908 = vmatmul.f32.gmra.mxu3 %v8879_v51 }
  0xff   :  { %1252 = vmatmul.f32.gmra.mxu1 %v5313_v3  ;;  %v2191_v3 = vsel %vm89_vm0, %v2133_v35, 0.0 }
 0x100   :  { %2192 = vadd.xlane.f32.xlu1 %v2191_v3  ;;  %v8886_v3 = vld [vmem:[#allocation18_spill] sm:$0xff] }
 0x101   :  { %719 = vmatmul.f32.gmra.mxu2 %v5357_v23  ;;  %v613_v41 = vpop.f32.mrf.mxu3  ;;  %v5605_v62 = vpop.f32.mrf.mxu0 }
 0x102   :  { %v5607_v58 = vadd.f32 %v613_v41, %v436_v26  ;;  %v2137_v26 = vmul.f32 %v4949_v8, %v4949_v8  ;;  %v8884_v8 = vld [vmem:[#allocation50_spill] sm:$0xff]  ;;  %v8885_v41 = vand.u32 4294901760, %v5385_v46 }
 0x103   :  { %v2135_v7 = vmul.f32 %v8884_v8, %v8884_v8 }
 0x104   :  { %8880 = vst [vmem:[#allocation65_spill] sm:$0xff] %v5607_v58  ;;  %v444_v28 = vpop.f32.mrf.mxu2  ;;  %v5611_v21 = vpop.f32.mrf.mxu1  ;;  %1107 = vmatmul.f32.gmra.mxu0 %v5341_v54  ;;  %v2203_v23 = vsel %vm89_vm0, %v2137_v26, 0.0  ;;  %v8905_v58 = vld [vmem:[#allocation45_spill] sm:$0xff] }
 0x105   :  { %2204 = vadd.xlane.f32.xlu2 %v2203_v23  ;;  %v2197_v47 = vsel %vm89_vm0, %v2135_v7, 0.0  ;;  %v8891_v7 = vand.u32 4294901760, %v5407_v52 }
 0x106   :  { %914 = vmatmul.f32.gmra.mxu3 %v8881_v2  ;;  %2198 = vadd.xlane.f32.xlu0 %v2197_v47  ;;  %v2139_v2 = vmul.f32 %v8887_v15, %v8887_v15  ;;  %v8894_v15 = vld [vmem:[#allocation12_spill] sm:$0xff] }
 0x107   :  { %1256 = vmatmul.f32.gmra.mxu1 %v5341_v54  ;;  %v2200_v54 = vsel %vm89_vm0, %v2136_v13, 0.0 }
 0x108   :  { %2201 = vadd.xlane.f32.xlu1 %v2200_v54  ;;  %v4818_v54 = vld [vmem:[#allocation4 + $0x90] sm:$0xff] }
 0x109   :  { %724 = vmatmul.f32.gmra.mxu2 %v5385_v46  ;;  %v617_v51 = vpop.f32.mrf.mxu3  ;;  %v5625_v17 = vpop.f32.mrf.mxu0  ;;  %v2138_v8 = vmul.f32 %v4818_v54, %v4818_v54 }
 0x10a   :  { %v5627_v18 = vadd.f32 %v617_v51, %v444_v28  ;;  %v2140_v28 = vmul.f32 %v8886_v3, %v8886_v3  ;;  %v8893_v3 = vld [vmem:[#allocation24_spill] sm:$0xff] }
 0x10c   :  { %8882 = vst [vmem:[#allocation66_spill] sm:$0xff] %v5627_v18  ;;  %v452_v56 = vpop.f32.mrf.mxu2  ;;  %v5631_v35 = vpop.f32.mrf.mxu1  ;;  %1111 = vmatmul.f32.gmra.mxu0 %v5369_v32  ;;  %v2212_v46 = vsel %vm89_vm0, %v2140_v28, 0.0  ;;  %v2142_v28 = vmul.f32 %v8893_v3, %v8893_v3  ;;  %v8906_v18 = vld [vmem:[#allocation42_spill] sm:$0xff] }
 0x10d   :  { %8883 = vst [vmem:[#allocation67_spill] sm:$0xff] %v5631_v35  ;;  %2213 = vadd.xlane.f32.xlu2 %v2212_v46  ;;  %v8968_v35 = vld [vmem:[#allocation38_spill] sm:$0xff] }
 0x10e   :  { %920 = vmatmul.f32.gmra.mxu3 %v8885_v41  ;;  %v8892_v41 = vld [vmem:[#allocation27_spill] sm:$0xff] }
 0x10f   :  { %1260 = vmatmul.f32.gmra.mxu1 %v5369_v32  ;;  %v2209_v32 = vsel %vm89_vm0, %v2139_v2, 0.0  ;;  %v2143_v47 = vmul.f32 %v8892_v41, %v8892_v41  ;;  %v8898_v41 = vand.u32 4294901760, %v8894_v15 }
 0x110   :  { %2210 = vadd.xlane.f32.xlu1 %v2209_v32  ;;  %v2218_v32 = vsel %vm89_vm0, %v2142_v28, 0.0  ;;  %v8900_v28 = vld [vmem:[#allocation33_spill] sm:$0xff] }
 0x111   :  { %729 = vmatmul.f32.gmra.mxu2 %v5407_v52  ;;  %v621_v19 = vpop.f32.mrf.mxu3  ;;  %v5645_v26 = vpop.f32.mrf.mxu0  ;;  %v2221_v52 = vsel %vm89_vm0, %v2143_v47, 0.0  ;;  %v8899_v47 = vld [vmem:[#allocation36_spill] sm:$0xff] }
 0x112   :  { %8888 = vst [vmem:[#allocation50_spill] sm:$0xff] %v5645_v26  ;;  %v5647_v13 = vadd.f32 %v621_v19, %v452_v56  ;;  %v2206_v56 = vsel %vm89_vm0, %v2138_v8, 0.0  ;;  %v8896_v8 = vld [vmem:[#allocation10_spill] sm:$0xff]  ;;  %v2146_v3 = vmul.f32 %v8899_v47, %v8899_v47  ;;  %v506_v47 = vadd.f32 %v5437_v1, %v5433_v6 }
 0x113   :  { %2207 = vadd.xlane.f32.xlu0 %v2206_v56 }
 0x114   :  { %8889 = vst [vmem:[#allocation18_spill] sm:$0xff] %v5647_v13  ;;  %v460_v51 = vpop.f32.mrf.mxu2  ;;  %v5651_v23 = vpop.f32.mrf.mxu1  ;;  %1115 = vmatmul.f32.gmra.mxu0 %v5395_v61  ;;  %v8902_v13 = vld [vmem:[#allocation11_spill] sm:$0xff] }
 0x115   :  { %8890 = vst [vmem:[#allocation15_spill] sm:$0xff] %v5651_v23  ;;  %2222 = vadd.xlane.f32.xlu2 %v2221_v52  ;;  %v8901_v52 = vld [vmem:[#allocation13_spill] sm:$0xff] }
 0x116   :  { %926 = vmatmul.f32.gmra.mxu3 %v8891_v7  ;;  %v8897_v7 = vld [vmem:[#allocation21_spill] sm:$0xff] }
 0x117   :  { %1264 = vmatmul.f32.gmra.mxu1 %v5395_v61  ;;  %v2141_v56 = vmul.f32 %v8897_v7, %v8897_v7  ;;  %v2230_v7 = vsel %vm89_vm0, %v2146_v3, 0.0 }
 0x118   :  { %2219 = vadd.xlane.f32.xlu1 %v2218_v32 }
 0x119   :  { %734 = vmatmul.f32.gmra.mxu2 %v8894_v15  ;;  %v625_v2 = vpop.f32.mrf.mxu3  ;;  %v1056_v19 = vpop.f32.mrf.mxu0 }
 0x11a   :  { %v5663_v46 = vadd.f32 %v625_v2, %v460_v51  ;;  %v2215_v51 = vsel %vm89_vm0, %v2141_v56, 0.0  ;;  %v2145_v2 = vmul.f32 %v8900_v28, %v8900_v28  ;;  %v8903_v56 = vld [vmem:[#allocation30_spill] sm:$0xff]  ;;  %v8904_v28 = vand.u32 4294901760, %v8901_v52 }
 0x11b   :  { %2216 = vadd.xlane.f32.xlu0 %v2215_v51  ;;  %v2144_v51 = vmul.f32 %v8903_v56, %v8903_v56  ;;  %v2148_v56 = vmul.f32 %v8906_v18, %v8906_v18  ;;  %v510_v18 = vadd.f32 %v5448_v43, %v5444_v34 }
 0x11c   :  { %8895 = vst [vmem:[#allocation27_spill] sm:$0xff] %v5663_v46  ;;  %v655_v61 = vpop.f32.mrf.mxu2  ;;  %v1205_v54 = vpop.f32.mrf.mxu1  ;;  %1119 = vmatmul.f32.gmra.mxu0 %v8896_v8  ;;  %v2227_v15 = vsel %vm89_vm0, %v2145_v2, 0.0  ;;  %v502_v2 = vadd.f32 %v5426_v50, %v5424_v39 }
 0x11d   :  { %2231 = vadd.xlane.f32.xlu2 %v2230_v7  ;;  %v2224_v3 = vsel %vm89_vm0, %v2144_v51, 0.0  ;;  %v2236_v51 = vsel %vm89_vm0, %v2148_v56, 0.0  ;;  %v8911_v56 = vld [vmem:[#allocation19_spill] sm:$0xff] }
 0x11e   :  { %932 = vmatmul.f32.gmra.mxu3 %v8898_v41 }
 0x11f   :  { %1268 = vmatmul.f32.gmra.mxu1 %v8896_v8 }
 0x120   :  { %2228 = vadd.xlane.f32.xlu1 %v2227_v15  ;;  %v2149_v15 = vmul.f32 %v8905_v58, %v8905_v58  ;;  %v8694_v58 = vlaneseq }
 0x121   :  { %739 = vmatmul.f32.gmra.mxu2 %v8901_v52  ;;  %v837_v32 = vpop.f32.mrf.mxu3  ;;  %v1060_v46 = vpop.f32.mrf.mxu0  ;;  %v656_v52 = vadd.f32 %v655_v61, %v502_v2 }
 0x123   :  { %2225 = vadd.xlane.f32.xlu0 %v2224_v3  ;;  %v838_v39 = vadd.f32 %v837_v32, %v656_v52 }
 0x124   :  { %v660_v41 = vpop.f32.mrf.mxu2  ;;  %v1209_v8 = vpop.f32.mrf.mxu1  ;;  %1123 = vmatmul.f32.gmra.mxu0 %v8902_v13 }
 0x125   :  { %v661_v7 = vadd.f32 %v660_v41, %v506_v47  ;;  %v8908_v47 = vld [vmem:[#allocation14_spill] sm:$0xff]  ;;  %v1057_v61 = vadd.f32 %v1056_v19, %v838_v39 }
 0x126   :  { %938 = vmatmul.f32.gmra.mxu3 %v8904_v28 }
 0x127   :  { %1272 = vmatmul.f32.gmra.mxu1 %v8902_v13  ;;  %v2239_v13 = vsel %vm89_vm0, %v2149_v15, 0.0  ;;  %v5708_v15 = vshrl.u32 %v8694_v58, 7 }
 0x128   :  { %2240 = vadd.xlane.f32.xlu2 %v2239_v13  ;;  %2237 = vadd.xlane.f32.xlu1 %v2236_v51 }
 0x129   :  { %744 = vmatmul.f32.gmra.mxu2 %v8907_v37  ;;  %v843_v1 = vpop.f32.mrf.mxu3  ;;  %v1064_v6 = vpop.f32.mrf.mxu0  ;;  %v8913_v37 = vld [vmem:[#allocation49_spill] sm:$0xff] }
 0x12a   :  { %v844_v28 = vadd.f32 %v843_v1, %v661_v7  ;;  %v8910_v7 = vld [vmem:[#allocation39_spill] sm:$0xff]  ;;  %v2151_v19 = vmul.f32 %v8913_v37, %v8913_v37 }
 0x12b   :  { %v2147_v32 = vmul.f32 %v8910_v7, %v8910_v7  ;;  %v8919_v7 = vmov 0 }
 0x12c   :  { %v665_v50 = vpop.f32.mrf.mxu2  ;;  %v1213_v41 = vpop.f32.mrf.mxu1  ;;  %1127 = vmatmul.f32.gmra.mxu0 %v8908_v47  ;;  %v1061_v3 = vadd.f32 %v1060_v46, %v844_v28  ;;  %v5719_v46 = vadd.f32 %v1205_v54, %v1057_v61  ;;  %v1337_v54 = vstv %s8590_s3 }
 0x12d   :  { %v666_v2 = vadd.f32 %v665_v50, %v510_v18  ;;  %v2233_v43 = vsel %vm89_vm0, %v2147_v32, 0.0  ;;  %v8915_v50 = vld [vmem:[#allocation17_spill] sm:$0xff]  ;;  %v2245_v18 = vsel %vm89_vm0, %v2151_v19, 0.0  ;;  %v8924_v32 = vld [vmem:[#allocation47_spill] sm:$0xff]  ;;  %vm5761_vm2 = vcmp.lt.s32.totalorder %v5708_v15, %v1337_v54 }
 0x12e   :  { %944 = vmatmul.f32.gmra.mxu3 %v8909_v5  ;;  %v5711_v13 = vadd.f32 %v1209_v8, %v1061_v3  ;;  %v5715_v5 = vadd.s32 8, %v5708_v15  ;;  %2234 = vadd.xlane.f32.xlu0 %v2233_v43  ;;  %8914 = vst [vmem:[#allocation12_spill] sm:$0xff] %v5719_v46  ;;  %v5725_v8 = vstv %s8589_s2  ;;  %v514_v3 = vadd.f32 %v5459_v16, %v5455_v55  ;;  %v8931_v43 = vld [vmem:[#allocation22_spill] sm:$0xff]  ;;  %s4909_s2 = smov 127  }
 0x12f   :  { %1276 = vmatmul.f32.gmra.mxu1 %v8908_v47  ;;  %v5728_v47 = vadd.s32 16, %v5708_v15  ;;  %v5752_v55 = vadd.f32 %v5725_v8, %v5719_v46 }
 0x130   :  { %8912 = vst [vmem:[#allocation24_spill] sm:$0xff] %v5711_v13  ;;  %2246 = vadd.xlane.f32.xlu1 %v2245_v18  ;;  %vm5745_vm1 = vcmp.lt.s32.totalorder %v5715_v5, %v1337_v54  ;;  %v5780_v18 = vadd.s32 24, %v5708_v15  ;;  %v5828_v14 = vpop.xlane.xlu1 %2153 }
 0x131   :  { %749 = vmatmul.f32.gmra.mxu2 %v8911_v56  ;;  %v849_v1 = vpop.f32.mrf.mxu3  ;;  %v1068_v52 = vpop.f32.mrf.mxu0  ;;  %v8920_v7 = vsel %vm5745_vm1, 4294967295, %v8919_v7  ;;  %8922 = vst [vmem:[#allocation33_spill] sm:$0xff] %v5752_v55  ;;  %vm5766_vm3 = vcmp.lt.s32.totalorder %v5728_v47, %v1337_v54 }
 0x132   :  { %v850_v34 = vadd.f32 %v849_v1, %v666_v2  ;;  %v8918_v2 = vand.u32 4294901760, %v8911_v56  ;;  %8921 = vst [vmem:[#allocation36_spill] sm:$0xff] %v8920_v7  ;;  %v2150_v56 = vmul.f32 %v8924_v32, %v8924_v32  ;;  %v8925_v1 = vmov 0  ;;  %v4846_v7 = vld [vmem:[#allocation4 + $0xd0] sm:$0xff] }
 0x133   :  { %v8926_v1 = vsel %vm5761_vm2, 4294967295, %v8925_v1  ;;  %vm5806_vm5 = vcmp.lt.s32.totalorder %v5780_v18, %v1337_v54 }
 0x134   :  { %v670_v28 = vpop.f32.mrf.mxu2  ;;  %v1065_v51 = vadd.f32 %v1064_v6, %v850_v34  ;;  %v1217_v39 = vpop.f32.mrf.mxu1  ;;  %1131 = vmatmul.f32.gmra.mxu0 %v8915_v50  ;;  %v5738_v6 = vadd.f32 %v5725_v8, %v5711_v13  ;;  %8927 = vst [vmem:[#allocation11_spill] sm:$0xff] %v8926_v1  ;;  %v8928_v34 = vmov 0  ;;  %v8934_v13 = vand.u32 4294901760, %v8931_v43  ;;  %v4845_v1 = vld [vmem:[#allocation4 + $0xd8] sm:$0xff] }
 0x135   :  { %v671_v16 = vadd.f32 %v670_v28, %v514_v3  ;;  %v8929_v34 = vsel %vm5766_vm3, 4294967295, %v8928_v34  ;;  %v5785_v3 = vsel %vm5761_vm2, %v5752_v55, -1e+30  ;;  %v5823_v55 = vpop.xlane.xlu2 %2156 }
 0x136   :  { %8916 = vst [vmem:[#allocation10_spill] sm:$0xff] %v5738_v6  ;;  %v5740_v61 = vadd.f32 %v1213_v41, %v1065_v51  ;;  %950 = vmatmul.f32.gmra.mxu3 %v8918_v2  ;;  %v5776_v28 = vsel %vm5745_vm1, %v5738_v6, -1e+30 }
 0x137   :  { %1280 = vmatmul.f32.gmra.mxu1 %v8915_v50  ;;  %8930 = vst [vmem:[#allocation30_spill] sm:$0xff] %v8929_v34  ;;  %v2242_v50 = vsel %vm89_vm0, %v2150_v56, 0.0  ;;  %v8932_v56 = vld [vmem:[#allocation20_spill] sm:$0xff] }
 0x138   :  { %8917 = vst [vmem:[#allocation21_spill] sm:$0xff] %v5740_v61  ;;  %v5756_v41 = vadd.f32 %v5725_v8, %v5740_v61  ;;  %2243 = vadd.xlane.f32.xlu0 %v2242_v50  ;;  %v1408_v61 = vsel %vm1407_vm4, %v5785_v3, -inf }
 0x139   :  { %754 = vmatmul.f32.gmra.mxu2 %v8931_v43  ;;  %v855_v37 = vpop.f32.mrf.mxu3  ;;  %v5771_v19 = vpop.f32.mrf.mxu0 }
 0x13a   :  { %8923 = vst [vmem:[#allocation13_spill] sm:$0xff] %v5756_v41  ;;  %v856_v51 = vadd.f32 %v855_v37, %v671_v16  ;;  %v5790_v2 = vsel %vm5766_vm3, %v5756_v41, -1e+30  ;;  %v1409_v37 = vsel %vm1407_vm4, %v5776_v28, -inf }
 0x13b   :  { %v1411_v46 = vsel %vm1407_vm4, %v5790_v2, -inf }
 0x13c   :  { %v675_v32 = vpop.f32.mrf.mxu2  ;;  %v1069_v58 = vadd.f32 %v1068_v52, %v856_v51  ;;  %v5792_v16 = vpop.f32.mrf.mxu1  ;;  %1135 = vmatmul.f32.gmra.mxu0 %v8932_v56  ;;  %v8935_v52 = vmov 0  ;;  %v1410_v51 = vmax.f32 %v1408_v61, %v1409_v37 }
 0x13d   :  { %v8936_v52 = vsel %vm5806_vm5, 4294967295, %v8935_v52  ;;  %v5825_v61 = vpop.xlane.xlu0 %2159 }
 0x13e   :  { %v5797_v50 = vadd.f32 %v1217_v39, %v1069_v58  ;;  %956 = vmatmul.f32.gmra.mxu3 %v8934_v13  ;;  %8937 = vst [vmem:[#allocation42_spill] sm:$0xff] %v8936_v52  ;;  %v8939_v39 = vld [vmem:[#allocation25_spill] sm:$0xff]  ;;  %v1412_v41 = vmax.f32 %v1410_v51, %v1411_v46  ;;  %v522_v46 = vadd.f32 %v5493_v57, %v5486_v53  ;;  %4558 = vrsqrt.f32 %v5825_v61 }
 0x13f   :  { %1284 = vmatmul.f32.gmra.mxu1 %v8932_v56  ;;  %4560 = vrsqrt.f32 %v5828_v14  ;;  %vm2306_vm13 = vweird.f32 %v5825_v61 }
 0x140   :  { %8933 = vst [vmem:[#allocation45_spill] sm:$0xff] %v5797_v50  ;;  %v5813_v58 = vadd.f32 %v5725_v8, %v5797_v50  ;;  %4562 = vrsqrt.f32 %v5823_v55 }
 0x141   :  { %759 = vmatmul.f32.gmra.mxu2 %v8939_v39  ;;  %v861_v13 = vpop.f32.mrf.mxu3  ;;  %v1076_v43 = vpop.f32.mrf.mxu0 }
 0x142   :  { %8938 = vst [vmem:[#allocation16_spill] sm:$0xff] %v5813_v58  ;;  %v5819_v6 = vsel %vm5806_vm5, %v5813_v58, -1e+30  ;;  %v8941_v58 = vand.u32 4294901760, %v8939_v39 }
 0x143   :  { %v1413_v54 = vsel %vm1407_vm4, %v5819_v6, -inf }
 0x144   :  { %v1414_v56 = vmax.f32 %v1412_v41, %v1413_v54  ;;  %v680_v37 = vpop.f32.mrf.mxu2  ;;  %v1225_v50 = vpop.f32.mrf.mxu1  ;;  %1139 = vmatmul.f32.gmra.mxu0 %v8940_v45  ;;  %v518_v41 = vadd.f32 %v5473_v29, %v5468_v9 }
 0x145   :  { %v681_v11 = vadd.f32 %v680_v37, %v522_v46  ;;  %v5840_v39 = vpop.eup %4558  ;;  %v8944_v37 = vand.u32 4294901760, %v8942_v33 }
 0x146   :  { %v1415_v51 = vrot.slane %v1414_v56, 4  ;;  %962 = vmatmul.f32.gmra.mxu3 %v8941_v58  ;;  %v676_v53 = vadd.f32 %v675_v32, %v518_v41  ;;  %v5844_v9 = vpop.eup %4560  ;;  %v5848_v32 = vpop.xlane.xlu2 %2162  ;;  %vm2307_vm14 = vweird.f32 %v5840_v39 }
 0x147   :  { %1288 = vmatmul.f32.gmra.mxu1 %v8940_v45  ;;  %4564 = vrsqrt.f32 %v5848_v32 }
 0x148   :  { %v1416_v54 = vmax.f32 %v1414_v56, %v1415_v51  ;;  %v862_v23 = vadd.f32 %v861_v13, %v676_v53  ;;  %v2301_v13 = vmul.f32 %v5840_v39, %v5825_v61  ;;  %v8946_v51 = vld [vmem:[#allocation31_spill] sm:$0xff] }
 0x149   :  { %764 = vmatmul.f32.gmra.mxu2 %v8942_v33  ;;  %v867_v36 = vpop.f32.mrf.mxu3  ;;  %v1080_v59 = vpop.f32.mrf.mxu0 }
 0x14a   :  { %v1417_v57 = vrot.slane %v1416_v54, 2  ;;  %v868_v44 = vadd.f32 %v867_v36, %v681_v11  ;;  %v4907_v36 = vmov 0   ;;  %v526_v11 = vadd.f32 %v5504_v4, %v5500_v10 }
 0x14b   :  { %4487 = vset.pattern.permute.xlu1 %v4907_v36  ;;  %4486 = vset.pattern.permute.xlu2 %v4907_v36  ;;  %v2281_v10 = vmul.f32 %v5844_v9, %v5828_v14 }
 0x14c   :  { %v1418_v58 = vmax.f32 %v1416_v54, %v1417_v57  ;;  %v685_v26 = vpop.f32.mrf.mxu2  ;;  %v1229_v45 = vpop.f32.mrf.mxu1  ;;  %1143 = vmatmul.f32.gmra.mxu0 %v8943_v60  ;;  %v1077_v29 = vadd.f32 %v1076_v43, %v868_v44  ;;  %v1073_v43 = vadd.f32 %v5771_v19, %v862_v23  ;;  %4475 = vset.pattern.permute.xlu0 %v4907_v36  ;;  %v8948_v57 = vld [vmem:[#allocation29_spill] sm:$0xff] }
 0x14d   :  { %v686_v46 = vadd.f32 %v685_v26, %v526_v11 }
 0x14e   :  { %v1419_v56 = vrot.slane %v1418_v58, 1  ;;  %968 = vmatmul.f32.gmra.mxu3 %v8944_v37  ;;  %v5856_v33 = vadd.f32 %v1225_v50, %v1077_v29  ;;  %v2302_v50 = vmul.f32 %v5840_v39, %v2301_v13  ;;  %v8950_v13 = vand.u32 4294901760, %v8946_v51 }
 0x14f   :  { %1292 = vmatmul.f32.gmra.mxu1 %v8943_v60  ;;  %v5866_v60 = vpop.eup %4562 }
 0x150   :  { %v1420_v44 = vmax.f32 %v1418_v58, %v1419_v56  ;;  %8945 = vst [vmem:[#allocation14_spill] sm:$0xff] %v5856_v33  ;;  %v530_v58 = vadd.f32 %v5515_v49, %v5511_v63  ;;  %v2282_v56 = vmul.f32 %v5844_v9, %v2281_v10  ;;  %v5887_v11 = vadd.f32 %v5725_v8, %v5856_v33 }
 0x151   :  { %769 = vmatmul.f32.gmra.mxu2 %v8946_v51  ;;  %v873_v41 = vpop.f32.mrf.mxu3  ;;  %v1084_v4 = vpop.f32.mrf.mxu0  ;;  %v2303_v49 = vmul.f32 0.5, %v2302_v50  ;;  %v8953_v51 = vld [vmem:[#allocation34_spill] sm:$0xff] }
 0x152   :  { %vm1512_vm6 = vcmp.ge.f32.partialorder %v5785_v3, %v1420_v44  ;;  %vm1513_vm7 = vcmp.ge.f32.partialorder %v5776_v28, %v1420_v44  ;;  %vm1514_vm8 = vcmp.ge.f32.partialorder %v5790_v2, %v1420_v44  ;;  %vm1515_vm9 = vcmp.ge.f32.partialorder %v5819_v6, %v1420_v44  ;;  %8949 = vst [vmem:[#allocation19_spill] sm:$0xff] %v5887_v11  ;;  %v5891_v44 = vpop.eup %4564 }
 0x153   :  { %v1544_v26 = vsel %vm1512_vm6, %v5708_v15, 32  ;;  %v1545_v23 = vsel %vm1513_vm7, %v5715_v5, 32  ;;  %v1546_v19 = vsel %vm1514_vm8, %v5728_v47, 32  ;;  %v5875_v28 = vadd.f32 %v5792_v16, %v1073_v43  ;;  %vm5955_vm8 = vmor %vm2306_vm13, %vm2307_vm14 }
 0x154   :  { %v1576_v54 = vsel %vm1407_vm4, %v1544_v26, 2147483647  ;;  %v1577_v3 = vsel %vm1407_vm4, %v1545_v23, 2147483647  ;;  %v874_v2 = vadd.f32 %v873_v41, %v686_v46  ;;  %v690_v53 = vpop.f32.mrf.mxu2  ;;  %v1233_v6 = vpop.f32.mrf.mxu1  ;;  %1147 = vmatmul.f32.gmra.mxu0 %v8948_v57  ;;  %v1547_v29 = vsel %vm1515_vm9, %v5780_v18, 32 }
 0x155   :  { %8947 = vst [vmem:[#allocation39_spill] sm:$0xff] %v5875_v28  ;;  %vm1578_vm10 = vcmp.lt.s32.totalorder %v1576_v54, %v1577_v3  ;;  %v1580_v36 = vsel %vm1407_vm4, %v1546_v19, 2147483647  ;;  %v2291_v16 = vmul.f32 %v5866_v60, %v5823_v55  ;;  %v1583_v46 = vsel %vm1407_vm4, %v1547_v29, 2147483647 }
 0x156   :  { %v1579_v37 = vsel %vm1578_vm10, %v1576_v54, %v1577_v3  ;;  %974 = vmatmul.f32.gmra.mxu3 %v8950_v13  ;;  %v1081_v63 = vadd.f32 %v1080_v59, %v874_v2  ;;  %v5897_v41 = vadd.f32 %v5725_v8, %v5875_v28  ;;  %v691_v10 = vadd.f32 %v690_v53, %v530_v58  ;;  %v8964_v28 = vld [vmem:[#allocation35_spill] sm:$0xff] }
 0x157   :  { %vm1581_vm11 = vcmp.lt.s32.totalorder %v1579_v37, %v1580_v36  ;;  %1296 = vmatmul.f32.gmra.mxu1 %v8948_v57  ;;  %v2283_v26 = vmul.f32 0.5, %v2282_v56  ;;  %v2292_v50 = vmul.f32 %v5866_v60, %v2291_v16  ;;  %v5908_v3 = vsel %vm5745_vm1, %v5887_v11, -1e+30  ;;  %v8955_v16 = vld [vmem:[#allocation32_spill] sm:$0xff] }
 0x158   :  { %v1582_v43 = vsel %vm1581_vm11, %v1579_v37, %v1580_v36  ;;  %8951 = vst [vmem:[#allocation49_spill] sm:$0xff] %v5897_v41  ;;  %v5899_v23 = vadd.f32 %v1229_v45, %v1081_v63  ;;  %v2304_v53 = vsub.f32 1.5, %v2303_v49  ;;  %v5918_v58 = vsel %vm5761_vm2, %v5897_v41, -1e+30 }
 0x159   :  { %vm1584_vm12 = vcmp.lt.s32.totalorder %v1582_v43, %v1583_v46  ;;  %774 = vmatmul.f32.gmra.mxu2 %v8953_v51  ;;  %v879_v19 = vpop.f32.mrf.mxu3  ;;  %v5902_v54 = vpop.f32.mrf.mxu0  ;;  %v2311_v29 = vmul.f32 %v5891_v44, %v5848_v32  ;;  %v1422_v13 = vsel %vm1407_vm4, %v5908_v3, -inf  ;;  %v2284_v63 = vsub.f32 1.5, %v2283_v26 }
 0x15a   :  { %8952 = vst [vmem:[#allocation17_spill] sm:$0xff] %v5899_v23  ;;  %v1585_v59 = vsel %vm1584_vm12, %v1582_v43, %v1583_v46  ;;  %v880_v2 = vadd.f32 %v879_v19, %v691_v10  ;;  %v5913_v45 = vadd.f32 %v5725_v8, %v5899_v23  ;;  %vm2286_vm6 = vweird.f32 %v5828_v14 }
 0x15b   :  { %v1586_v57 = vrot.slane %v1585_v59, 4  ;;  %v8957_v46 = vand.u32 4294901760, %v8953_v51  ;;  %vm2287_vm7 = vweird.f32 %v5844_v9  ;;  %v1421_v19 = vsel %vm1407_vm4, %v5918_v58, -inf }
 0x15c   :  { %8954 = vst [vmem:[#allocation47_spill] sm:$0xff] %v5913_v45  ;;  %v5922_v56 = vpop.f32.mrf.mxu2  ;;  %v1085_v37 = vadd.f32 %v1084_v4, %v880_v2  ;;  %v5924_v36 = vpop.f32.mrf.mxu1  ;;  %1151 = vmatmul.f32.gmra.mxu0 %v8955_v16  ;;  %v5933_v49 = vsel %vm5766_vm3, %v5913_v45, -1e+30  ;;  %v1423_v2 = vmax.f32 %v1421_v19, %v1422_v13  ;;  %v2312_v19 = vmul.f32 %v5891_v44, %v2311_v29  ;;  %vm5975_vm10 = vmor %vm2286_vm6, %vm2287_vm7 }
 0x15d   :  { %vm1587_vm15 = vcmp.lt.s32.totalorder %v1585_v59, %v1586_v57  ;;  %v1424_v26 = vsel %vm1407_vm4, %v5933_v49, -inf  ;;  %vm2250_vm11 = vcmp.gt.f32.partialorder %v5825_v61, 0.0  ;;  %vm2296_vm12 = vweird.f32 %v5823_v55  ;;  %v8967_v61 = vld [vmem:[#allocation40_spill] sm:$0xff] }
 0x15e   :  { %v1588_v43 = vsel %vm1587_vm15, %v1585_v59, %v1586_v57  ;;  %v5936_v4 = vadd.f32 %v1233_v6, %v1085_v37  ;;  %980 = vmatmul.f32.gmra.mxu3 %v8957_v46  ;;  %v2305_v59 = vmul.f32 %v5840_v39, %v2304_v53  ;;  %v534_v57 = vadd.f32 %v5529_v48, %v5524_v12 }
 0x15f   :  { %v1589_v10 = vrot.slane %v1588_v43, 2  ;;  %1300 = vmatmul.f32.gmra.mxu1 %v8955_v16  ;;  %v2293_v37 = vmul.f32 0.5, %v2292_v50  ;;  %v8961_v16 = vld [vmem:[#allocation37_spill] sm:$0xff]  ;;  %v2285_v46 = vmul.f32 %v5844_v9, %v2284_v63  ;;  %v5985_v63 = vpop.xlane.xlu1 %2165  ;;  %vm2248_vm14 = vcmp.gt.f32.partialorder %v5828_v14, 0.0 }
 0x160   :  { %8956 = vst [vmem:[#allocation22_spill] sm:$0xff] %v5936_v4  ;;  %v5949_v6 = vadd.f32 %v5725_v8, %v5936_v4  ;;  %v1425_v4 = vmax.f32 %v1423_v2, %v1424_v26  ;;  %v2309_v29 = vsel %vm5955_vm8, %v5840_v39, %v2305_v59  ;;  %4566 = vrsqrt.f32 %v5985_v63  ;;  %v5998_v59 = vpop.xlane.xlu0 %2171 }
 0x161   :  { %779 = vmatmul.f32.gmra.mxu2 %v8961_v16  ;;  %v885_v53 = vpop.f32.mrf.mxu3  ;;  %v5962_v13 = vpop.f32.mrf.mxu0  ;;  %vm1590_vm9 = vcmp.lt.s32.totalorder %v1588_v43, %v1589_v10  ;;  %v2289_v39 = vsel %vm5975_vm10, %v5844_v9, %v2285_v46  ;;  %v8712_v46 = vmov 0.0   ;;  %4568 = vrsqrt.f32 %v5998_v59 }
 0x162   :  { %8958 = vst [vmem:[#allocation20_spill] sm:$0xff] %v5949_v6  ;;  %v5969_v33 = vsel %vm5806_vm5, %v5949_v6, -1e+30  ;;  %v1591_v23 = vsel %vm1590_vm9, %v1588_v43, %v1589_v10  ;;  %v538_v43 = vadd.f32 %v5549_v31, %v5542_v24  ;;  %v2313_v24 = vmul.f32 0.5, %v2312_v19 }
 0x163   :  { %v1426_v48 = vsel %vm1407_vm4, %v5969_v33, -inf  ;;  %v1592_v50 = vrot.slane %v1591_v23, 1  ;;  %v2294_v6 = vsub.f32 1.5, %v2293_v37  ;;  %vm2297_vm8 = vweird.f32 %v5866_v60 }
 0x164   :  { %v1427_v10 = vmax.f32 %v1425_v4, %v1426_v48  ;;  %v700_v26 = vpop.f32.mrf.mxu2  ;;  %v5991_v2 = vpop.f32.mrf.mxu1  ;;  %1155 = vmatmul.f32.gmra.mxu0 %v8964_v28  ;;  %v8965_v4 = vand.u32 4294901760, %v8961_v16  ;;  %v6004_v48 = vsel %vm2250_vm11, %v2309_v29, 0.0  ;;  %v2314_v29 = vsub.f32 1.5, %v2313_v24  ;;  %vm6039_vm9 = vmor %vm2296_vm12, %vm2297_vm8 }
 0x165   :  { %vm1593_vm13 = vcmp.lt.s32.totalorder %v1591_v23, %v1592_v50  ;;  %8966 = vst [vmem:[#allocation25_spill] sm:$0xff] %v6004_v48  ;;  %v6034_v11 = vmul.f32 %v5866_v60, %v2294_v6  ;;  %vm2316_vm11 = vweird.f32 %v5848_v32  ;;  %vm2249_vm12 = vcmp.gt.f32.partialorder %v5823_v55, 0.0 }
 0x166   :  { %v1428_v31 = vrot.slane %v1427_v10, 4  ;;  %986 = vmatmul.f32.gmra.mxu3 %v8965_v4  ;;  %v1594_v51 = vsel %vm1593_vm13, %v1591_v23, %v1592_v50  ;;  %v6015_v23 = vsel %vm2248_vm14, %v2289_v39, 0.0  ;;  %v6028_v14 = vpop.eup %4566  ;;  %v701_v39 = vadd.f32 %v700_v26, %v538_v43 }
 0x167   :  { %vm1730_vm15 = vcmp.eq.s32.totalorder %v5728_v47, %v1594_v51  ;;  %vm1728_vm6 = vcmp.eq.s32.totalorder %v5708_v15, %v1594_v51  ;;  %vm1729_vm7 = vcmp.eq.s32.totalorder %v5715_v5, %v1594_v51  ;;  %1304 = vmatmul.f32.gmra.mxu1 %v8964_v28  ;;  %vm1731_vm10 = vcmp.eq.s32.totalorder %v5780_v18, %v1594_v51  ;;  %v6046_v6 = vpop.xlane.xlu1 %2174  ;;  %v6048_v26 = vpop.eup %4568 }
 0x168   :  { %v1429_v9 = vmax.f32 %v1427_v10, %v1428_v31  ;;  %v6011_v19 = vsel %vm1730_vm15, 1.0, %v8712_v46  ;;  %v4428_v12 = vsel %vm1728_vm6, 1.0, %v8712_v46  ;;  %v6023_v28 = vsel %vm1729_vm7, 1.0, %v8712_v46 }
 0x169   :  { %784 = vmatmul.f32.gmra.mxu2 %v8967_v61  ;;  %v891_v37 = vpop.f32.mrf.mxu3  ;;  %v2634_v16 = vmul.f32 %v6011_v19, %v6004_v48  ;;  %v6025_v50 = vpop.f32.mrf.mxu0  ;;  %v696_v31 = vadd.f32 %v5922_v56, %v534_v57  ;;  %v4476_v4 = vpack.i.bf16 %v6023_v28, %v4428_v12  ;;  %v2632_v45 = vmul.f32 %v4428_v12, %v6015_v23 }
 0x16a   :  { %v1430_v10 = vrot.slane %v1429_v9, 2  ;;  %v892_v41 = vadd.f32 %v891_v37, %v701_v39  ;;  %v2321_v57 = vmul.f32 %v6028_v14, %v5985_v63  ;;  %v6062_v51 = vmul.f32 %v5891_v44, %v2314_v29  ;;  %v8973_v39 = vld [vmem:[#allocation43_spill] sm:$0xff] }
 0x16b   :  { %2703 = vperm.xlu1 %4487, %v2634_v16   ;;  %v886_v56 = vadd.f32 %v885_v53, %v696_v31  ;;  %4477 = vperm.xlu0 %4475, %v4476_v4   ;;  %v8971_v53 = vand.u32 4294901760, %v8967_v61  ;;  %vm2317_vm13 = vweird.f32 %v5891_v44  ;;  %v8972_v16 = vmov 0.0  }
 0x16c   :  { %v1431_v46 = vmax.f32 %v1429_v9, %v1430_v10  ;;  %v705_v48 = vpop.f32.mrf.mxu2  ;;  %1159 = vmatmul.f32.gmra.mxu0 %v8968_v35  ;;  %2697 = vperm.xlu2 %4486, %v2632_v45   ;;  %v1245_v43 = vpop.f32.mrf.mxu1  ;;  %v542_v9 = vadd.f32 %v5560_v25, %v5556_v30  ;;  %v2299_v45 = vsel %vm6039_vm9, %v5866_v60, %v6034_v11  ;;  %v6067_v61 = vsel %vm1731_vm10, 1.0, %v8972_v16  ;;  %vm6094_vm8 = vmor %vm2316_vm11, %vm2317_vm13 }
 0x16d   :  { %v1093_v25 = vadd.f32 %v5962_v13, %v892_v41  ;;  %4570 = vrsqrt.f32 %v6046_v6  ;;  %v2322_v10 = vmul.f32 %v6028_v14, %v2321_v57  ;;  %v2341_v11 = vmul.f32 %v6048_v26, %v5998_v59 }
 0x16e   :  { %v1432_v37 = vrot.slane %v1431_v46, 1  ;;  %992 = vmatmul.f32.gmra.mxu3 %v8971_v53  ;;  %v706_v12 = vadd.f32 %v705_v48, %v542_v9  ;;  %v4481_v48 = vpack.i.bf16 %v6067_v61, %v6011_v19  ;;  %v546_v19 = vadd.f32 %v5574_v38, %v5569_v42 }
 0x16f   :  { %1308 = vmatmul.f32.gmra.mxu1 %v8968_v35  ;;  %v1089_v35 = vadd.f32 %v5902_v54, %v886_v56  ;;  %v8979_v53 = vand.u32 4294901760, %v8973_v39  ;;  %vm2251_vm10 = vcmp.gt.f32.partialorder %v5848_v32, 0.0  ;;  %v6114_v38 = vsel %vm2249_vm12, %v2299_v45, 0.0 }
 0x170   :  { %v1433_v30 = vmax.f32 %v1431_v46, %v1432_v37 }
 0x171   :  { %789 = vmatmul.f32.gmra.mxu2 %v8973_v39  ;;  %v897_v60 = vpop.f32.mrf.mxu3  ;;  %v1100_v46 = vpop.f32.mrf.mxu0  ;;  %v6106_v37 = vadd.f32 %v5924_v36, %v1089_v35  ;;  %v2319_v36 = vsel %vm6094_vm8, %v5891_v44, %v6062_v51 }
 0x172   :  { %vm1516_vm14 = vcmp.ge.f32.partialorder %v5918_v58, %v1433_v30  ;;  %vm1517_vm15 = vcmp.ge.f32.partialorder %v5908_v3, %v1433_v30  ;;  %vm1518_vm6 = vcmp.ge.f32.partialorder %v5933_v49, %v1433_v30  ;;  %vm1519_vm7 = vcmp.ge.f32.partialorder %v5969_v33, %v1433_v30  ;;  %v8975_v33 = vld [vmem:[#allocation41_spill] sm:$0xff]  ;;  %v6133_v51 = vpop.xlane.xlu2 %2168 }
 0x173   :  { %v1548_v41 = vsel %vm1516_vm14, %v5708_v15, 32  ;;  %v1549_v54 = vsel %vm1517_vm15, %v5715_v5, 32  ;;  %v1550_v13 = vsel %vm1518_vm6, %v5728_v47, 32  ;;  %v6087_v3 = vadd.f32 %v5991_v2, %v1093_v25  ;;  %4482 = vperm.xlu0 %4475, %v4481_v48   ;;  %v6102_v56 = vpop.eup %4570  ;;  %8978 = vst [vmem:[#allocation28_spill] sm:$0xff] %v6106_v37 }
 0x174   :  { %v1595_v29 = vsel %vm1407_vm4, %v1548_v41, 2147483647  ;;  %v1596_v58 = vsel %vm1407_vm4, %v1549_v54, 2147483647  ;;  %v898_v49 = vadd.f32 %v897_v60, %v706_v12  ;;  %v710_v31 = vpop.f32.mrf.mxu2  ;;  %1163 = vmatmul.f32.gmra.mxu0 %v8975_v33  ;;  %v1551_v24 = vsel %vm1519_vm7, %v5780_v18, 32  ;;  %v1249_v30 = vpop.f32.mrf.mxu1  ;;  %v8982_v60 = vld [vmem:[#allocation46_spill] sm:$0xff] }
 0x175   :  { %8974 = vst [vmem:[#allocation23_spill] sm:$0xff] %v6087_v3  ;;  %vm1597_vm9 = vcmp.lt.s32.totalorder %v1595_v29, %v1596_v58  ;;  %v2342_v2 = vmul.f32 %v6048_v26, %v2341_v11  ;;  %v1599_v9 = vsel %vm1407_vm4, %v1550_v13, 2147483647  ;;  %v1602_v35 = vsel %vm1407_vm4, %v1551_v24, 2147483647 }
 0x176   :  { %v1598_v57 = vsel %vm1597_vm9, %v1595_v29, %v1596_v58  ;;  %998 = vmatmul.f32.gmra.mxu3 %v8979_v53  ;;  %v1097_v42 = vadd.f32 %v6025_v50, %v898_v49  ;;  %v2323_v12 = vmul.f32 0.5, %v2322_v10  ;;  %v6124_v39 = vadd.f32 %v5725_v8, %v6087_v3 }
 0x177   :  { %vm1600_vm11 = vcmp.lt.s32.totalorder %v1598_v57, %v1599_v9  ;;  %1312 = vmatmul.f32.gmra.mxu1 %v8975_v33  ;;  %v711_v55 = vadd.f32 %v710_v31, %v546_v19  ;;  %v2343_v50 = vmul.f32 0.5, %v2342_v2  ;;  %v6131_v44 = vadd.f32 %v5725_v8, %v6106_v37  ;;  %v8986_v31 = vld [vmem:[#allocation44_spill] sm:$0xff] }
 0x178   :  { %v1601_v25 = vsel %vm1600_vm11, %v1598_v57, %v1599_v9  ;;  %8980 = vst [vmem:[#allocation26_spill] sm:$0xff] %v6124_v39  ;;  %v6126_v45 = vadd.f32 %v1245_v43, %v1097_v42  ;;  %v2633_v43 = vmul.f32 %v6023_v28, %v6114_v38  ;;  %v6144_v48 = vsel %vm5745_vm1, %v6124_v39, -1e+30  ;;  %v9037_v39 = vld [vmem:[#allocation59_spill] sm:$0xff] }
 0x179   :  { %vm1603_vm13 = vcmp.lt.s32.totalorder %v1601_v25, %v1602_v35  ;;  %794 = vmatmul.f32.gmra.mxu2 %v8982_v60  ;;  %v903_v11 = vpop.f32.mrf.mxu3  ;;  %8983 = vst [vmem:[#allocation29_spill] sm:$0xff] %v6131_v44  ;;  %v2351_v29 = vmul.f32 %v6102_v56, %v6046_v6  ;;  %v6152_v49 = vsel %vm2251_vm10, %v2319_v36, 0.0  ;;  %v2324_v33 = vsub.f32 1.5, %v2323_v12  ;;  %v6156_v28 = vpop.f32.mrf.mxu0 }
 0x17a   :  { %8981 = vst [vmem:[#allocation31_spill] sm:$0xff] %v6126_v45  ;;  %v1604_v41 = vsel %vm1603_vm13, %v1601_v25, %v1602_v35  ;;  %v6137_v54 = vadd.f32 %v5725_v8, %v6126_v45  ;;  %v904_v13 = vadd.f32 %v903_v11, %v711_v55  ;;  %v2344_v4 = vsub.f32 1.5, %v2343_v50  ;;  %v8989_v35 = vld [vmem:[#allocation48_spill] sm:$0xff] }
 0x17b   :  { %v1605_v10 = vrot.slane %v1604_v41, 4  ;;  %8985 = vst [vmem:[#allocation32_spill] sm:$0xff] %v6152_v49  ;;  %4572 = vrsqrt.f32 %v6133_v51  ;;  %2700 = vperm.xlu0 %4475, %v2633_v43   ;;  %v6161_v24 = vsel %vm5761_vm2, %v6131_v44, -1e+30  ;;  %v8987_v57 = vand.u32 4294901760, %v8982_v60 }
 0x17c   :  { %8984 = vst [vmem:[#allocation34_spill] sm:$0xff] %v6137_v54  ;;  %v6148_v58 = vpop.f32.mrf.mxu2  ;;  %1167 = vmatmul.f32.gmra.mxu0 %v8986_v31  ;;  %v6166_v32 = vsel %vm5766_vm3, %v6137_v54, -1e+30  ;;  %v1101_v2 = vadd.f32 %v1100_v46, %v904_v13  ;;  %v1435_v53 = vsel %vm1407_vm4, %v6144_v48, -inf  ;;  %vm2346_vm14 = vweird.f32 %v5998_v59  ;;  %v6187_v55 = vpop.f32.mrf.mxu1 }
 0x17d   :  { %vm1606_vm12 = vcmp.lt.s32.totalorder %v1604_v41, %v1605_v10  ;;  %vm2347_vm15 = vweird.f32 %v6048_v26  ;;  %vm2326_vm6 = vweird.f32 %v5985_v63  ;;  %v2352_v42 = vmul.f32 %v6102_v56, %v2351_v29 }
 0x17e   :  { %v1607_v19 = vsel %vm1606_vm12, %v1604_v41, %v1605_v10  ;;  %1004 = vmatmul.f32.gmra.mxu3 %v8987_v57  ;;  %v6177_v36 = vadd.f32 %v1249_v30, %v1101_v2  ;;  %vm2327_vm7 = vweird.f32 %v6028_v14  ;;  %v1434_v46 = vsel %vm1407_vm4, %v6161_v24, -inf  ;;  %vm6198_vm9 = vmor %vm2346_vm14, %vm2347_vm15 }
 0x17f   :  { %v1608_v9 = vrot.slane %v1607_v19, 2  ;;  %1316 = vmatmul.f32.gmra.mxu1 %v8986_v31  ;;  %v1437_v25 = vsel %vm1407_vm4, %v6166_v32, -inf  ;;  %v2345_v50 = vmul.f32 %v6048_v26, %v2344_v4  ;;  %v1436_v60 = vmax.f32 %v1434_v46, %v1435_v53  ;;  %vm6211_vm10 = vmor %vm2326_vm6, %vm2327_vm7 }
 0x180   :  { %8988 = vst [vmem:[#allocation37_spill] sm:$0xff] %v6177_v36  ;;  %v6192_v30 = vadd.f32 %v5725_v8, %v6177_v36  ;;  %v2325_v10 = vmul.f32 %v6028_v14, %v2324_v33  ;;  %v2635_v43 = vmul.f32 %v6067_v61, %v6152_v49  ;;  %v2353_v4 = vmul.f32 0.5, %v2352_v42 }
 0x181   :  { %799 = vmatmul.f32.gmra.mxu2 %v8989_v35  ;;  %v6185_v12 = vpop.f32.mrf.mxu3  ;;  %vm1609_vm8 = vcmp.lt.s32.totalorder %v1607_v19, %v1608_v9  ;;  %v6203_v13 = vpop.eup %4572  ;;  %vm2254_vm13 = vcmp.gt.f32.partialorder %v5998_v59, 0.0  ;;  %v2349_v57 = vsel %vm6198_vm9, %v6048_v26, %v2345_v50  ;;  %v8995_v53 = vand.u32 4294901760, %v8989_v35 }
 0x182   :  { %8990 = vst [vmem:[#allocation35_spill] sm:$0xff] %v6192_v30  ;;  %v1610_v11 = vsel %vm1609_vm8, %v1607_v19, %v1608_v9  ;;  %v1438_v19 = vmax.f32 %v1436_v60, %v1437_v25  ;;  %v6218_v33 = vsel %vm5806_vm5, %v6192_v30, -1e+30  ;;  %vm2252_vm12 = vcmp.gt.f32.partialorder %v5985_v63, 0.0  ;;  %v1108_v25 = vpop.f32.mrf.mxu0 }
 0x183   :  { %v1611_v29 = vrot.slane %v1610_v11, 1  ;;  %v1439_v61 = vsel %vm1407_vm4, %v6218_v33, -inf  ;;  %2706 = vperm.xlu0 %4475, %v2635_v43   ;;  %v2329_v46 = vsel %vm6211_vm10, %v6028_v14, %v2325_v10  ;;  %v554_v59 = vadd.f32 %v5611_v21, %v5605_v62 }
 0x184   :  { %v720_v2 = vpop.f32.mrf.mxu2  ;;  %1171 = vmatmul.f32.gmra.mxu0 %v5332_v27  ;;  %v1440_v9 = vmax.f32 %v1438_v19, %v1439_v61  ;;  %v2354_v26 = vsub.f32 1.5, %v2353_v4  ;;  %v6239_v50 = vsel %vm2254_vm13, %v2349_v57, 0.0  ;;  %v2331_v62 = vmul.f32 %v6203_v13, %v6133_v51  ;;  %v1257_v31 = vpop.f32.mrf.mxu1 }
 0x185   :  { %vm1612_vm11 = vcmp.lt.s32.totalorder %v1610_v11, %v1611_v29  ;;  %8996 = vst [vmem:[#allocation40_spill] sm:$0xff] %v6239_v50  ;;  %v550_v10 = vadd.f32 %v5591_v40, %v5585_v20  ;;  %vm2356_vm7 = vweird.f32 %v6046_v6  ;;  %v721_v43 = vadd.f32 %v720_v2, %v554_v59  ;;  %v8998_v2 = vld [vmem:[#allocation67_spill] sm:$0xff] }
 0x186   :  { %1010 = vmatmul.f32.gmra.mxu3 %v8995_v53  ;;  %v1613_v42 = vsel %vm1612_vm11, %v1610_v11, %v1611_v29  ;;  %v1441_v35 = vrot.slane %v1440_v9, 4  ;;  %v2355_v61 = vmul.f32 %v6102_v56, %v2354_v26  ;;  %v2332_v20 = vmul.f32 %v6203_v13, %v2331_v62  ;;  %v9000_v62 = vld [vmem:[#allocation52_spill] sm:$0xff] }
 0x187   :  { %vm1732_vm14 = vcmp.eq.s32.totalorder %v5708_v15, %v1613_v42  ;;  %vm1733_vm15 = vcmp.eq.s32.totalorder %v5715_v5, %v1613_v42  ;;  %vm1734_vm6 = vcmp.eq.s32.totalorder %v5728_v47, %v1613_v42  ;;  %1320 = vmatmul.f32.gmra.mxu1 %v5332_v27  ;;  %v6249_v27 = vsel %vm2252_vm12, %v2329_v46, 0.0 }
 0x188   :  { %v4432_v14 = vsel %vm1732_vm14, 1.0, %v8972_v16  ;;  %v6244_v11 = vsel %vm1733_vm15, 1.0, %v8972_v16  ;;  %v4434_v41 = vsel %vm1734_vm6, 1.0, %v8972_v16  ;;  %8997 = vst [vmem:[#allocation38_spill] sm:$0xff] %v6249_v27  ;;  %v1442_v21 = vmax.f32 %v1440_v9, %v1441_v35 }
 0x189   :  { %804 = vmatmul.f32.gmra.mxu2 %v5375_v0  ;;  %v915_v60 = vpop.f32.mrf.mxu3  ;;  %v4488_v29 = vpack.i.bf16 %v6244_v11, %v4432_v14  ;;  %v2638_v19 = vmul.f32 %v4434_v41, %v6239_v50  ;;  %v2636_v63 = vmul.f32 %v4432_v14, %v6249_v27  ;;  %v716_v57 = vadd.f32 %v6148_v58, %v550_v10 }
 0x18a   :  { %v1443_v4 = vrot.slane %v1442_v21, 2  ;;  %v916_v9 = vadd.f32 %v915_v60, %v721_v43  ;;  %vm1735_vm8 = vcmp.eq.s32.totalorder %v5780_v18, %v1613_v42  ;;  %vm2255_vm9 = vcmp.gt.f32.partialorder %v6046_v6, 0.0 }
 0x18b   :  { %4489 = vperm.xlu1 %4487, %v4488_v29   ;;  %2715 = vperm.xlu0 %4475, %v2638_v19   ;;  %vm2357_vm10 = vweird.f32 %v6102_v56  ;;  %v558_v46 = vadd.f32 %v8998_v2, %v5625_v17  ;;  %v910_v59 = vadd.f32 %v6185_v12, %v716_v57  ;;  %v8999_v58 = vand.u32 4294901760, %v5375_v0 }
 0x18c   :  { %1175 = vmatmul.f32.gmra.mxu0 %v5360_v22  ;;  %v725_v53 = vpop.f32.mrf.mxu2  ;;  %v1444_v40 = vmax.f32 %v1442_v21, %v1443_v4  ;;  %2709 = vperm.xlu2 %4486, %v2636_v63   ;;  %vm2358_vm11 = vmor %vm2356_vm7, %vm2357_vm10  ;;  %v4435_v26 = vsel %vm1735_vm8, 1.0, %v8972_v16  ;;  %v1109_v14 = vadd.f32 %v1108_v25, %v916_v9  ;;  %v1112_v21 = vpop.f32.mrf.mxu0  ;;  %v2333_v0 = vmul.f32 0.5, %v2332_v20  ;;  %v9005_v63 = vld [vmem:[#allocation15_spill] sm:$0xff] }
 0x18d   :  { %v2359_v35 = vsel %vm2358_vm11, %v6102_v56, %v2355_v61  ;;  %v726_v60 = vadd.f32 %v725_v53, %v558_v46  ;;  %v1105_v6 = vadd.f32 %v6156_v28, %v910_v59  ;;  %v4493_v29 = vpack.i.bf16 %v4435_v26, %v4434_v41  ;;  %v9002_v56 = vld [vmem:[#allocation51_spill] sm:$0xff]  ;;  %v1261_v41 = vpop.f32.mrf.mxu1  ;;  %v6300_v20 = vpop.xlane.xlu2 %2177 }
 0x18e   :  { %1016 = vmatmul.f32.gmra.mxu3 %v8999_v58  ;;  %v1445_v42 = vrot.slane %v1444_v40, 1  ;;  %v6277_v12 = vsel %vm2255_vm9, %v2359_v35, 0.0  ;;  %v6289_v19 = vadd.f32 %v1257_v31, %v1109_v14  ;;  %v9006_v9 = vand.u32 4294901760, %v9000_v62 }
 0x18f   :  { %1324 = vmatmul.f32.gmra.mxu1 %v5360_v22  ;;  %9001 = vst [vmem:[#allocation43_spill] sm:$0xff] %v6277_v12  ;;  %v2639_v22 = vmul.f32 %v4435_v26, %v6277_v12  ;;  %v2334_v46 = vsub.f32 1.5, %v2333_v0  ;;  %4574 = vrsqrt.f32 %v6300_v20  ;;  %vm2336_vm9 = vweird.f32 %v6133_v51 }
 0x190   :  { %v1446_v10 = vmax.f32 %v1444_v40, %v1445_v42  ;;  %9003 = vst [vmem:[#allocation41_spill] sm:$0xff] %v6289_v19  ;;  %v6303_v40 = vadd.f32 %v6187_v55, %v1105_v6  ;;  %v6308_v59 = vadd.f32 %v5725_v8, %v6289_v19  ;;  %vm2253_vm10 = vcmp.gt.f32.partialorder %v6133_v51, 0.0 }
 0x191   :  { %809 = vmatmul.f32.gmra.mxu2 %v9000_v62  ;;  %v921_v17 = vpop.f32.mrf.mxu3  ;;  %vm2337_vm11 = vweird.f32 %v6203_v13 }
 0x192   :  { %v922_v43 = vadd.f32 %v921_v17, %v726_v60  ;;  %vm1520_vm13 = vcmp.ge.f32.partialorder %v6161_v24, %v1446_v10  ;;  %vm1521_vm12 = vcmp.ge.f32.partialorder %v6144_v48, %v1446_v10  ;;  %vm1522_vm14 = vcmp.ge.f32.partialorder %v6166_v32, %v1446_v10  ;;  %v9004_v32 = vld [vmem:[#allocation50_spill] sm:$0xff]  ;;  %9007 = vst [vmem:[#allocation46_spill] sm:$0xff] %v6303_v40  ;;  %v6311_v60 = vpop.xlane.xlu0 %2180 }
 0x193   :  { %vm1523_vm15 = vcmp.ge.f32.partialorder %v6218_v33, %v1446_v10  ;;  %v1552_v25 = vsel %vm1520_vm13, %v5708_v15, 32  ;;  %v1553_v4 = vsel %vm1521_vm12, %v5715_v5, 32  ;;  %v1554_v28 = vsel %vm1522_vm14, %v5728_v47, 32  ;;  %4494 = vperm.xlu1 %4487, %v4493_v29   ;;  %9008 = vst [vmem:[#allocation44_spill] sm:$0xff] %v6308_v59  ;;  %vm2338_vm13 = vmor %vm2336_vm9, %vm2337_vm11 }
 0x194   :  { %1179 = vmatmul.f32.gmra.mxu0 %v9002_v56  ;;  %v1614_v24 = vsel %vm1407_vm4, %v1552_v25, 2147483647  ;;  %v1615_v48 = vsel %vm1407_vm4, %v1553_v4, 2147483647  ;;  %2718 = vperm.xlu2 %4486, %v2639_v22   ;;  %v562_v33 = vadd.f32 %v9005_v63, %v9004_v32  ;;  %v1555_v61 = vsel %vm1523_vm15, %v5780_v18, 32  ;;  %v730_v57 = vpop.f32.mrf.mxu2  ;;  %v1116_v55 = vpop.f32.mrf.mxu0 }
 0x195   :  { %vm1616_vm6 = vcmp.lt.s32.totalorder %v1614_v24, %v1615_v48  ;;  %v1618_v53 = vsel %vm1407_vm4, %v1554_v28, 2147483647  ;;  %v1113_v2 = vadd.f32 %v1112_v21, %v922_v43  ;;  %v1621_v26 = vsel %vm1407_vm4, %v1555_v61, 2147483647  ;;  %v6331_v22 = vpop.eup %4574  ;;  %v6356_v51 = vpop.xlane.xlu2 %2186 }
 0x196   :  { %1022 = vmatmul.f32.gmra.mxu3 %v9006_v9  ;;  %v1617_v31 = vsel %vm1616_vm6, %v1614_v24, %v1615_v48  ;;  %v731_v35 = vadd.f32 %v730_v57, %v562_v33  ;;  %v6317_v17 = vadd.f32 %v5725_v8, %v6303_v40  ;;  %4576 = vrsqrt.f32 %v6311_v60 }
 0x197   :  { %1328 = vmatmul.f32.gmra.mxu1 %v9002_v56  ;;  %vm1619_vm7 = vcmp.lt.s32.totalorder %v1617_v31, %v1618_v53  ;;  %v6313_v14 = vadd.f32 %v1261_v41, %v1113_v2  ;;  %v6328_v6 = vsel %vm5745_vm1, %v6308_v59, -1e+30  ;;  %v2335_v29 = vmul.f32 %v6203_v13, %v2334_v46  ;;  %v1265_v56 = vpop.f32.mrf.mxu1 }
 0x198   :  { %v1620_v42 = vsel %vm1619_vm7, %v1617_v31, %v1618_v53  ;;  %9010 = vst [vmem:[#allocation67_spill] sm:$0xff] %v6317_v17  ;;  %v6336_v25 = vsel %vm5761_vm2, %v6317_v17, -1e+30  ;;  %v1448_v28 = vsel %vm1407_vm4, %v6328_v6, -inf  ;;  %v2361_v41 = vmul.f32 %v6331_v22, %v6300_v20 }
 0x199   :  { %v927_v58 = vpop.f32.mrf.mxu3  ;;  %9009 = vst [vmem:[#allocation48_spill] sm:$0xff] %v6313_v14  ;;  %vm1622_vm8 = vcmp.lt.s32.totalorder %v1620_v42, %v1621_v26  ;;  %v6321_v21 = vadd.f32 %v5725_v8, %v6313_v14  ;;  %v2339_v24 = vsel %vm2338_vm13, %v6203_v13, %v2335_v29  ;;  %v1447_v63 = vsel %vm1407_vm4, %v6336_v25, -inf }
 0x19a   :  { %v1623_v62 = vsel %vm1622_vm8, %v1620_v42, %v1621_v26  ;;  %v928_v0 = vadd.f32 %v927_v58, %v731_v35  ;;  %v6360_v61 = vsel %vm2253_vm10, %v2339_v24, 0.0  ;;  %4578 = vrsqrt.f32 %v6356_v51 }
 0x19b   :  { %9011 = vst [vmem:[#allocation52_spill] sm:$0xff] %v6321_v21  ;;  %v1624_v10 = vrot.slane %v1623_v62, 4  ;;  %v6341_v4 = vsel %vm5766_vm3, %v6321_v21, -1e+30  ;;  %v1449_v57 = vmax.f32 %v1447_v63, %v1448_v28  ;;  %v2637_v13 = vmul.f32 %v6244_v11, %v6360_v61 }
 0x19c   :  { %v1117_v43 = vadd.f32 %v1116_v55, %v928_v0  ;;  %v6352_v32 = vpop.eup %4576  ;;  %v1450_v33 = vsel %vm1407_vm4, %v6341_v4, -inf  ;;  %9013 = vst [vmem:[#allocation50_spill] sm:$0xff] %v6360_v61  ;;  %v2362_v53 = vmul.f32 %v6331_v22, %v2361_v41  ;;  %v6377_v42 = vpop.f32.mrf.mxu2  ;;  %vm2366_vm15 = vweird.f32 %v6300_v20 }
 0x19d   :  { %vm1625_vm12 = vcmp.lt.s32.totalorder %v1623_v62, %v1624_v10  ;;  %v1451_v2 = vmax.f32 %v1449_v57, %v1450_v33  ;;  %2712 = vperm.xlu1 %4487, %v2637_v13   ;;  %v2371_v58 = vmul.f32 %v6352_v32, %v6311_v60  ;;  %v6386_v29 = vpop.f32.mrf.mxu0  ;;  %v6390_v33 = vpop.xlane.xlu1 %2183  ;;  %vm2367_vm7 = vweird.f32 %v6331_v22 }
 0x19e   :  { %v6350_v48 = vadd.f32 %v1265_v56, %v1117_v43  ;;  %v1626_v31 = vsel %vm1625_vm12, %v1623_v62, %v1624_v10  ;;  %v2363_v0 = vmul.f32 0.5, %v2362_v53  ;;  %4580 = vrsqrt.f32 %v6390_v33  ;;  %vm6401_vm8 = vmor %vm2366_vm15, %vm2367_vm7 }
 0x19f   :  { %v1627_v26 = vrot.slane %v1626_v31, 2  ;;  %v2372_v43 = vmul.f32 %v6352_v32, %v2371_v58  ;;  %v6392_v57 = vpop.f32.mrf.mxu1  ;;  %vm2376_vm9 = vweird.f32 %v6311_v60  ;;  %vm2256_vm10 = vcmp.gt.f32.partialorder %v6300_v20, 0.0 }
 0x1a0   :  { %9012 = vst [vmem:[#allocation51_spill] sm:$0xff] %v6350_v48  ;;  %v6367_v9 = vadd.f32 %v5725_v8, %v6350_v48  ;;  %v6383_v62 = vpop.eup %4578  ;;  %v2364_v41 = vsub.f32 1.5, %v2363_v0  ;;  %vm2377_vm15 = vweird.f32 %v6352_v32  ;;  %vm2257_vm7 = vcmp.gt.f32.partialorder %v6311_v60, 0.0 }
 0x1a1   :  { %v6381_v55 = vpop.f32.mrf.mxu3  ;;  %vm1628_vm14 = vcmp.lt.s32.totalorder %v1626_v31, %v1627_v26  ;;  %v2391_v28 = vmul.f32 %v6383_v62, %v6356_v51  ;;  %v2373_v63 = vmul.f32 0.5, %v2372_v43 }
 0x1a2   :  { %9014 = vst [vmem:[#allocation15_spill] sm:$0xff] %v6367_v9  ;;  %v6373_v46 = vsel %vm5806_vm5, %v6367_v9, -1e+30  ;;  %v1629_v13 = vsel %vm1628_vm14, %v1626_v31, %v1627_v26 }
 0x1a3   :  { %v1452_v11 = vsel %vm1407_vm4, %v6373_v46, -inf  ;;  %v2392_v53 = vmul.f32 %v6383_v62, %v2391_v28  ;;  %v2374_v0 = vsub.f32 1.5, %v2373_v63 }
 0x1a4   :  { %v1453_v35 = vmax.f32 %v1451_v2, %v1452_v11  ;;  %v740_v58 = vpop.f32.mrf.mxu2  ;;  %v1630_v11 = vrot.slane %v1629_v13, 1 }
 0x1a5   :  { %v2393_v26 = vmul.f32 0.5, %v2392_v53  ;;  %v2375_v63 = vmul.f32 %v6352_v32, %v2374_v0 }
 0x1a6   :  { %v1454_v10 = vrot.slane %v1453_v35, 4  ;;  %vm1631_vm6 = vcmp.lt.s32.totalorder %v1629_v13, %v1630_v11 }
 0x1a7   :  { %v6399_v36 = vsel %vm1631_vm6, %v1629_v13, %v1630_v11  ;;  %v6419_v13 = vpop.eup %4580  ;;  %v1273_v11 = vpop.f32.mrf.mxu1 }
 0x1a8   :  { %v1455_v56 = vmax.f32 %v1453_v35, %v1454_v10  ;;  %v2365_v10 = vmul.f32 %v6331_v22, %v2364_v41  ;;  %vm1736_vm12 = vcmp.eq.s32.totalorder %v5708_v15, %v6399_v36  ;;  %vm1737_vm14 = vcmp.eq.s32.totalorder %v5715_v5, %v6399_v36 }
 0x1a9   :  { %v939_v48 = vpop.f32.mrf.mxu3 }
 0x1aa   :  { %v1456_v24 = vrot.slane %v1455_v56, 2  ;;  %v2369_v28 = vsel %vm6401_vm8, %v6331_v22, %v2365_v10  ;;  %v9017_v22 = vld [vmem:[#allocation54_spill] sm:$0xff]  ;;  %vm2378_vm8 = vmor %vm2376_vm9, %vm2377_vm15  ;;  %vm2396_vm9 = vweird.f32 %v6356_v51  ;;  %vm2397_vm15 = vweird.f32 %v6383_v62 }
 0x1ab   :  { %v741_v53 = vadd.f32 %v740_v58, %v9017_v22  ;;  %v6435_v10 = vsel %vm2256_vm10, %v2369_v28, 0.0  ;;  %v2381_v58 = vmul.f32 %v6419_v13, %v6390_v33 }
 0x1ac   :  { %v1457_v2 = vmax.f32 %v1455_v56, %v1456_v24  ;;  %v1124_v56 = vpop.f32.mrf.mxu0  ;;  %9018 = vst [vmem:[#allocation54_spill] sm:$0xff] %v6435_v10  ;;  %v745_v31 = vpop.f32.mrf.mxu2 }
 0x1ad   :  { %v940_v0 = vadd.f32 %v939_v48, %v741_v53  ;;  %v9021_v53 = vld [vmem:[#allocation55_spill] sm:$0xff] }
 0x1ae   :  { %v1458_v35 = vrot.slane %v1457_v2, 1  ;;  %v746_v40 = vadd.f32 %v745_v31, %v9021_v53 }
 0x1b0   :  { %v1459_v43 = vmax.f32 %v1457_v2, %v1458_v35  ;;  %v2394_v2 = vsub.f32 1.5, %v2393_v26  ;;  %v4436_v35 = vsel %vm1736_vm12, 1.0, %v8972_v16  ;;  %v2379_v26 = vsel %vm2378_vm8, %v6352_v32, %v2375_v63 }
 0x1b1   :  { %v2640_v60 = vmul.f32 %v4436_v35, %v6435_v10  ;;  %v6445_v45 = vsel %vm2257_vm7, %v2379_v26, 0.0  ;;  %v945_v19 = vpop.f32.mrf.mxu3  ;;  %v2382_v32 = vmul.f32 %v6419_v13, %v2381_v58  ;;  %v1125_v63 = vadd.f32 %v1124_v56, %v940_v0  ;;  %v1277_v56 = vpop.f32.mrf.mxu1 }
 0x1b2   :  { %vm1524_vm11 = vcmp.ge.f32.partialorder %v6336_v25, %v1459_v43  ;;  %vm1525_vm13 = vcmp.ge.f32.partialorder %v6328_v6, %v1459_v43  ;;  %vm1526_vm6 = vcmp.ge.f32.partialorder %v6341_v4, %v1459_v43  ;;  %v4437_v4 = vsel %vm1737_vm14, 1.0, %v8972_v16  ;;  %v6477_v26 = vpop.xlane.xlu0 %2189 }
 0x1b3   :  { %v1556_v41 = vsel %vm1524_vm11, %v5708_v15, 32  ;;  %v1557_v24 = vsel %vm1525_vm13, %v5715_v5, 32  ;;  %v1558_v22 = vsel %vm1526_vm6, %v5728_v47, 32  ;;  %v4498_v20 = vpack.i.bf16 %v4437_v4, %v4436_v35  ;;  %2721 = vperm.xlu1 %4487, %v2640_v60   ;;  %vm2398_vm6 = vmor %vm2396_vm9, %vm2397_vm15 }
 0x1b4   :  { %v1633_v6 = vsel %vm1407_vm4, %v1556_v41, 2147483647  ;;  %v1634_v25 = vsel %vm1407_vm4, %v1557_v24, 2147483647  ;;  %v9019_v41 = vld [vmem:[#allocation53_spill] sm:$0xff]  ;;  %v2641_v14 = vmul.f32 %v4437_v4, %v6445_v45  ;;  %vm1527_vm10 = vcmp.ge.f32.partialorder %v6373_v46, %v1459_v43  ;;  %v750_v0 = vpop.f32.mrf.mxu2 }
 0x1b5   :  { %vm1635_vm11 = vcmp.lt.s32.totalorder %v1633_v6, %v1634_v25  ;;  %v736_v24 = vadd.f32 %v6377_v42, %v9019_v41  ;;  %9020 = vst [vmem:[#allocation53_spill] sm:$0xff] %v6445_v45  ;;  %4499 = vperm.xlu2 %4486, %v4498_v20   ;;  %v1637_v42 = vsel %vm1407_vm4, %v1558_v22, 2147483647  ;;  %vm1739_vm12 = vcmp.eq.s32.totalorder %v5780_v18, %v6399_v36  ;;  %v6479_v41 = vpop.xlane.xlu2 %2195  ;;  %v9026_v22 = vld [vmem:[#allocation56_spill] sm:$0xff] }
 0x1b6   :  { %v1636_v28 = vsel %vm1635_vm11, %v1633_v6, %v1634_v25  ;;  %2724 = vperm.xlu0 %4475, %v2641_v14   ;;  %v1128_v6 = vpop.f32.mrf.mxu0  ;;  %v946_v25 = vadd.f32 %v945_v19, %v746_v40  ;;  %v2395_v35 = vmul.f32 %v6383_v62, %v2394_v2  ;;  %vm2259_vm14 = vcmp.gt.f32.partialorder %v6356_v51, 0.0 }
 0x1b7   :  { %v934_v48 = vadd.f32 %v6381_v55, %v736_v24  ;;  %vm1638_vm13 = vcmp.lt.s32.totalorder %v1636_v28, %v1637_v42  ;;  %v1559_v55 = vsel %vm1527_vm10, %v5780_v18, 32  ;;  %v4439_v43 = vsel %vm1739_vm12, 1.0, %v8972_v16 }
 0x1b8   :  { %v2383_v14 = vmul.f32 0.5, %v2382_v32  ;;  %v1639_v19 = vsel %vm1638_vm13, %v1636_v28, %v1637_v42  ;;  %v2399_v40 = vsel %vm2398_vm6, %v6383_v62, %v2395_v35  ;;  %vm1738_vm7 = vcmp.eq.s32.totalorder %v5728_v47, %v6399_v36 }
 0x1b9   :  { %v1121_v46 = vadd.f32 %v6386_v29, %v934_v48  ;;  %v6467_v2 = vadd.f32 %v1273_v11, %v1125_v63  ;;  %v1129_v4 = vadd.f32 %v1128_v6, %v946_v25  ;;  %v6469_v58 = vsel %vm2259_vm14, %v2399_v40, 0.0  ;;  %v951_v11 = vpop.f32.mrf.mxu3  ;;  %v6490_v48 = vpop.xlane.xlu1 %2192 }
 0x1ba   :  { %9023 = vst [vmem:[#allocation68_spill] sm:$0xff] %v6469_v58  ;;  %v1640_v29 = vsel %vm1407_vm4, %v1559_v55, 2147483647  ;;  %v2643_v31 = vmul.f32 %v4439_v43, %v6469_v58  ;;  %v4438_v62 = vsel %vm1738_vm7, 1.0, %v8972_v16  ;;  %v2384_v60 = vsub.f32 1.5, %v2383_v14 }
 0x1bb   :  { %9022 = vst [vmem:[#allocation55_spill] sm:$0xff] %v6467_v2  ;;  %vm1641_vm8 = vcmp.lt.s32.totalorder %v1639_v19, %v1640_v29  ;;  %v6474_v51 = vadd.f32 %v6392_v57, %v1121_v46  ;;  %v4503_v36 = vpack.i.bf16 %v4439_v43, %v4438_v62  ;;  %v6483_v24 = vadd.f32 %v5725_v8, %v6467_v2  ;;  %v1281_v43 = vpop.f32.mrf.mxu1 }
 0x1bc   :  { %2730 = vperm.xlu1 %4487, %v2643_v31   ;;  %v751_v20 = vadd.f32 %v750_v0, %v9026_v22  ;;  %v6486_v28 = vadd.f32 %v1277_v56, %v1129_v4  ;;  %4582 = vrsqrt.f32 %v6479_v41  ;;  %vm2386_vm11 = vweird.f32 %v6390_v33  ;;  %v6536_v31 = vpop.xlane.xlu0 %2198 }
 0x1bd   :  { %9024 = vst [vmem:[#allocation69_spill] sm:$0xff] %v6474_v51  ;;  %v1642_v57 = vsel %vm1641_vm8, %v1639_v19, %v1640_v29  ;;  %4504 = vperm.xlu2 %4486, %v4503_v36   ;;  %4584 = vrsqrt.f32 %v6490_v48  ;;  %v6495_v32 = vadd.f32 %v5725_v8, %v6474_v51  ;;  %vm2258_vm9 = vcmp.gt.f32.partialorder %v6390_v33, 0.0  ;;  %v755_v36 = vpop.f32.mrf.mxu2  ;;  %v6575_v21 = vpop.xlane.xlu2 %2204 }
 0x1be   :  { %9025 = vst [vmem:[#allocation70_spill] sm:$0xff] %v6483_v24  ;;  %v1132_v53 = vpop.f32.mrf.mxu0  ;;  %v6499_v42 = vadd.f32 %v5725_v8, %v6486_v28  ;;  %v952_v63 = vadd.f32 %v951_v11, %v751_v20  ;;  %v2385_v6 = vmul.f32 %v6419_v13, %v2384_v60  ;;  %vm2387_vm10 = vweird.f32 %v6419_v13 }
 0x1bf   :  { %9027 = vst [vmem:[#allocation56_spill] sm:$0xff] %v6486_v28  ;;  %v1643_v25 = vrot.slane %v1642_v57, 4  ;;  %v6507_v35 = vsel %vm5745_vm1, %v6483_v24, -1e+30  ;;  %vm2388_vm13 = vmor %vm2386_vm11, %vm2387_vm10  ;;  %v6515_v14 = vsel %vm5761_vm2, %v6495_v32, -1e+30  ;;  %4586 = vrsqrt.f32 %v6477_v26 }
 0x1c0   :  { %9028 = vst [vmem:[#allocation71_spill] sm:$0xff] %v6495_v32  ;;  %v1133_v55 = vadd.f32 %v1132_v53, %v952_v63  ;;  %v2389_v46 = vsel %vm2388_vm13, %v6419_v13, %v2385_v6  ;;  %v6520_v19 = vsel %vm5766_vm3, %v6499_v42, -1e+30  ;;  %v1461_v33 = vsel %vm1407_vm4, %v6507_v35, -inf }
 0x1c1   :  { %9029 = vst [vmem:[#allocation72_spill] sm:$0xff] %v6499_v42  ;;  %v6522_v40 = vsel %vm2258_vm9, %v2389_v46, 0.0  ;;  %vm1644_vm12 = vcmp.lt.s32.totalorder %v1642_v57, %v1643_v25  ;;  %v1460_v0 = vsel %vm1407_vm4, %v6515_v14, -inf  ;;  %v1463_v60 = vsel %vm1407_vm4, %v6520_v19, -inf  ;;  %v6548_v63 = vpop.f32.mrf.mxu3 }
 0x1c2   :  { %9030 = vst [vmem:[#allocation73_spill] sm:$0xff] %v6522_v40  ;;  %v6524_v56 = vpop.eup %4582  ;;  %v2642_v13 = vmul.f32 %v4438_v62, %v6522_v40  ;;  %v6532_v29 = vadd.f32 %v1281_v43, %v1133_v55  ;;  %v1462_v11 = vmax.f32 %v1460_v0, %v1461_v33  ;;  %v1645_v20 = vsel %vm1644_vm12, %v1642_v57, %v1643_v25 }
 0x1c3   :  { %v6529_v4 = vpop.eup %4584  ;;  %v2421_v22 = vmul.f32 %v6524_v56, %v6479_v41  ;;  %4588 = vrsqrt.f32 %v6536_v31  ;;  %vm2416_vm15 = vweird.f32 %v6490_v48 }
 0x1c4   :  { %9031 = vst [vmem:[#allocation74_spill] sm:$0xff] %v6532_v29  ;;  %v6542_v62 = vadd.f32 %v5725_v8, %v6532_v29  ;;  %v2411_v53 = vmul.f32 %v6529_v4, %v6490_v48  ;;  %v1464_v6 = vmax.f32 %v1462_v11, %v1463_v60  ;;  %v6561_v29 = vpop.f32.mrf.mxu1  ;;  %4590 = vrsqrt.f32 %v6575_v21 }
 0x1c5   :  { %2727 = vperm.xlu2 %4486, %v2642_v13   ;;  %v6557_v33 = vpop.eup %4586  ;;  %v1646_v13 = vrot.slane %v1645_v20, 2  ;;  %v2422_v25 = vmul.f32 %v6524_v56, %v2421_v22  ;;  %v760_v3 = vpop.f32.mrf.mxu2  ;;  %vm2417_vm11 = vweird.f32 %v6529_v4 }
 0x1c6   :  { %9032 = vst [vmem:[#allocation75_spill] sm:$0xff] %v6542_v62  ;;  %v1394_v55 = vsel %vm5806_vm5, %v6542_v62, -1e+30  ;;  %v6555_v43 = vpop.f32.mrf.mxu0  ;;  %v2412_v0 = vmul.f32 %v6529_v4, %v2411_v53  ;;  %v2401_v60 = vmul.f32 %v6557_v33, %v6477_v26  ;;  %v6572_v62 = vpop.xlane.xlu0 %2207 }
 0x1c7   :  { %v1465_v46 = vsel %vm1407_vm4, %v1394_v55, -inf  ;;  %vm1647_vm14 = vcmp.lt.s32.totalorder %v1645_v20, %v1646_v13  ;;  %v6567_v51 = vmul.f32 0.5, %v2422_v25 }
 0x1c8   :  { %v1466_v57 = vmax.f32 %v1464_v6, %v1465_v46  ;;  %v2413_v37 = vmul.f32 0.5, %v2412_v0  ;;  %v2402_v6 = vmul.f32 %v6557_v33, %v2401_v60  ;;  %v1648_v46 = vsel %vm1647_vm14, %v1645_v20, %v1646_v13  ;;  %v9033_v13 = vld [vmem:[#allocation57_spill] sm:$0xff] }
 0x1c9   :  { %v6565_v11 = vpop.eup %4588  ;;  %v963_v53 = vpop.f32.mrf.mxu3  ;;  %v1649_v32 = vrot.slane %v1648_v46, 1  ;;  %v756_v60 = vadd.f32 %v755_v36, %v9033_v13 }
 0x1ca   :  { %v1467_v28 = vrot.slane %v1466_v57, 4  ;;  %v2431_v22 = vmul.f32 %v6565_v11, %v6536_v31  ;;  %v6579_v0 = vmul.f32 0.5, %v2402_v6 }
 0x1cb   :  { %vm1650_vm6 = vcmp.lt.s32.totalorder %v1648_v46, %v1649_v32 }
 0x1cc   :  { %v1468_v2 = vmax.f32 %v1466_v57, %v1467_v28  ;;  %v2414_v28 = vsub.f32 1.5, %v2413_v37  ;;  %v2432_v20 = vmul.f32 %v6565_v11, %v2431_v22  ;;  %v9034_v37 = vld [vmem:[#allocation58_spill] sm:$0xff] }
 0x1cd   :  { %v761_v59 = vadd.f32 %v760_v3, %v9034_v37  ;;  %v765_v36 = vpop.f32.mrf.mxu2 }
 0x1ce   :  { %v1469_v24 = vrot.slane %v1468_v2, 2  ;;  %v1140_v57 = vpop.f32.mrf.mxu0  ;;  %v2415_v22 = vmul.f32 %v6529_v4, %v2414_v28  ;;  %v6616_v37 = vpop.xlane.xlu0 %2216  ;;  %v766_v42 = vadd.f32 %v765_v36, %v9037_v39  ;;  %v2433_v36 = vmul.f32 0.5, %v2432_v20 }
 0x1d0   :  { %v1470_v9 = vmax.f32 %v1468_v2, %v1469_v24  ;;  %v1651_v2 = vsel %vm1650_vm6, %v1648_v46, %v1649_v32  ;;  %v1289_v24 = vpop.f32.mrf.mxu1  ;;  %vm6603_vm6 = vmor %vm2416_vm15, %vm2417_vm11  ;;  %v2404_v46 = vsub.f32 1.5, %v6579_v0 }
 0x1d1   :  { %vm1742_vm7 = vcmp.eq.s32.totalorder %v5728_v47, %v1651_v2  ;;  %vm1743_vm8 = vcmp.eq.s32.totalorder %v5780_v18, %v1651_v2  ;;  %vm1741_vm14 = vcmp.eq.s32.totalorder %v5715_v5, %v1651_v2  ;;  %v969_v13 = vpop.f32.mrf.mxu3  ;;  %vm1740_vm15 = vcmp.eq.s32.totalorder %v5708_v15, %v1651_v2 }
 0x1d2   :  { %v1471_v25 = vrot.slane %v1470_v9, 1  ;;  %v6588_v54 = vsel %vm1742_vm7, 1.0, %v8972_v16  ;;  %v6591_v6 = vsel %vm1743_vm8, 1.0, %v8972_v16  ;;  %vm2261_vm7 = vcmp.gt.f32.partialorder %v6490_v48, 0.0 }
 0x1d3   :  { %v958_v48 = vadd.f32 %v6548_v63, %v756_v60  ;;  %v970_v39 = vadd.f32 %v969_v13, %v766_v42  ;;  %v2405_v42 = vmul.f32 %v6557_v33, %v2404_v46 }
 0x1d4   :  { %v1472_v17 = vmax.f32 %v1470_v9, %v1471_v25  ;;  %v964_v25 = vadd.f32 %v963_v53, %v761_v59 }
 0x1d6   :  { %vm1528_vm9 = vcmp.ge.f32.partialorder %v6515_v14, %v1472_v17  ;;  %vm1529_vm10 = vcmp.ge.f32.partialorder %v6507_v35, %v1472_v17  ;;  %vm1530_vm13 = vcmp.ge.f32.partialorder %v6520_v19, %v1472_v17  ;;  %vm1531_vm12 = vcmp.ge.f32.partialorder %v1394_v55, %v1472_v17  ;;  %v6607_v14 = vpop.eup %4590  ;;  %v1144_v59 = vpop.f32.mrf.mxu0 }
 0x1d7   :  { %v1560_v9 = vsel %vm1528_vm9, %v5708_v15, 32  ;;  %v1561_v32 = vsel %vm1529_vm10, %v5715_v5, 32  ;;  %v1562_v3 = vsel %vm1530_vm13, %v5728_v47, 32  ;;  %v4513_v19 = vpack.i.bf16 %v6591_v6, %v6588_v54  ;;  %v6652_v13 = vpop.xlane.xlu0 %2225 }
 0x1d8   :  { %v1652_v35 = vsel %vm1407_vm4, %v1560_v9, 2147483647  ;;  %v1653_v17 = vsel %vm1407_vm4, %v1561_v32, 2147483647  ;;  %v1563_v55 = vsel %vm1531_vm12, %v5780_v18, 32  ;;  %v4441_v9 = vsel %vm1741_vm14, 1.0, %v8972_v16 }
 0x1d9   :  { %vm1654_vm8 = vcmp.lt.s32.totalorder %v1652_v35, %v1653_v17  ;;  %v1656_v28 = vsel %vm1407_vm4, %v1562_v3, 2147483647  ;;  %4514 = vperm.xlu1 %4487, %v4513_v19   ;;  %v2419_v32 = vsel %vm6603_vm6, %v6529_v4, %v2415_v22  ;;  %v4440_v19 = vsel %vm1740_vm15, 1.0, %v8972_v16  ;;  %v1293_v22 = vpop.f32.mrf.mxu1 }
 0x1da   :  { %v1655_v44 = vsel %vm1654_vm8, %v1652_v35, %v1653_v17  ;;  %v6625_v3 = vsel %vm2261_vm7, %v2419_v32, 0.0  ;;  %v1659_v35 = vsel %vm1407_vm4, %v1563_v55, 2147483647  ;;  %v1141_v4 = vadd.f32 %v1140_v57, %v964_v25 }
 0x1db   :  { %vm1657_vm11 = vcmp.lt.s32.totalorder %v1655_v44, %v1656_v28  ;;  %9038 = vst [vmem:[#allocation57_spill] sm:$0xff] %v6625_v3  ;;  %v2645_v17 = vmul.f32 %v4441_v9, %v6625_v3  ;;  %v4508_v2 = vpack.i.bf16 %v4441_v9, %v4440_v19  ;;  %vm2426_vm10 = vweird.f32 %v6479_v41  ;;  %v9042_v9 = vld [vmem:[#allocation60_spill] sm:$0xff] }
 0x1dc   :  { %v1658_v53 = vsel %vm1657_vm11, %v1655_v44, %v1656_v28  ;;  %v1137_v44 = vadd.f32 %v6555_v43, %v958_v48  ;;  %vm2406_vm13 = vweird.f32 %v6477_v26  ;;  %v9039_v55 = vsub.f32 1.5, %v6567_v51  ;;  %v770_v28 = vpop.f32.mrf.mxu2 }
 0x1dd   :  { %vm1660_vm9 = vcmp.lt.s32.totalorder %v1658_v53, %v1659_v35  ;;  %2736 = vperm.xlu2 %4486, %v2645_v17   ;;  %4509 = vperm.xlu0 %4475, %v4508_v2   ;;  %vm2427_vm12 = vweird.f32 %v6524_v56  ;;  %v6638_v57 = vadd.f32 %v1289_v24, %v1141_v4  ;;  %vm2262_vm14 = vcmp.gt.f32.partialorder %v6479_v41, 0.0  ;;  %v975_v41 = vpop.f32.mrf.mxu3 }
 0x1de   :  { %v1661_v63 = vsel %vm1660_vm9, %v1658_v53, %v1659_v35  ;;  %v2425_v0 = vmul.f32 %v6524_v56, %v9039_v55  ;;  %vm2428_vm6 = vmor %vm2426_vm10, %vm2427_vm12  ;;  %v1145_v43 = vadd.f32 %v1144_v59, %v970_v39  ;;  %vm2407_vm8 = vweird.f32 %v6557_v33  ;;  %v1148_v53 = vpop.f32.mrf.mxu0 }
 0x1df   :  { %v1662_v60 = vrot.slane %v1661_v63, 4  ;;  %9040 = vst [vmem:[#allocation58_spill] sm:$0xff] %v6638_v57  ;;  %v2451_v51 = vmul.f32 %v6607_v14, %v6575_v21  ;;  %v6647_v20 = vadd.f32 %v6561_v29, %v1137_v44  ;;  %vm2260_vm15 = vcmp.gt.f32.partialorder %v6477_v26, 0.0  ;;  %vm2408_vm11 = vmor %vm2406_vm13, %vm2407_vm8 }
 0x1e0   :  { %v2429_v25 = vsel %vm2428_vm6, %v6524_v56, %v2425_v0  ;;  %v2434_v24 = vsub.f32 1.5, %v2433_v36  ;;  %v771_v32 = vadd.f32 %v770_v28, %v9042_v9  ;;  %v2409_v48 = vsel %vm2408_vm11, %v6557_v33, %v2405_v42  ;;  %v6688_v36 = vpop.xlane.xlu1 %2201 }
 0x1e1   :  { %vm1663_vm7 = vcmp.lt.s32.totalorder %v1661_v63, %v1662_v60  ;;  %9041 = vst [vmem:[#allocation59_spill] sm:$0xff] %v6647_v20  ;;  %v6655_v56 = vsel %vm2262_vm14, %v2429_v25, 0.0  ;;  %v6660_v29 = vadd.f32 %v5725_v8, %v6638_v57  ;;  %v6664_v35 = vsel %vm2260_vm15, %v2409_v48, 0.0  ;;  %v1297_v2 = vpop.f32.mrf.mxu1 }
 0x1e2   :  { %9043 = vst [vmem:[#allocation60_spill] sm:$0xff] %v6655_v56  ;;  %v1664_v59 = vsel %vm1663_vm7, %v1661_v63, %v1662_v60  ;;  %v2646_v26 = vmul.f32 %v6588_v54, %v6655_v56  ;;  %v6666_v17 = vadd.f32 %v1293_v22, %v1145_v43  ;;  %v976_v46 = vadd.f32 %v975_v41, %v771_v32  ;;  %v6710_v41 = vpop.xlane.xlu0 %2234 }
 0x1e3   :  { %9044 = vst [vmem:[#allocation76_spill] sm:$0xff] %v6660_v29  ;;  %vm2436_vm9 = vweird.f32 %v6536_v31  ;;  %v6671_v4 = vadd.f32 %v5725_v8, %v6647_v20  ;;  %v2644_v33 = vmul.f32 %v4440_v19, %v6664_v35  ;;  %v2452_v63 = vmul.f32 %v6607_v14, %v2451_v51 }
 0x1e4   :  { %9045 = vst [vmem:[#allocation77_spill] sm:$0xff] %v6664_v35  ;;  %2739 = vperm.xlu1 %4487, %v2646_v26   ;;  %v6677_v54 = vadd.f32 %v5725_v8, %v6666_v17  ;;  %v1149_v39 = vadd.f32 %v1148_v53, %v976_v46  ;;  %v2435_v22 = vmul.f32 %v6565_v11, %v2434_v24  ;;  %v1665_v60 = vrot.slane %v1664_v59, 2 }
 0x1e5   :  { %9046 = vst [vmem:[#allocation78_spill] sm:$0xff] %v6666_v17  ;;  %v6683_v44 = vsel %vm5745_vm1, %v6660_v29, -1e+30  ;;  %2733 = vperm.xlu0 %4475, %v2644_v33   ;;  %vm2437_vm10 = vweird.f32 %v6565_v11  ;;  %v6693_v55 = vsel %vm5761_vm2, %v6671_v4, -1e+30  ;;  %vm2263_vm12 = vcmp.gt.f32.partialorder %v6536_v31, 0.0 }
 0x1e6   :  { %9047 = vst [vmem:[#allocation79_spill] sm:$0xff] %v6671_v4  ;;  %vm2438_vm13 = vmor %vm2436_vm9, %vm2437_vm10  ;;  %v6686_v19 = vadd.f32 %v1297_v2, %v1149_v39  ;;  %v6698_v0 = vsel %vm5766_vm3, %v6677_v54, -1e+30  ;;  %v2453_v42 = vmul.f32 0.5, %v2452_v63  ;;  %v1474_v43 = vsel %vm1407_vm4, %v6683_v44, -inf  ;;  %v6770_v57 = vpop.f32.mrf.mxu0 }
 0x1e7   :  { %9048 = vst [vmem:[#allocation80_spill] sm:$0xff] %v6677_v54  ;;  %v2439_v28 = vsel %vm2438_vm13, %v6565_v11, %v2435_v22  ;;  %vm1666_vm14 = vcmp.lt.s32.totalorder %v1664_v59, %v1665_v60  ;;  %v1473_v51 = vsel %vm1407_vm4, %v6693_v55, -inf  ;;  %v1476_v24 = vsel %vm1407_vm4, %v6698_v0, -inf }
 0x1e8   :  { %9049 = vst [vmem:[#allocation81_spill] sm:$0xff] %v6686_v19  ;;  %v6706_v25 = vadd.f32 %v5725_v8, %v6686_v19  ;;  %v6714_v31 = vsel %vm2263_vm12, %v2439_v28, 0.0  ;;  %v1475_v11 = vmax.f32 %v1473_v51, %v1474_v43  ;;  %v2454_v48 = vsub.f32 1.5, %v2453_v42  ;;  %v6730_v63 = vpop.xlane.xlu1 %2210 }
 0x1e9   :  { %9051 = vst [vmem:[#allocation83_spill] sm:$0xff] %v6714_v31  ;;  %v2647_v9 = vmul.f32 %v6591_v6, %v6714_v31  ;;  %4592 = vrsqrt.f32 %v6688_v36  ;;  %v1667_v26 = vsel %vm1666_vm14, %v1664_v59, %v1665_v60  ;;  %vm2456_vm6 = vweird.f32 %v6575_v21  ;;  %v6776_v54 = vpop.f32.mrf.mxu1 }
 0x1ea   :  { %9050 = vst [vmem:[#allocation82_spill] sm:$0xff] %v6706_v25  ;;  %v6721_v32 = vsel %vm5806_vm5, %v6706_v25, -1e+30  ;;  %4594 = vrsqrt.f32 %v6572_v62  ;;  %v1477_v46 = vmax.f32 %v1475_v11, %v1476_v24  ;;  %vm2457_vm7 = vweird.f32 %v6607_v14  ;;  %v6737_v28 = vpop.xlane.xlu0 %2243 }
 0x1eb   :  { %v1478_v53 = vsel %vm1407_vm4, %v6721_v32, -inf  ;;  %v1668_v33 = vrot.slane %v1667_v26, 1  ;;  %v2455_v2 = vmul.f32 %v6607_v14, %v2454_v48  ;;  %vm2458_vm15 = vmor %vm2456_vm6, %vm2457_vm7  ;;  %4596 = vrsqrt.f32 %v6730_v63 }
 0x1ec   :  { %v1479_v6 = vmax.f32 %v1477_v46, %v1478_v53  ;;  %vm2265_vm9 = vcmp.gt.f32.partialorder %v6575_v21, 0.0  ;;  %v6756_v46 = vpop.f32.mrf.mxu2  ;;  %vm2446_vm14 = vweird.f32 %v6688_v36  ;;  %vm2466_vm6 = vweird.f32 %v6572_v62 }
 0x1ed   :  { %2742 = vperm.xlu0 %4475, %v2647_v9   ;;  %vm1669_vm8 = vcmp.lt.s32.totalorder %v1667_v26, %v1668_v33  ;;  %v2459_v42 = vsel %vm2458_vm15, %v6607_v14, %v2455_v2  ;;  %vm2264_vm7 = vcmp.gt.f32.partialorder %v6688_v36, 0.0  ;;  %4598 = vrsqrt.f32 %v6616_v37 }
 0x1ee   :  { %v1670_v59 = vsel %vm1669_vm8, %v1667_v26, %v1668_v33  ;;  %v1480_v60 = vrot.slane %v1479_v6, 4  ;;  %v6747_v9 = vsel %vm2265_vm9, %v2459_v42, 0.0  ;;  %v6762_v42 = vpop.f32.mrf.mxu3 }
 0x1ef   :  { %v6732_v39 = vpop.eup %4592  ;;  %vm1745_vm11 = vcmp.eq.s32.totalorder %v5715_v5, %v1670_v59  ;;  %9052 = vst [vmem:[#allocation84_spill] sm:$0xff] %v6747_v9  ;;  %vm1744_vm10 = vcmp.eq.s32.totalorder %v5708_v15, %v1670_v59  ;;  %vm1746_vm13 = vcmp.eq.s32.totalorder %v5728_v47, %v1670_v59  ;;  %vm1747_vm12 = vcmp.eq.s32.totalorder %v5780_v18, %v1670_v59 }
 0x1f0   :  { %v6735_v22 = vpop.eup %4594  ;;  %v2441_v43 = vmul.f32 %v6732_v39, %v6688_v36  ;;  %v1481_v24 = vmax.f32 %v1479_v6, %v1480_v60  ;;  %v4445_v11 = vsel %vm1745_vm11, 1.0, %v8972_v16  ;;  %v4444_v14 = vsel %vm1744_vm10, 1.0, %v8972_v16 }
 0x1f1   :  { %v2461_v51 = vmul.f32 %v6735_v22, %v6572_v62  ;;  %v6749_v48 = vpop.eup %4596  ;;  %v2649_v53 = vmul.f32 %v4445_v11, %v6747_v9  ;;  %v4518_v6 = vpack.i.bf16 %v4445_v11, %v4444_v14  ;;  %v6766_v17 = vsel %vm1747_vm12, 1.0, %v8972_v16 }
 0x1f2   :  { %v2442_v21 = vmul.f32 %v6732_v39, %v2441_v43  ;;  %v2471_v33 = vmul.f32 %v6749_v48, %v6730_v63  ;;  %v1482_v2 = vrot.slane %v1481_v24, 2  ;;  %v4478_v60 = vpop.permute.xlu0 %4477  ;;  %vm2447_vm8 = vweird.f32 %v6732_v39 }
 0x1f3   :  { %v2462_v26 = vmul.f32 %v6735_v22, %v2461_v51  ;;  %2748 = vperm.xlu1 %4487, %v2649_v53   ;;  %4519 = vperm.xlu2 %4486, %v4518_v6   ;;  %v4446_v51 = vsel %vm1746_vm13, 1.0, %v8972_v16  ;;  %vm2448_vm15 = vmor %vm2446_vm14, %vm2447_vm8  ;;  %vm2266_vm11 = vcmp.gt.f32.partialorder %v6572_v62, 0.0  ;;  %vm2467_vm9 = vweird.f32 %v6735_v22 }
 0x1f4   :  { %v2443_v43 = vmul.f32 0.5, %v2442_v21  ;;  %v2472_v11 = vmul.f32 %v6749_v48, %v2471_v33  ;;  %v1483_v53 = vmax.f32 %v1481_v24, %v1482_v2  ;;  %v4523_v20 = vpack.i.bf16 %v6766_v17, %v4446_v51  ;;  %vm2468_vm10 = vmor %vm2466_vm6, %vm2467_vm9 }
 0x1f5   :  { %v2463_v19 = vmul.f32 0.5, %v2462_v26  ;;  %v6774_v26 = vpop.f32.mrf.mxu2  ;;  %v4480_v33 = vunpack.i.h.bf16 %v4478_v60  ;;  %v4479_v25 = vunpack.i.l.bf16 %v4478_v60  ;;  %vm2476_vm13 = vweird.f32 %v6730_v63  ;;  %v1156_v60 = vpop.f32.mrf.mxu0 }
 0x1f6   :  { %v2444_v4 = vsub.f32 1.5, %v2443_v43  ;;  %4524 = vperm.xlu0 %4475, %v4523_v20   ;;  %v2473_v6 = vmul.f32 0.5, %v2472_v11  ;;  %v1484_v21 = vrot.slane %v1483_v53, 1  ;;  %v6781_v20 = vpop.f32.mrf.mxu3  ;;  %vm2267_vm6 = vcmp.gt.f32.partialorder %v6730_v63, 0.0 }
 0x1f7   :  { %v2464_v59 = vsub.f32 1.5, %v2463_v19 }
 0x1f8   :  { %v2445_v24 = vmul.f32 %v6732_v39, %v2444_v4  ;;  %v2474_v43 = vsub.f32 1.5, %v2473_v6  ;;  %v6786_v11 = vmax.f32 %v1483_v53, %v1484_v21  ;;  %v6800_v53 = vld [vmem:[#allocation4 + $0x8] sm:$0xff]  ;;  %v1305_v6 = vpop.f32.mrf.mxu1 }
 0x1f9   :  { %v2465_v19 = vmul.f32 %v6735_v22, %v2464_v59 }
 0x1fa   :  { %v4483_v2 = vpop.permute.xlu0 %4482  ;;  %v2449_v29 = vsel %vm2448_vm15, %v6732_v39, %v2445_v24  ;;  %v1985_v39 = vmul.f32 %v6800_v53, %v4480_v33  ;;  %vm1532_vm12 = vcmp.ge.f32.partialorder %v6693_v55, %v6786_v11  ;;  %vm1533_vm14 = vcmp.ge.f32.partialorder %v6683_v44, %v6786_v11 }
 0x1fb   :  { %v6793_v4 = vsel %vm2264_vm7, %v2449_v29, 0.0  ;;  %v2469_v30 = vsel %vm2468_vm10, %v6735_v22, %v2465_v19  ;;  %v4484_v9 = vunpack.i.l.bf16 %v4483_v2  ;;  %v6808_v29 = vld [vmem:[#allocation4] sm:$0xff]  ;;  %v2475_v36 = vmul.f32 %v6749_v48, %v2474_v43  ;;  %v6812_v22 = vld [vmem:[#allocation4 + $0x10] sm:$0xff] }
 0x1fc   :  { %9053 = vst [vmem:[#allocation85_spill] sm:$0xff] %v6793_v4  ;;  %v2648_v59 = vmul.f32 %v4444_v14, %v6793_v4  ;;  %v6797_v31 = vsel %vm2266_vm11, %v2469_v30, 0.0  ;;  %v1984_v30 = vmul.f32 %v6808_v29, %v4479_v25  ;;  %vm2477_vm7 = vweird.f32 %v6749_v48  ;;  %v6821_v25 = vpop.xlane.xlu1 %2219 }
 0x1fd   :  { %9054 = vst [vmem:[#allocation86_spill] sm:$0xff] %v6797_v31  ;;  %v2650_v62 = vmul.f32 %v4446_v51, %v6797_v31  ;;  %v1986_v14 = vmul.f32 %v6812_v22, %v4484_v9  ;;  %v1564_v55 = vsel %vm1532_vm12, %v5708_v15, 32  ;;  %v1565_v44 = vsel %vm1533_vm14, %v5715_v5, 32  ;;  %v785_v51 = vpop.f32.mrf.mxu2  ;;  %vm2478_vm8 = vmor %vm2476_vm13, %vm2477_vm7 }
 0x1fe   :  { %2745 = vperm.xlu2 %4486, %v2648_v59   ;;  %v2017_v21 = vsel %vm89_vm0, %v1985_v39, 0.0  ;;  %v2016_v24 = vsel %vm89_vm0, %v1984_v30, 0.0  ;;  %v4485_v9 = vunpack.i.h.bf16 %v4483_v2  ;;  %v2479_v33 = vsel %vm2478_vm8, %v6749_v48, %v2475_v36  ;;  %v993_v19 = vpop.f32.mrf.mxu3  ;;  %v6835_v39 = vld [vmem:[#allocation4 + $0x18] sm:$0xff]  ;;  %v1160_v30 = vpop.f32.mrf.mxu0 }
 0x1ff   :  { %2751 = vperm.xlu0 %4475, %v2650_v62   ;;  %v6826_v43 = vsel %vm2267_vm6, %v2479_v33, 0.0  ;;  %v1671_v59 = vsel %vm1407_vm4, %v1564_v55, 2147483647  ;;  %v1672_v62 = vsel %vm1407_vm4, %v1565_v44, 2147483647  ;;  %v2019_v31 = vsel %vm89_vm0, %v1986_v14, 0.0 }
 0x200   :  { %9055 = vst [vmem:[#allocation87_spill] sm:$0xff] %v6826_v43  ;;  %v2651_v63 = vmul.f32 %v6766_v17, %v6826_v43  ;;  %v2018_v4 = vadd.f32 %v2017_v21, %v2016_v24  ;;  %vm1534_vm15 = vcmp.ge.f32.partialorder %v6698_v0, %v6786_v11  ;;  %v1987_v48 = vmul.f32 %v6835_v39, %v4485_v9  ;;  %v9056_v44 = vld [vmem:[#allocation62_spill] sm:$0xff]  ;;  %v9057_v21 = vld [vmem:[#allocation61_spill] sm:$0xff]  ;;  %v1309_v43 = vpop.f32.mrf.mxu1  ;;  %v9058_v9 = vld [vmem:[#allocation63_spill] sm:$0xff] }
 0x201   :  { %vm1673_vm11 = vcmp.lt.s32.totalorder %v1671_v59, %v1672_v62  ;;  %v1566_v36 = vsel %vm1534_vm15, %v5728_v47, 32  ;;  %v781_v14 = vadd.f32 %v6774_v26, %v9056_v44  ;;  %v776_v24 = vadd.f32 %v6756_v46, %v9057_v21  ;;  %v9059_v46 = vld [vmem:[#allocation64_spill] sm:$0xff] }
 0x202   :  { %v2020_v2 = vadd.f32 %v2019_v31, %v2018_v4  ;;  %v1674_v55 = vsel %vm1673_vm11, %v1671_v59, %v1672_v62  ;;  %v2021_v17 = vsel %vm89_vm0, %v1987_v48, 0.0  ;;  %vm1535_vm9 = vcmp.ge.f32.partialorder %v6721_v32, %v6786_v11 }
 0x203   :  { %v1675_v31 = vsel %vm1407_vm4, %v1566_v36, 2147483647  ;;  %v988_v4 = vadd.f32 %v6781_v20, %v781_v14  ;;  %v786_v59 = vadd.f32 %v785_v51, %v9058_v9  ;;  %v982_v62 = vadd.f32 %v6762_v42, %v776_v24 }
 0x204   :  { %v2022_v0 = vadd.f32 %v2021_v17, %v2020_v2  ;;  %v6844_v56 = vpop.xlane.xlu1 %2228  ;;  %vm1676_vm10 = vcmp.lt.s32.totalorder %v1674_v55, %v1675_v31  ;;  %v1567_v2 = vsel %vm1535_vm9, %v5780_v18, 32  ;;  %vm2496_vm7 = vweird.f32 %v6616_v37 }
 0x205   :  { %v790_v33 = vpop.f32.mrf.mxu2  ;;  %v1677_v17 = vsel %vm1676_vm10, %v1674_v55, %v1675_v31  ;;  %v1157_v21 = vadd.f32 %v1156_v60, %v988_v4  ;;  %v1678_v11 = vsel %vm1407_vm4, %v1567_v2, 2147483647  ;;  %v1153_v20 = vadd.f32 %v6770_v57, %v982_v62  ;;  %v6888_v4 = vpop.xlane.xlu2 %2213 }
 0x206   :  { %2754 = vperm.xlu2 %4486, %v2651_v63   ;;  %v999_v26 = vpop.f32.mrf.mxu3  ;;  %v994_v63 = vadd.f32 %v993_v19, %v786_v59  ;;  %v791_v48 = vadd.f32 %v790_v33, %v9059_v46  ;;  %v2023_v44 = vrot.slane %v2022_v0, 4  ;;  %v1164_v32 = vpop.f32.mrf.mxu0  ;;  %vm1679_vm13 = vcmp.lt.s32.totalorder %v1677_v17, %v1678_v11 }
 0x207   :  { %v6856_v14 = vadd.f32 %v1305_v6, %v1157_v21  ;;  %v1680_v33 = vsel %vm1679_vm13, %v1677_v17, %v1678_v11  ;;  %v6861_v9 = vadd.f32 %v6776_v54, %v1153_v20  ;;  %4600 = vrsqrt.f32 %v6888_v4 }
 0x208   :  { %v1000_v3 = vadd.f32 %v999_v26, %v791_v48  ;;  %v1161_v36 = vadd.f32 %v1160_v30, %v994_v63  ;;  %v2024_v51 = vadd.f32 %v2023_v44, %v2022_v0  ;;  %v1313_v19 = vpop.f32.mrf.mxu1  ;;  %v1681_v30 = vrot.slane %v1680_v33, 4 }
 0x209   :  { %9060 = vst [vmem:[#allocation62_spill] sm:$0xff] %v6856_v14  ;;  %v6867_v31 = vadd.f32 %v5725_v8, %v6856_v14  ;;  %vm2486_vm10 = vweird.f32 %v6888_v4  ;;  %v6969_v14 = vld [vmem:[#allocation4 + $0x28] sm:$0xff] }
 0x20a   :  { %v1165_v42 = vadd.f32 %v1164_v32, %v1000_v3  ;;  %9061 = vst [vmem:[#allocation61_spill] sm:$0xff] %v6861_v9  ;;  %v6863_v60 = vadd.f32 %v1309_v43, %v1161_v36  ;;  %v2025_v55 = vrot.slane %v2024_v51, 2  ;;  %v6873_v3 = vadd.f32 %v5725_v8, %v6861_v9 }
 0x20b   :  { %9063 = vst [vmem:[#allocation64_spill] sm:$0xff] %v6867_v31  ;;  %v6882_v43 = vsel %vm5745_vm1, %v6867_v31, -1e+30  ;;  %vm1682_vm12 = vcmp.lt.s32.totalorder %v1680_v33, %v1681_v30 }
 0x20c   :  { %v6858_v24 = vpop.xlane.xlu1 %2237  ;;  %9062 = vst [vmem:[#allocation63_spill] sm:$0xff] %v6863_v60  ;;  %v6869_v57 = vadd.f32 %v1313_v19, %v1165_v42  ;;  %v6877_v6 = vadd.f32 %v5725_v8, %v6863_v60  ;;  %v2026_v54 = vadd.f32 %v2025_v55, %v2024_v51  ;;  %v6893_v59 = vsel %vm5761_vm2, %v6873_v3, -1e+30 }
 0x20d   :  { %9065 = vst [vmem:[#allocation89_spill] sm:$0xff] %v6873_v3  ;;  %v1487_v62 = vsel %vm1407_vm4, %v6882_v43, -inf  ;;  %v1683_v48 = vsel %vm1682_vm12, %v1680_v33, %v1681_v30  ;;  %v1486_v44 = vsel %vm1407_vm4, %v6893_v59, -inf  ;;  %v6920_v33 = vpop.eup %4598  ;;  %v6922_v30 = vpop.xlane.xlu2 %2222  ;;  %vm2269_vm12 = vcmp.gt.f32.partialorder %v6616_v37, 0.0 }
 0x20e   :  { %9064 = vst [vmem:[#allocation88_spill] sm:$0xff] %v6869_v57  ;;  %v6886_v0 = vadd.f32 %v5725_v8, %v6869_v57  ;;  %v6898_v26 = vsel %vm5766_vm3, %v6877_v6, -1e+30  ;;  %v2027_v63 = vrot.slane %v2026_v54, 1  ;;  %v1488_v32 = vmax.f32 %v1486_v44, %v1487_v62  ;;  %v6928_v62 = vpop.eup %4600 }
 0x20f   :  { %9066 = vst [vmem:[#allocation90_spill] sm:$0xff] %v6877_v6  ;;  %v1489_v17 = vsel %vm1407_vm4, %v6898_v26, -inf  ;;  %v1684_v11 = vrot.slane %v1683_v48, 2  ;;  %4602 = vrsqrt.f32 %v6922_v30  ;;  %vm2497_vm11 = vweird.f32 %v6920_v33 }
 0x210   :  { %9067 = vst [vmem:[#allocation91_spill] sm:$0xff] %v6886_v0  ;;  %v6908_v2 = vsel %vm5806_vm5, %v6886_v0, -1e+30  ;;  %v2028_v21 = vadd.f32 %v2027_v63, %v2026_v54  ;;  %v1490_v51 = vmax.f32 %v1488_v32, %v1489_v17  ;;  %4604 = vrsqrt.f32 %v6821_v25  ;;  %vm6960_vm9 = vmor %vm2496_vm7, %vm2497_vm11 }
 0x211   :  { %v1491_v20 = vsel %vm1407_vm4, %v6908_v2, -inf  ;;  %vm1685_vm14 = vcmp.lt.s32.totalorder %v1683_v48, %v1684_v11  ;;  %vm2487_vm13 = vweird.f32 %v6928_v62  ;;  %vm2268_vm11 = vcmp.gt.f32.partialorder %v6888_v4, 0.0 }
 0x212   :  { %v2876_v36 = vmul.f32 %v6812_v22, %v2028_v21  ;;  %v2874_v42 = vmul.f32 %v6808_v29, %v2028_v21  ;;  %v1492_v55 = vmax.f32 %v1490_v51, %v1491_v20  ;;  %v2491_v22 = vmul.f32 %v6920_v33, %v6616_v37 }
 0x213   :  { %v2875_v44 = vmul.f32 %v6800_v53, %v2028_v21  ;;  %v1686_v17 = vsel %vm1685_vm14, %v1683_v48, %v1684_v11  ;;  %v2877_v32 = vmul.f32 %v6835_v39, %v2028_v21  ;;  %v2481_v20 = vmul.f32 %v6928_v62, %v6888_v4 }
 0x214   :  { %v6903_v46 = vpop.xlane.xlu1 %2246  ;;  %v2912_v19 = vsel %vm89_vm0, %v2876_v36, 0.0  ;;  %v2906_v54 = vsel %vm89_vm0, %v2874_v42, 0.0  ;;  %v1493_v63 = vrot.slane %v1492_v55, 4  ;;  %v2492_v36 = vmul.f32 %v6920_v33, %v2491_v22 }
 0x215   :  { %v1687_v51 = vrot.slane %v1686_v17, 1  ;;  %v2915_v57 = vsel %vm89_vm0, %v2877_v32, 0.0  ;;  %v2482_v48 = vmul.f32 %v6928_v62, %v2481_v20  ;;  %vm2516_vm14 = vweird.f32 %v6922_v30 }
 0x216   :  { %v1494_v42 = vmax.f32 %v1492_v55, %v1493_v63  ;;  %v2493_v11 = vmul.f32 0.5, %v2492_v36  ;;  %4606 = vrsqrt.f32 %v6652_v13 }
 0x217   :  { %vm1688_vm6 = vcmp.lt.s32.totalorder %v1686_v17, %v1687_v51  ;;  %4608 = vrsqrt.f32 %v6710_v41 }
 0x218   :  { %v1495_v21 = vrot.slane %v1494_v42, 2  ;;  %v1689_v63 = vsel %vm1688_vm6, %v1686_v17, %v1687_v51  ;;  %v6956_v17 = vpop.f32.mrf.mxu2  ;;  %vm6981_vm6 = vmor %vm2486_vm10, %vm2487_vm13  ;;  %4610 = vrsqrt.f32 %v6844_v56 }
 0x219   :  { %vm1748_vm8 = vcmp.eq.s32.totalorder %v5708_v15, %v1689_v63  ;;  %vm1749_vm15 = vcmp.eq.s32.totalorder %v5715_v5, %v1689_v63  ;;  %vm1750_vm7 = vcmp.eq.s32.totalorder %v5728_v47, %v1689_v63 }
 0x21a   :  { %v1496_v60 = vmax.f32 %v1494_v42, %v1495_v21  ;;  %v4449_v42 = vsel %vm1749_vm15, 1.0, %v8972_v16  ;;  %vm2506_vm15 = vweird.f32 %v6821_v25  ;;  %v4450_v37 = vsel %vm1750_vm7, 1.0, %v8972_v16 }
 0x21b   :  { %vm2271_vm7 = vcmp.gt.f32.partialorder %v6922_v30, 0.0 }
 0x21c   :  { %v6930_v29 = vpop.permute.xlu1 %2703  ;;  %v1497_v51 = vrot.slane %v1496_v60, 1 }
 0x21d   :  { %2913 = vadd.xlane.f32.xlu1 %v2912_v19  ;;  %v2909_v19 = vsel %vm89_vm0, %v2875_v44, 0.0  ;;  %v2483_v44 = vmul.f32 0.5, %v2482_v48  ;;  %v4448_v48 = vsel %vm1748_vm8, 1.0, %v8972_v16  ;;  %vm1751_vm8 = vcmp.eq.s32.totalorder %v5780_v18, %v1689_v63 }
 0x21e   :  { %v4528_v6 = vpack.i.bf16 %v4449_v42, %v4448_v48  ;;  %v4451_v63 = vsel %vm1751_vm8, 1.0, %v8972_v16  ;;  %vm2270_vm8 = vcmp.gt.f32.partialorder %v6821_v25, 0.0 }
 0x21f   :  { %v2484_v20 = vsub.f32 1.5, %v2483_v44  ;;  %v6966_v44 = vpop.f32.mrf.mxu3 }
 0x221   :  { %v2485_v0 = vmul.f32 %v6928_v62, %v2484_v20 }
 0x224   :  { %v4490_v22 = vpop.permute.xlu1 %4489 }
 0x225   :  { %v4492_v36 = vunpack.i.h.bf16 %v4490_v22 }
 0x227   :  { %v1989_v31 = vmul.f32 %v6969_v14, %v4492_v36 }
 0x229   :  { %2907 = vadd.xlane.f32.xlu0 %v2906_v54  ;;  %v6939_v54 = vpop.eup %4602 }
 0x22a   :  { %v6942_v53 = vpop.eup %4604  ;;  %v2511_v39 = vmul.f32 %v6939_v54, %v6922_v30 }
 0x22b   :  { %v2501_v55 = vmul.f32 %v6942_v53, %v6821_v25 }
 0x22c   :  { %v2512_v32 = vmul.f32 %v6939_v54, %v2511_v39 }
 0x22e   :  { %v2513_v39 = vmul.f32 0.5, %v2512_v32 }
 0x22f   :  { %2910 = vadd.xlane.f32.xlu2 %v2909_v19  ;;  %v2494_v19 = vsub.f32 1.5, %v2493_v11  ;;  %v7009_v11 = vld [vmem:[#allocation4 + $0x30] sm:$0xff] }
 0x230   :  { %v2514_v3 = vsub.f32 1.5, %v2513_v39 }
 0x231   :  { %2916 = vadd.xlane.f32.xlu0 %v2915_v57  ;;  %v2502_v57 = vmul.f32 %v6942_v53, %v2501_v55  ;;  %v2495_v9 = vmul.f32 %v6920_v33, %v2494_v19  ;;  %v4491_v55 = vunpack.i.l.bf16 %v4490_v22  ;;  %v4495_v19 = vpop.permute.xlu1 %4494 }
 0x232   :  { %v4496_v35 = vunpack.i.l.bf16 %v4495_v19 }
 0x233   :  { %v2503_v21 = vmul.f32 0.5, %v2502_v57  ;;  %v2499_v32 = vsel %vm6960_vm9, %v6920_v33, %v2495_v9  ;;  %v6977_v57 = vmax.f32 %v1496_v60, %v1497_v51  ;;  %v6988_v9 = vld [vmem:[#allocation4 + $0x20] sm:$0xff]  ;;  %v6991_v33 = vpop.f32.mrf.mxu0  ;;  %v2030_v51 = vsel %vm89_vm0, %v1989_v31, 0.0 }
 0x234   :  { %v1988_v60 = vmul.f32 %v6988_v9, %v4491_v55  ;;  %v6995_v36 = vsel %vm2269_vm12, %v2499_v32, 0.0  ;;  %vm2517_vm9 = vweird.f32 %v6939_v54  ;;  %v1990_v31 = vmul.f32 %v7009_v11, %v4496_v35  ;;  %v7016_v55 = vpop.f32.mrf.mxu1 }
 0x235   :  { %v2504_v20 = vsub.f32 1.5, %v2503_v21  ;;  %9072 = vst [vmem:[#allocation92_spill] sm:$0xff] %v6995_v36  ;;  %vm1536_vm10 = vcmp.ge.f32.partialorder %v6893_v59, %v6977_v57  ;;  %vm1537_vm13 = vcmp.ge.f32.partialorder %v6882_v43, %v6977_v57  ;;  %v2653_v39 = vmul.f32 %v4449_v42, %v6995_v36  ;;  %v800_v21 = vpop.f32.mrf.mxu2 }
 0x236   :  { %4529 = vperm.xlu1 %4487, %v4528_v6   ;;  %v2489_v6 = vsel %vm6981_vm6, %v6928_v62, %v2485_v0  ;;  %v2515_v0 = vmul.f32 %v6939_v54, %v2514_v3  ;;  %vm2507_vm12 = vweird.f32 %v6942_v53  ;;  %v2029_v62 = vsel %vm89_vm0, %v1988_v60, 0.0  ;;  %vm7026_vm6 = vmor %vm2516_vm14, %vm2517_vm9 }
 0x237   :  { %v4497_v32 = vunpack.i.h.bf16 %v4495_v19  ;;  %v7020_v22 = vsel %vm2268_vm11, %v2489_v6, 0.0  ;;  %v2505_v3 = vmul.f32 %v6942_v53, %v2504_v20  ;;  %v1568_v42 = vsel %vm1536_vm10, %v5708_v15, 32  ;;  %v1011_v6 = vpop.f32.mrf.mxu3  ;;  %vm7042_vm14 = vmor %vm2506_vm15, %vm2507_vm12 }
 0x238   :  { %9073 = vst [vmem:[#allocation93_spill] sm:$0xff] %v7020_v22  ;;  %v1569_v4 = vsel %vm1537_vm13, %v5715_v5, 32  ;;  %v2652_v19 = vmul.f32 %v4448_v48, %v7020_v22  ;;  %v4533_v60 = vpack.i.bf16 %v4451_v63, %v4450_v37  ;;  %v2032_v20 = vsel %vm89_vm0, %v1990_v31, 0.0  ;;  %v7053_v22 = vld [vmem:[#allocation4 + $0x38] sm:$0xff] }
 0x239   :  { %v2519_v43 = vsel %vm7026_vm6, %v6939_v54, %v2515_v0  ;;  %v1690_v59 = vsel %vm1407_vm4, %v1568_v42, 2147483647  ;;  %v1691_v48 = vsel %vm1407_vm4, %v1569_v4, 2147483647  ;;  %v1991_v58 = vmul.f32 %v7053_v22, %v4497_v32 }
 0x23a   :  { %v2509_v31 = vsel %vm7042_vm14, %v6942_v53, %v2505_v3  ;;  %vm1538_vm15 = vcmp.ge.f32.partialorder %v6898_v26, %v6977_v57  ;;  %v7062_v0 = vsel %vm2271_vm7, %v2519_v43, 0.0  ;;  %vm1692_vm11 = vcmp.lt.s32.totalorder %v1690_v59, %v1691_v48 }
 0x23b   :  { %v1172_v54 = vpop.f32.mrf.mxu0  ;;  %9078 = vst [vmem:[#allocation94_spill] sm:$0xff] %v7062_v0  ;;  %v7064_v35 = vsel %vm2270_vm8, %v2509_v31, 0.0  ;;  %v2655_v25 = vmul.f32 %v4451_v63, %v7062_v0  ;;  %v1693_v36 = vsel %vm1692_vm11, %v1690_v59, %v1691_v48  ;;  %vm1539_vm9 = vcmp.ge.f32.partialorder %v6908_v2, %v6977_v57  ;;  %v9080_v59 = vld [vmem:[#allocation66_spill] sm:$0xff]  ;;  %v9081_v2 = vld [vmem:[#allocation65_spill] sm:$0xff] }
 0x23c   :  { %9079 = vst [vmem:[#allocation95_spill] sm:$0xff] %v7064_v35  ;;  %v2654_v32 = vmul.f32 %v4450_v37, %v7064_v35  ;;  %v1321_v42 = vpop.f32.mrf.mxu1  ;;  %v1571_v63 = vsel %vm1539_vm9, %v5780_v18, 32  ;;  %v801_v48 = vadd.f32 %v800_v21, %v9080_v59  ;;  %v796_v57 = vadd.f32 %v6956_v17, %v9081_v2 }
 0x23d   :  { %v805_v3 = vpop.f32.mrf.mxu2 }
 0x23e   :  { %2757 = vperm.xlu1 %4487, %v2652_v19   ;;  %v7073_v19 = vpop.xlane.xlu2 %2231 }
 0x23f   :  { %v1017_v4 = vpop.f32.mrf.mxu3  ;;  %4612 = vrsqrt.f32 %v7073_v19 }
 0x240   :  { %4614 = vrsqrt.f32 %v6737_v28 }
 0x241   :  { %4616 = vrsqrt.f32 %v6858_v24 }
 0x243   :  { %v1176_v37 = vpop.f32.mrf.mxu0 }
 0x244   :  { %v1325_v31 = vpop.f32.mrf.mxu1 }
 0x245   :  { %2760 = vperm.xlu0 %4475, %v2653_v39   ;;  %v2031_v39 = vadd.f32 %v2030_v51, %v2029_v62  ;;  %v1570_v51 = vsel %vm1538_vm15, %v5728_v47, 32  ;;  %v2034_v62 = vsel %vm89_vm0, %v1991_v58, 0.0  ;;  %vm2526_vm15 = vweird.f32 %v6652_v13 }
 0x246   :  { %2766 = vperm.xlu1 %4487, %v2655_v25   ;;  %v1694_v26 = vsel %vm1407_vm4, %v1570_v51, 2147483647  ;;  %v9082_v51 = vld [vmem:[#allocation18_spill] sm:$0xff]  ;;  %v7081_v35 = vpop.xlane.xlu2 %2240 }
 0x247   :  { %4534 = vperm.xlu2 %4486, %v4533_v60   ;;  %v2033_v30 = vadd.f32 %v2032_v20, %v2031_v39  ;;  %vm1695_vm10 = vcmp.lt.s32.totalorder %v1693_v36, %v1694_v26  ;;  %v1697_v20 = vsel %vm1407_vm4, %v1571_v63, 2147483647  ;;  %v810_v39 = vpop.f32.mrf.mxu2  ;;  %v1023_v0 = vpop.f32.mrf.mxu3  ;;  %4618 = vrsqrt.f32 %v7081_v35 }
 0x248   :  { %v1696_v60 = vsel %vm1695_vm10, %v1693_v36, %v1694_v26  ;;  %v1006_v36 = vadd.f32 %v6966_v44, %v796_v57  ;;  %vm2272_vm10 = vcmp.gt.f32.partialorder %v6652_v13, 0.0  ;;  %4620 = vrsqrt.f32 %v6903_v46 }
 0x249   :  { %v2035_v53 = vadd.f32 %v2034_v62, %v2033_v30  ;;  %vm1698_vm13 = vcmp.lt.s32.totalorder %v1696_v60, %v1697_v20  ;;  %v1012_v30 = vadd.f32 %v1011_v6, %v801_v48  ;;  %v806_v62 = vadd.f32 %v805_v3, %v9082_v51 }
 0x24a   :  { %v1699_v25 = vsel %vm1698_vm13, %v1696_v60, %v1697_v20  ;;  %v1169_v17 = vadd.f32 %v6991_v33, %v1006_v36  ;;  %vm2556_vm13 = vweird.f32 %v6710_v41 }
 0x24b   :  { %v2036_v58 = vrot.slane %v2035_v53, 4  ;;  %v1018_v26 = vadd.f32 %v1017_v4, %v806_v62  ;;  %v1700_v63 = vrot.slane %v1699_v25, 4  ;;  %v1173_v21 = vadd.f32 %v1172_v54, %v1012_v30  ;;  %v1180_v40 = vpop.f32.mrf.mxu0 }
 0x24c   :  { %v1329_v20 = vpop.f32.mrf.mxu1  ;;  %v7089_v2 = vadd.f32 %v7016_v55, %v1169_v17 }
 0x24d   :  { %v2037_v43 = vadd.f32 %v2036_v58, %v2035_v53  ;;  %v9083_v53 = vld [vmem:[#allocation27_spill] sm:$0xff]  ;;  %v1177_v6 = vadd.f32 %v1176_v37, %v1018_v26  ;;  %vm1701_vm12 = vcmp.lt.s32.totalorder %v1699_v25, %v1700_v63  ;;  %v7086_v3 = vadd.f32 %v1321_v42, %v1173_v21 }
 0x24e   :  { %v811_v58 = vadd.f32 %v810_v39, %v9083_v53  ;;  %9085 = vst [vmem:[#allocation65_spill] sm:$0xff] %v7089_v2  ;;  %v1702_v4 = vsel %vm1701_vm12, %v1699_v25, %v1700_v63  ;;  %v7093_v39 = vpop.permute.xlu2 %2697 }
 0x24f   :  { %2763 = vperm.xlu2 %4486, %v2654_v32   ;;  %v2038_v32 = vrot.slane %v2037_v43, 2  ;;  %9084 = vst [vmem:[#allocation66_spill] sm:$0xff] %v7086_v3  ;;  %v7091_v44 = vadd.f32 %v1325_v31, %v1177_v6  ;;  %v7097_v54 = vadd.f32 %v5725_v8, %v7086_v3  ;;  %v1703_v42 = vrot.slane %v1702_v4, 2 }
 0x250   :  { %v1024_v59 = vadd.f32 %v1023_v0, %v811_v58 }
 0x251   :  { %v2039_v45 = vadd.f32 %v2038_v32, %v2037_v43  ;;  %9086 = vst [vmem:[#allocation18_spill] sm:$0xff] %v7091_v44  ;;  %v7107_v55 = vadd.f32 %v5725_v8, %v7091_v44  ;;  %v7113_v37 = vsel %vm5745_vm1, %v7097_v54, -1e+30  ;;  %vm1704_vm6 = vcmp.lt.s32.totalorder %v1702_v4, %v1703_v42  ;;  %v7189_v44 = vpop.permute.xlu0 %2700 }
 0x252   :  { %v1181_v60 = vadd.f32 %v1180_v40, %v1024_v59  ;;  %9087 = vst [vmem:[#allocation27_spill] sm:$0xff] %v7097_v54  ;;  %v7103_v40 = vadd.f32 %v5725_v8, %v7089_v2  ;;  %v1500_v30 = vsel %vm1407_vm4, %v7113_v37, -inf  ;;  %v1705_v36 = vsel %vm1704_vm6, %v1702_v4, %v1703_v42 }
 0x253   :  { %v2040_v48 = vrot.slane %v2039_v45, 1  ;;  %9090 = vst [vmem:[#allocation98_spill] sm:$0xff] %v7107_v55  ;;  %v7128_v57 = vsel %vm5766_vm3, %v7107_v55, -1e+30  ;;  %v1706_v21 = vrot.slane %v1705_v36, 1 }
 0x254   :  { %v7099_v33 = vadd.f32 %v1329_v20, %v1181_v60  ;;  %9089 = vst [vmem:[#allocation97_spill] sm:$0xff] %v7103_v40  ;;  %v7123_v31 = vsel %vm5761_vm2, %v7103_v40, -1e+30  ;;  %v1502_v25 = vsel %vm1407_vm4, %v7128_v57, -inf }
 0x255   :  { %v2041_v0 = vadd.f32 %v2040_v48, %v2039_v45  ;;  %v1499_v62 = vsel %vm1407_vm4, %v7123_v31, -inf  ;;  %vm1707_vm14 = vcmp.lt.s32.totalorder %v1705_v36, %v1706_v21 }
 0x256   :  { %9088 = vst [vmem:[#allocation96_spill] sm:$0xff] %v7099_v33  ;;  %v7117_v43 = vadd.f32 %v5725_v8, %v7099_v33  ;;  %v7132_v51 = vpop.permute.xlu2 %2709  ;;  %v1501_v26 = vmax.f32 %v1499_v62, %v1500_v30 }
 0x257   :  { %v2880_v45 = vmul.f32 %v7009_v11, %v2041_v0  ;;  %v7139_v11 = vpop.eup %4606  ;;  %v2878_v17 = vmul.f32 %v6988_v9, %v2041_v0  ;;  %v2879_v6 = vmul.f32 %v6969_v14, %v2041_v0  ;;  %v1708_v9 = vsel %vm1707_vm14, %v1705_v36, %v1706_v21 }
 0x258   :  { %9091 = vst [vmem:[#allocation99_spill] sm:$0xff] %v7117_v43  ;;  %v7137_v8 = vsel %vm5806_vm5, %v7117_v43, -1e+30  ;;  %v2521_v58 = vmul.f32 %v7139_v11, %v6652_v13  ;;  %v1503_v63 = vmax.f32 %v1501_v26, %v1502_v25  ;;  %v7155_v20 = vpop.eup %4608  ;;  %vm1752_vm7 = vcmp.eq.s32.totalorder %v5708_v15, %v1708_v9 }
 0x259   :  { %v2924_v32 = vsel %vm89_vm0, %v2880_v45, 0.0  ;;  %v1504_v53 = vsel %vm1407_vm4, %v7137_v8, -inf  ;;  %v2918_v42 = vsel %vm89_vm0, %v2878_v17, 0.0  ;;  %v2921_v45 = vsel %vm89_vm0, %v2879_v6, 0.0  ;;  %v7164_v62 = vpop.eup %4610 }
 0x25a   :  { %v1505_v59 = vmax.f32 %v1503_v63, %v1504_v53  ;;  %v2522_v60 = vmul.f32 %v7139_v11, %v2521_v58  ;;  %v2551_v14 = vmul.f32 %v7155_v20, %v6710_v41  ;;  %vm1753_vm8 = vcmp.eq.s32.totalorder %v5715_v5, %v1708_v9  ;;  %v7169_v26 = vpop.eup %4612 }
 0x25b   :  { %v2531_v36 = vmul.f32 %v7164_v62, %v6844_v56  ;;  %v4452_v63 = vsel %vm1752_vm7, 1.0, %v8972_v16  ;;  %v7176_v21 = vsel %vm1753_vm8, 1.0, %v8972_v16  ;;  %vm2527_vm11 = vweird.f32 %v7139_v11 }
 0x25c   :  { %v1506_v4 = vrot.slane %v1505_v59, 4  ;;  %v2523_v30 = vmul.f32 0.5, %v2522_v60  ;;  %v2552_v58 = vmul.f32 %v7155_v20, %v2551_v14  ;;  %v2541_v17 = vmul.f32 %v7169_v26, %v7073_v19  ;;  %vm2528_vm9 = vmor %vm2526_vm15, %vm2527_vm11 }
 0x25d   :  { %v4538_v60 = vpack.i.bf16 %v7176_v21, %v4452_v63  ;;  %vm2557_vm12 = vweird.f32 %v7155_v20  ;;  %vm1754_vm6 = vcmp.eq.s32.totalorder %v5728_v47, %v1708_v9  ;;  %vm1755_vm14 = vcmp.eq.s32.totalorder %v5780_v18, %v1708_v9 }
 0x25e   :  { %v7158_v48 = vpop.permute.xlu2 %2718  ;;  %v1507_v25 = vmax.f32 %v1505_v59, %v1506_v4  ;;  %v2524_v53 = vsub.f32 1.5, %v2523_v30  ;;  %v2553_v6 = vmul.f32 0.5, %v2552_v58  ;;  %v2542_v30 = vmul.f32 %v7169_v26, %v2541_v17  ;;  %vm7199_vm7 = vmor %vm2556_vm13, %vm2557_vm12 }
 0x25f   :  { %vm2536_vm8 = vweird.f32 %v6844_v56  ;;  %vm2537_vm15 = vweird.f32 %v7164_v62  ;;  %vm2275_vm11 = vcmp.gt.f32.partialorder %v6710_v41, 0.0  ;;  %v7269_v41 = vld [vmem:[#allocation4 + $0x58] sm:$0xff] }
 0x260   :  { %v2525_v4 = vmul.f32 %v7139_v11, %v2524_v53  ;;  %v2554_v14 = vsub.f32 1.5, %v2553_v6  ;;  %v2543_v53 = vmul.f32 0.5, %v2542_v30  ;;  %vm7226_vm12 = vmor %vm2536_vm8, %vm2537_vm15  ;;  %vm2274_vm8 = vcmp.gt.f32.partialorder %v7073_v19, 0.0 }
 0x26f   :  { %2925 = vadd.xlane.f32.xlu0 %v2924_v32  ;;  %v2881_v32 = vmul.f32 %v7053_v22, %v2041_v0  ;;  %v4500_v22 = vpop.permute.xlu2 %4499  ;;  %v1508_v0 = vrot.slane %v1507_v25, 2 }
 0x270   :  { %2922 = vadd.xlane.f32.xlu1 %v2921_v45  ;;  %v4502_v13 = vunpack.i.h.bf16 %v4500_v22  ;;  %v4501_v6 = vunpack.i.l.bf16 %v4500_v22  ;;  %v7214_v22 = vld [vmem:[#allocation4 + $0x48] sm:$0xff] }
 0x271   :  { %v2927_v59 = vsel %vm89_vm0, %v2881_v32, 0.0  ;;  %v1509_v45 = vmax.f32 %v1507_v25, %v1508_v0  ;;  %v2529_v32 = vsel %vm2528_vm9, %v7139_v11, %v2525_v4  ;;  %v2544_v4 = vsub.f32 1.5, %v2543_v53 }
 0x272   :  { %vm2546_vm9 = vweird.f32 %v7073_v19 }
 0x273   :  { %v1510_v58 = vrot.slane %v1509_v45, 1 }
 0x277   :  { %v4505_v25 = vpop.permute.xlu2 %4504 }
 0x278   :  { %2919 = vadd.xlane.f32.xlu2 %v2918_v42  ;;  %v2532_v42 = vmul.f32 %v7164_v62, %v2531_v36  ;;  %v7193_v36 = vsel %vm2272_vm10, %v2529_v32, 0.0  ;;  %vm2547_vm10 = vweird.f32 %v7169_v26 }
 0x279   :  { %9092 = vst [vmem:[#allocation100_spill] sm:$0xff] %v7193_v36  ;;  %v2656_v0 = vmul.f32 %v4452_v63, %v7193_v36  ;;  %v4506_v63 = vunpack.i.l.bf16 %v4505_v25 }
 0x27a   :  { %v2533_v33 = vmul.f32 0.5, %v2532_v42  ;;  %v4455_v42 = vsel %vm1755_vm14, 1.0, %v8972_v16  ;;  %vm7243_vm14 = vmor %vm2546_vm9, %vm2547_vm10 }
 0x27c   :  { %v2534_v17 = vsub.f32 1.5, %v2533_v33  ;;  %v4454_v33 = vsel %vm1754_vm6, 1.0, %v8972_v16 }
 0x27e   :  { %v2535_v30 = vmul.f32 %v7164_v62, %v2534_v17 }
 0x280   :  { %2928 = vadd.xlane.f32.xlu2 %v2927_v59  ;;  %v2555_v59 = vmul.f32 %v7155_v20, %v2554_v14  ;;  %v7219_v14 = vld [vmem:[#allocation4 + $0x40] sm:$0xff] }
 0x281   :  { %v1992_v32 = vmul.f32 %v7219_v14, %v4501_v6 }
 0x282   :  { %v2559_v9 = vsel %vm7199_vm7, %v7155_v20, %v2555_v59  ;;  %v7230_v20 = vpop.permute.xlu0 %2706  ;;  %v7237_v59 = vld [vmem:[#allocation4 + $0x50] sm:$0xff]  ;;  %vm2273_vm7 = vcmp.gt.f32.partialorder %v6844_v56, 0.0 }
 0x283   :  { %4539 = vperm.xlu0 %4475, %v4538_v60   ;;  %v7203_v60 = vmax.f32 %v1509_v45, %v1510_v58  ;;  %v1993_v45 = vmul.f32 %v7214_v22, %v4502_v13  ;;  %v4543_v58 = vpack.i.bf16 %v4455_v42, %v4454_v33  ;;  %v7234_v53 = vsel %vm2275_vm11, %v2559_v9, 0.0 }
 0x284   :  { %9097 = vst [vmem:[#allocation101_spill] sm:$0xff] %v7234_v53  ;;  %v1994_v17 = vmul.f32 %v7237_v59, %v4506_v63  ;;  %v2659_v13 = vmul.f32 %v4455_v42, %v7234_v53  ;;  %v4507_v63 = vunpack.i.h.bf16 %v4505_v25  ;;  %v7368_v53 = vld [vmem:[#allocation4 + $0x68] sm:$0xff] }
 0x285   :  { %vm1540_vm13 = vcmp.ge.f32.partialorder %v7123_v31, %v7203_v60  ;;  %vm1541_vm6 = vcmp.ge.f32.partialorder %v7113_v37, %v7203_v60  ;;  %v2043_v6 = vsel %vm89_vm0, %v1993_v45, 0.0  ;;  %v2539_v37 = vsel %vm7226_vm12, %v7164_v62, %v2535_v30 }
 0x286   :  { %v1572_v42 = vsel %vm1540_vm13, %v5708_v15, 32  ;;  %v1573_v9 = vsel %vm1541_vm6, %v5715_v5, 32  ;;  %v2045_v45 = vsel %vm89_vm0, %v1994_v17, 0.0  ;;  %v7263_v62 = vsel %vm2273_vm7, %v2539_v37, 0.0 }
 0x287   :  { %9100 = vst [vmem:[#allocation102_spill] sm:$0xff] %v7263_v62  ;;  %v1709_v25 = vsel %vm1407_vm4, %v1572_v42, 2147483647  ;;  %v2657_v31 = vmul.f32 %v7176_v21, %v7263_v62  ;;  %v1995_v19 = vmul.f32 %v7269_v41, %v4507_v63  ;;  %vm1542_vm15 = vcmp.ge.f32.partialorder %v7128_v57, %v7203_v60  ;;  %v7287_v42 = vpop.permute.xlu1 %2712 }
 0x288   :  { %v1574_v21 = vsel %vm1542_vm15, %v5728_v47, 32  ;;  %vm1543_vm9 = vcmp.ge.f32.partialorder %v7137_v8, %v7203_v60 }
 0x289   :  { %4544 = vperm.xlu1 %4487, %v4543_v58   ;;  %v2047_v17 = vsel %vm89_vm0, %v1995_v19, 0.0  ;;  %v1713_v37 = vsel %vm1407_vm4, %v1574_v21, 2147483647 }
 0x28b   :  { %2769 = vperm.xlu0 %4475, %v2656_v0   ;;  %v2545_v0 = vmul.f32 %v7169_v26, %v2544_v4  ;;  %v2042_v4 = vsel %vm89_vm0, %v1992_v32, 0.0  ;;  %v1710_v32 = vsel %vm1407_vm4, %v1573_v9, 2147483647 }
 0x28c   :  { %v2044_v30 = vadd.f32 %v2043_v6, %v2042_v4  ;;  %vm1711_vm11 = vcmp.lt.s32.totalorder %v1709_v25, %v1710_v32 }
 0x28d   :  { %v2549_v56 = vsel %vm7243_vm14, %v7169_v26, %v2545_v0  ;;  %v7277_v0 = vpop.permute.xlu0 %2715  ;;  %v1712_v6 = vsel %vm1711_vm11, %v1709_v25, %v1710_v32 }
 0x28e   :  { %v7272_v58 = vsel %vm2274_vm8, %v2549_v56, 0.0  ;;  %vm1714_vm10 = vcmp.lt.s32.totalorder %v1712_v6, %v1713_v37  ;;  %vm2586_vm8 = vweird.f32 %v6737_v28 }
 0x28f   :  { %9101 = vst [vmem:[#allocation103_spill] sm:$0xff] %v7272_v58  ;;  %v2658_v26 = vmul.f32 %v4454_v33, %v7272_v58  ;;  %v1575_v33 = vsel %vm1543_vm9, %v5780_v18, 32  ;;  %v1715_v4 = vsel %vm1714_vm10, %v1712_v6, %v1713_v37  ;;  %v7292_v60 = vpop.permute.xlu1 %2721  ;;  %v7371_v58 = vld [vmem:[#allocation4 + $0x60] sm:$0xff] }
 0x290   :  { %v1716_v56 = vsel %vm1407_vm4, %v1575_v33, 2147483647 }
 0x291   :  { %2775 = vperm.xlu1 %4487, %v2658_v26   ;;  %vm1717_vm13 = vcmp.lt.s32.totalorder %v1715_v4, %v1716_v56 }
 0x293   :  { %2778 = vperm.xlu0 %4475, %v2659_v13   ;;  %v2046_v13 = vadd.f32 %v2045_v45, %v2044_v30  ;;  %v1718_v30 = vsel %vm1717_vm13, %v1715_v4, %v1716_v56  ;;  %vm2278_vm13 = vcmp.gt.f32.partialorder %v6737_v28, 0.0 }
 0x294   :  { %v1719_v8 = vrot.slane %v1718_v30, 4 }
 0x295   :  { %v2048_v11 = vadd.f32 %v2047_v17, %v2046_v13  ;;  %v7285_v63 = vpop.permute.xlu0 %2724  ;;  %v7294_v13 = vpop.permute.xlu2 %2727 }
 0x296   :  { %vm1720_vm12 = vcmp.lt.s32.totalorder %v1718_v30, %v1719_v8 }
 0x297   :  { %v2049_v57 = vrot.slane %v2048_v11, 4  ;;  %v1721_v19 = vsel %vm1720_vm12, %v1718_v30, %v1719_v8  ;;  %vm2566_vm12 = vweird.f32 %v6858_v24 }
 0x298   :  { %2772 = vperm.xlu2 %4486, %v2657_v31   ;;  %v1722_v21 = vrot.slane %v1721_v19, 2 }
 0x299   :  { %v2050_v9 = vadd.f32 %v2049_v57, %v2048_v11  ;;  %v7299_v11 = vpop.permute.xlu1 %2730  ;;  %v7304_v57 = vpop.eup %4614 }
 0x29a   :  { %vm1723_vm4 = vcmp.lt.s32.totalorder %v1721_v19, %v1722_v21  ;;  %vm2587_vm15 = vweird.f32 %v7304_v57 }
 0x29b   :  { %v2051_v45 = vrot.slane %v2050_v9, 2  ;;  %vm7361_vm11 = vmor %vm2586_vm8, %vm2587_vm15  ;;  %vm2276_vm8 = vcmp.gt.f32.partialorder %v6858_v24, 0.0 }
 0x29d   :  { %v7290_v25 = vpop.permute.xlu0 %4509  ;;  %v2052_v32 = vadd.f32 %v2051_v45, %v2050_v9  ;;  %v7302_v37 = vpop.permute.xlu2 %2736  ;;  %v1724_v9 = vsel %vm1723_vm4, %v1721_v19, %v1722_v21 }
 0x29e   :  { %v1725_v8 = vrot.slane %v1724_v9, 1 }
 0x29f   :  { %v2053_v31 = vrot.slane %v2052_v32, 1 }
 0x2a0   :  { %vm1726_vm6 = vcmp.lt.s32.totalorder %v1724_v9, %v1725_v8 }
 0x2a1   :  { %v2054_v17 = vadd.f32 %v2053_v31, %v2052_v32  ;;  %v7309_v56 = vpop.permute.xlu1 %4514 }
 0x2a3   :  { %v2883_v6 = vmul.f32 %v7214_v22, %v2054_v17  ;;  %v2884_v4 = vmul.f32 %v7237_v59, %v2054_v17  ;;  %v2581_v22 = vmul.f32 %v7304_v57, %v6737_v28  ;;  %v2882_v30 = vmul.f32 %v7219_v14, %v2054_v17  ;;  %v7318_v59 = vpop.eup %4616 }
 0x2a4   :  { %v2561_v14 = vmul.f32 %v7318_v59, %v6858_v24  ;;  %v2885_v2 = vmul.f32 %v7269_v41, %v2054_v17  ;;  %vm2567_vm4 = vweird.f32 %v7318_v59 }
 0x2a5   :  { %v7296_v26 = vpop.permute.xlu0 %2733  ;;  %v2933_v33 = vsel %vm89_vm0, %v2883_v6, 0.0  ;;  %v2936_v32 = vsel %vm89_vm0, %v2884_v4, 0.0  ;;  %v2582_v31 = vmul.f32 %v7304_v57, %v2581_v22  ;;  %v7321_v19 = vpop.permute.xlu2 %4519  ;;  %v2930_v21 = vsel %vm89_vm0, %v2882_v30, 0.0 }
 0x2a6   :  { %v7329_v4 = vpop.eup %4618 }
 0x2a7   :  { %v2571_v30 = vmul.f32 %v7329_v4, %v7081_v35  ;;  %v7339_v3 = vpop.eup %4620 }
 0x2a9   :  { %v7332_v22 = vpop.permute.xlu1 %2739 }
 0x2ad   :  { %v7311_v45 = vpop.permute.xlu0 %2742 }
 0x2b1   :  { %v7357_v43 = vpop.permute.xlu1 %2748 }
 0x2b5   :  { %v7327_v6 = vpop.permute.xlu0 %4524 }
 0x2bb   :  { %2931 = vadd.xlane.f32.xlu1 %v2930_v21  ;;  %v2562_v21 = vmul.f32 %v7318_v59, %v2561_v14  ;;  %v4511_v14 = vunpack.i.l.bf16 %v7290_v25 }
 0x2bd   :  { %2934 = vadd.xlane.f32.xlu0 %v2933_v33  ;;  %v1727_v33 = vsel %vm1726_vm6, %v1724_v9, %v1725_v8  ;;  %v2939_v9 = vsel %vm89_vm0, %v2885_v2, 0.0  ;;  %v2563_v17 = vmul.f32 0.5, %v2562_v21  ;;  %v4512_v2 = vunpack.i.h.bf16 %v7290_v25  ;;  %v7359_v40 = vpop.permute.xlu0 %2751  ;;  %vm7395_vm6 = vmor %vm2566_vm12, %vm2567_vm4 }
 0x2be   :  { %vm1758_vm14 = vcmp.eq.s32.totalorder %v5728_v47, %v1727_v33  ;;  %vm1759_vm7 = vcmp.eq.s32.totalorder %v5780_v18, %v1727_v33  ;;  %v7347_v47 = vpop.permute.xlu2 %2745  ;;  %v2572_v18 = vmul.f32 %v7329_v4, %v2571_v30  ;;  %vm1756_vm9 = vcmp.eq.s32.totalorder %v5708_v15, %v1727_v33 }
 0x2bf   :  { %v4458_v8 = vsel %vm1758_vm14, 1.0, %v8972_v16  ;;  %v7344_v41 = vsel %vm1759_vm7, 1.0, %v8972_v16  ;;  %vm1757_vm10 = vcmp.eq.s32.totalorder %v5715_v5, %v1727_v33  ;;  %v2564_v21 = vsub.f32 1.5, %v2563_v17 }
 0x2c0   :  { %v2573_v30 = vmul.f32 0.5, %v2572_v18  ;;  %v1996_v62 = vmul.f32 %v7371_v58, %v4511_v14  ;;  %v4456_v5 = vsel %vm1756_vm9, 1.0, %v8972_v16  ;;  %v4457_v33 = vsel %vm1757_vm10, 1.0, %v8972_v16 }
 0x2c1   :  { %2937 = vadd.xlane.f32.xlu2 %v2936_v32  ;;  %v2583_v32 = vmul.f32 0.5, %v2582_v31  ;;  %v2591_v31 = vmul.f32 %v7339_v3, %v6903_v46  ;;  %v4516_v18 = vunpack.i.l.bf16 %v7309_v56  ;;  %v2565_v28 = vmul.f32 %v7318_v59, %v2564_v21 }
 0x2c2   :  { %v2574_v17 = vsub.f32 1.5, %v2573_v30  ;;  %v2055_v55 = vsel %vm89_vm0, %v1996_v62, 0.0  ;;  %vm2576_vm14 = vweird.f32 %v7081_v35  ;;  %v4517_v21 = vunpack.i.h.bf16 %v7309_v56  ;;  %v7447_v56 = vld [vmem:[#allocation4 + $0x88] sm:$0xff] }
 0x2c3   :  { %v2584_v54 = vsub.f32 1.5, %v2583_v32  ;;  %2940 = vadd.xlane.f32.xlu1 %v2939_v9  ;;  %v4553_v32 = vpack.i.bf16 %v7344_v41, %v4458_v8  ;;  %v2592_v25 = vmul.f32 %v7339_v3, %v2591_v31  ;;  %vm2577_vm7 = vweird.f32 %v7329_v4 }
 0x2c4   :  { %vm7410_vm15 = vmor %vm2576_vm14, %vm2577_vm7  ;;  %vm2597_vm9 = vweird.f32 %v7339_v3  ;;  %vm2277_vm10 = vcmp.gt.f32.partialorder %v7081_v35, 0.0  ;;  %vm2279_vm12 = vcmp.gt.f32.partialorder %v6903_v46, 0.0  ;;  %vm2797_vm4 = vcmask 130112  }
 0x2c5   :  { %v2585_v9 = vmul.f32 %v7304_v57, %v2584_v54  ;;  %v1997_v54 = vmul.f32 %v7368_v53, %v4512_v2  ;;  %v2593_v31 = vmul.f32 0.5, %v2592_v25  ;;  %v7393_v36 = vpop.xlane.xlu0 %2907  ;;  %v7401_v25 = vld [vmem:[#allocation4 + $0x70] sm:$0xff]  ;;  %vm2805_vm14 = vcmask 261312  }
 0x2c6   :  { %v1998_v62 = vmul.f32 %v7401_v25, %v4516_v18  ;;  %v7415_v18 = vld [vmem:[#allocation4 + $0x78] sm:$0xff]  ;;  %vm2856_vm7 = vcmask 1041409  }
 0x2c7   :  { %v2589_v15 = vsel %vm7361_vm11, %v7304_v57, %v2585_v9  ;;  %v2056_v14 = vsel %vm89_vm0, %v1997_v54, 0.0  ;;  %v7388_v57 = vpop.permute.xlu2 %2754  ;;  %v7391_v9 = vpop.xlane.xlu1 %2913  ;;  %v2594_v54 = vsub.f32 1.5, %v2593_v31  ;;  %vm2596_vm11 = vweird.f32 %v6903_v46 }
 0x2c8   :  { %v7383_v2 = vsel %vm2278_vm13, %v2589_v15, 0.0  ;;  %9105 = vst [vmem:[#allocation105_spill] sm:$0xff] %v7391_v9  ;;  %v2575_v15 = vmul.f32 %v7329_v4, %v2574_v17  ;;  %v2058_v31 = vsel %vm89_vm0, %v1998_v62, 0.0  ;;  %vm7430_vm13 = vmor %vm2596_vm11, %vm2597_vm9  ;;  %v4521_v62 = vunpack.i.l.bf16 %v7321_v19 }
 0x2c9   :  { %9104 = vst [vmem:[#allocation104_spill] sm:$0xff] %v7383_v2  ;;  %v2662_v16 = vmul.f32 %v4458_v8, %v7383_v2  ;;  %v2057_v8 = vadd.f32 %v2056_v14, %v2055_v55  ;;  %v2569_v2 = vsel %vm7395_vm6, %v7318_v59, %v2565_v28  ;;  %v2595_v55 = vmul.f32 %v7339_v3, %v2594_v54 }
 0x2ca   :  { %v7420_v24 = vsel %vm2276_vm8, %v2569_v2, 0.0  ;;  %v2579_v59 = vsel %vm7410_vm15, %v7329_v4, %v2575_v15  ;;  %vm2801_vm6 = vcmask 195712   ;;  %vm2858_vm8 = vcmask 1042434  }
 0x2cb   :  { %v2059_v17 = vadd.f32 %v2058_v31, %v2057_v8  ;;  %9110 = vst [vmem:[#allocation106_spill] sm:$0xff] %v7420_v24  ;;  %v2660_v28 = vmul.f32 %v4456_v5, %v7420_v24  ;;  %v7439_v4 = vsel %vm2277_vm10, %v2579_v59, 0.0  ;;  %v2599_v15 = vsel %vm7430_vm13, %v7339_v3, %v2595_v55  ;;  %v7468_v24 = vld [vmem:[#allocation4 + $0xa8] sm:$0xff] }
 0x2cc   :  { %9114 = vst [vmem:[#allocation108_spill] sm:$0xff] %v7439_v4  ;;  %v2661_v54 = vmul.f32 %v4457_v33, %v7439_v4  ;;  %v7453_v59 = vsel %vm2279_vm12, %v2599_v15, 0.0  ;;  %vm2860_vm15 = vcmask 1043459   ;;  %vm2862_vm11 = vcmask 1044484  }
 0x2cd   :  { %v7437_v8 = vpop.xlane.xlu0 %2916  ;;  %9115 = vst [vmem:[#allocation109_spill] sm:$0xff] %v7453_v59  ;;  %v2663_v3 = vmul.f32 %v7344_v41, %v7453_v59  ;;  %v7471_v41 = vld [vmem:[#allocation4 + $0xa0] sm:$0xff]  ;;  %v7474_v59 = vld [vmem:[#allocation4 + $0x98] sm:$0xff]  ;;  %vm2864_vm9 = vcmask 1045509   ;;  %vm2866_vm10 = vcmask 1046534   ;;  %vm2868_vm13 = vcmask 1047559  }
 0x2ce   :  { %9113 = vst [vmem:[#allocation107_spill] sm:$0xff] %v7437_v8 }
 0x2cf   :  { %v7422_v14 = vpop.xlane.xlu2 %2910 }
 0x2d1   :  { %4554 = vperm.xlu0 %4475, %v4553_v32   ;;  %v4548_v32 = vpack.i.bf16 %v4457_v33, %v4456_v5  ;;  %v4526_v5 = vunpack.i.l.bf16 %v7327_v6 }
 0x2d5   :  { %v7465_v15 = vpop.permute.xlu0 %2760 }
 0x2d9   :  { %2787 = vperm.xlu0 %4475, %v2662_v16   ;;  %4549 = vperm.xlu2 %4486, %v4548_v32   ;;  %v1999_v16 = vmul.f32 %v7415_v18, %v4517_v21  ;;  %v4530_v32 = vpop.permute.xlu1 %4529  ;;  %v4522_v21 = vunpack.i.h.bf16 %v7321_v19 }
 0x2da   :  { %v4532_v33 = vunpack.i.h.bf16 %v4530_v32 }
 0x2db   :  { %v2060_v2 = vsel %vm89_vm0, %v1999_v16, 0.0  ;;  %v2001_v19 = vmul.f32 %v7447_v56, %v4522_v21  ;;  %v7450_v16 = vld [vmem:[#allocation4 + $0x80] sm:$0xff]  ;;  %v4527_v21 = vunpack.i.h.bf16 %v7327_v6 }
 0x2dc   :  { %v2061_v35 = vadd.f32 %v2060_v2, %v2059_v17  ;;  %v2000_v31 = vmul.f32 %v7450_v16, %v4521_v62  ;;  %2784 = vperm.xlu1 %4487, %v2661_v54   ;;  %v4531_v2 = vunpack.i.l.bf16 %v4530_v32  ;;  %v4535_v62 = vpop.permute.xlu2 %4534  ;;  %v2005_v32 = vmul.f32 %v7468_v24, %v4532_v33  ;;  %v7480_v33 = vld [vmem:[#allocation4 + $0xb0] sm:$0xff] }
 0x2dd   :  { %v2069_v55 = vsel %vm89_vm0, %v2001_v19, 0.0  ;;  %v2003_v6 = vmul.f32 %v7474_v59, %v4527_v21  ;;  %v4537_v50 = vunpack.i.h.bf16 %v4535_v62 }
 0x2de   :  { %v2062_v17 = vrot.slane %v2061_v35, 4  ;;  %v2068_v30 = vsel %vm89_vm0, %v2000_v31, 0.0  ;;  %v2004_v19 = vmul.f32 %v7471_v41, %v4531_v2 }
 0x2df   :  { %v2070_v31 = vadd.f32 %v2069_v55, %v2068_v30 }
 0x2e0   :  { %v2063_v4 = vadd.f32 %v2062_v17, %v2061_v35  ;;  %v2082_v35 = vsel %vm89_vm0, %v2005_v32, 0.0  ;;  %v2081_v17 = vsel %vm89_vm0, %v2004_v19, 0.0 }
 0x2e1   :  { %2781 = vperm.xlu2 %4486, %v2660_v28   ;;  %v7455_v28 = vld [vmem:[#allocation4 + $0x90] sm:$0xff]  ;;  %v7463_v54 = vpop.permute.xlu1 %2757  ;;  %v2083_v55 = vadd.f32 %v2082_v35, %v2081_v17 }
 0x2e2   :  { %v2002_v46 = vmul.f32 %v7455_v28, %v4526_v5  ;;  %v2064_v12 = vrot.slane %v2063_v4, 2  ;;  %v7483_v30 = vpop.xlane.xlu0 %2925 }
 0x2e3   :  { %9116 = vst [vmem:[#allocation110_spill] sm:$0xff] %v7483_v30 }
 0x2e4   :  { %v2071_v5 = vsel %vm89_vm0, %v2002_v46, 0.0  ;;  %v2073_v46 = vsel %vm89_vm0, %v2003_v6, 0.0  ;;  %v2065_v61 = vadd.f32 %v2064_v12, %v2063_v4 }
 0x2e5   :  { %v2072_v10 = vadd.f32 %v2071_v5, %v2070_v31  ;;  %v7487_v5 = vld [vmem:[#allocation4 + $0xb8] sm:$0xff] }
 0x2e6   :  { %v2007_v32 = vmul.f32 %v7487_v5, %v4537_v50  ;;  %v7495_v50 = vld [vmem:[#allocation4 + $0xc8] sm:$0xff] }
 0x2e7   :  { %v2074_v2 = vadd.f32 %v2073_v46, %v2072_v10 }
 0x2e8   :  { %v2086_v27 = vsel %vm89_vm0, %v2007_v32, 0.0 }
 0x2e9   :  { %2790 = vperm.xlu2 %4486, %v2663_v3   ;;  %v4536_v3 = vunpack.i.l.bf16 %v4535_v62  ;;  %v7485_v21 = vpop.permute.xlu1 %2766  ;;  %v2075_v31 = vrot.slane %v2074_v2, 4  ;;  %v2066_v62 = vrot.slane %v2065_v61, 1 }
 0x2eb   :  { %v2006_v52 = vmul.f32 %v7480_v33, %v4536_v3  ;;  %v2076_v8 = vadd.f32 %v2075_v31, %v2074_v2  ;;  %v2067_v35 = vadd.f32 %v2066_v62, %v2065_v61 }
 0x2ed   :  { %v2084_v19 = vsel %vm89_vm0, %v2006_v52, 0.0  ;;  %v2077_v46 = vrot.slane %v2076_v8, 2  ;;  %v2886_v49 = vmul.f32 %v7371_v58, %v2067_v35  ;;  %v2889_v58 = vmul.f32 %v7415_v18, %v2067_v35 }
 0x2ee   :  { %v2085_v6 = vadd.f32 %v2084_v19, %v2083_v55  ;;  %v4844_v55 = vld [vmem:[#allocation4 + $0xc0] sm:$0xff] }
 0x2ef   :  { %v2942_v32 = vsel %vm89_vm0, %v2886_v49, 0.0  ;;  %v2078_v2 = vadd.f32 %v2077_v46, %v2076_v8  ;;  %v2888_v8 = vmul.f32 %v7401_v25, %v2067_v35 }
 0x2f0   :  { %v2087_v3 = vadd.f32 %v2086_v27, %v2085_v6 }
 0x2f1   :  { %v7492_v17 = vpop.xlane.xlu1 %2922 }
 0x2f2   :  { %9117 = vst [vmem:[#allocation111_spill] sm:$0xff] %v7492_v17  ;;  %v2088_v30 = vrot.slane %v2087_v3, 4  ;;  %v2079_v17 = vrot.slane %v2078_v2, 1 }
 0x2f4   :  { %v2089_v27 = vadd.f32 %v2088_v30, %v2087_v3  ;;  %v2951_v3 = vsel %vm89_vm0, %v2889_v58, 0.0  ;;  %v2080_v46 = vadd.f32 %v2079_v17, %v2078_v2 }
 0x2f5   :  { %v4540_v10 = vpop.permute.xlu0 %4539 }
 0x2f6   :  { %v4542_v12 = vunpack.i.h.bf16 %v4540_v10  ;;  %v4541_v4 = vunpack.i.l.bf16 %v4540_v10  ;;  %v2090_v34 = vrot.slane %v2089_v27, 2 }
 0x2f8   :  { %v2009_v52 = vmul.f32 %v7495_v50, %v4542_v12  ;;  %v2008_v19 = vmul.f32 %v4844_v55, %v4541_v4 }
 0x2fa   :  { %v2095_v31 = vsel %vm89_vm0, %v2009_v52, 0.0  ;;  %v2094_v6 = vsel %vm89_vm0, %v2008_v19, 0.0  ;;  %v2091_v52 = vadd.f32 %v2090_v34, %v2089_v27  ;;  %v2891_v34 = vmul.f32 %v7447_v56, %v2080_v46 }
 0x2fb   :  { %v4545_v61 = vpop.permute.xlu1 %4544  ;;  %v2096_v9 = vadd.f32 %v2095_v31, %v2094_v6  ;;  %v2892_v31 = vmul.f32 %v7455_v28, %v2080_v46 }
 0x2fc   :  { %v4547_v62 = vunpack.i.h.bf16 %v4545_v61  ;;  %v4546_v10 = vunpack.i.l.bf16 %v4545_v61  ;;  %v2092_v6 = vrot.slane %v2091_v52, 1  ;;  %v2957_v28 = vsel %vm89_vm0, %v2891_v34, 0.0 }
 0x2fd   :  { %v2960_v2 = vsel %vm89_vm0, %v2892_v31, 0.0  ;;  %v9118_v34 = vlaneseq }
 0x2fe   :  { %v2011_v12 = vmul.f32 %v4845_v1, %v4547_v62  ;;  %v2010_v4 = vmul.f32 %v4846_v7, %v4546_v10  ;;  %v2948_v62 = vsel %vm89_vm0, %v2888_v8, 0.0  ;;  %v7509_v10 = vpop.permute.xlu2 %2763  ;;  %v2093_v27 = vadd.f32 %v2092_v6, %v2091_v52 }
 0x300   :  { %v2097_v49 = vsel %vm89_vm0, %v2010_v4, 0.0  ;;  %v2099_v19 = vsel %vm89_vm0, %v2011_v12, 0.0  ;;  %v2895_v58 = vmul.f32 %v7468_v24, %v2093_v27  ;;  %v2894_v56 = vmul.f32 %v7471_v41, %v2093_v27 }
 0x301   :  { %v2098_v30 = vadd.f32 %v2097_v49, %v2096_v9  ;;  %v2896_v41 = vmul.f32 %v7480_v33, %v2093_v27 }
 0x302   :  { %v2969_v8 = vsel %vm89_vm0, %v2895_v58, 0.0 }
 0x303   :  { %2943 = vadd.xlane.f32.xlu0 %v2942_v32  ;;  %v2100_v18 = vadd.f32 %v2099_v19, %v2098_v30  ;;  %v2887_v32 = vmul.f32 %v7368_v53, %v2067_v35  ;;  %v2890_v35 = vmul.f32 %v7450_v16, %v2080_v46  ;;  %v2966_v16 = vsel %vm89_vm0, %v2894_v56, 0.0 }
 0x305   :  { %v2101_v61 = vrot.slane %v2100_v18, 4  ;;  %v2945_v25 = vsel %vm89_vm0, %v2887_v32, 0.0  ;;  %v2954_v49 = vsel %vm89_vm0, %v2890_v35, 0.0 }
 0x306   :  { %2949 = vadd.xlane.f32.xlu1 %v2948_v62  ;;  %v7517_v4 = vpop.xlane.xlu2 %2919 }
 0x307   :  { %v2102_v9 = vadd.f32 %v2101_v61, %v2100_v18  ;;  %v2897_v18 = vmul.f32 %v7487_v5, %v2093_v27  ;;  %v7549_v27 = vpop.permute.xlu1 %2775 }
 0x309   :  { %v2103_v17 = vrot.slane %v2102_v9, 2  ;;  %v2975_v61 = vsel %vm89_vm0, %v2897_v18, 0.0 }
 0x30b   :  { %2952 = vadd.xlane.f32.xlu0 %v2951_v3  ;;  %v2104_v53 = vadd.f32 %v2103_v17, %v2102_v9  ;;  %v2893_v3 = vmul.f32 %v7474_v59, %v2080_v46  ;;  %v7531_v59 = vpop.permute.xlu0 %2769 }
 0x30d   :  { %v2105_v12 = vrot.slane %v2104_v53, 1  ;;  %v2963_v24 = vsel %vm89_vm0, %v2893_v3, 0.0 }
 0x30e   :  { %2958 = vadd.xlane.f32.xlu1 %v2957_v28  ;;  %v7525_v19 = vpop.xlane.xlu2 %2928  ;;  %v7554_v28 = vld [vmem:[#allocation4 + $0xe8] sm:$0xff] }
 0x30f   :  { %v2106_v30 = vadd.f32 %v2105_v12, %v2104_v53  ;;  %v7557_v12 = vld [vmem:[#allocation4 + $0xe0] sm:$0xff] }
 0x311   :  { %v2898_v52 = vmul.f32 %v4844_v55, %v2106_v30  ;;  %v2901_v62 = vmul.f32 %v4845_v1, %v2106_v30  ;;  %v2972_v55 = vsel %vm89_vm0, %v2896_v41, 0.0  ;;  %v2900_v46 = vmul.f32 %v4846_v7, %v2106_v30 }
 0x312   :  { %2946 = vadd.xlane.f32.xlu2 %v2945_v25  ;;  %v2899_v6 = vmul.f32 %v7495_v50, %v2106_v30 }
 0x313   :  { %2961 = vadd.xlane.f32.xlu0 %v2960_v2  ;;  %v2978_v32 = vsel %vm89_vm0, %v2898_v52, 0.0  ;;  %v2987_v31 = vsel %vm89_vm0, %v2901_v62, 0.0  ;;  %v2984_v9 = vsel %vm89_vm0, %v2900_v46, 0.0  ;;  %v7540_v1 = vpop.permute.xlu0 %2778  ;;  %v7547_v2 = vand.u32 127, %v9118_v34  ;;  %v7578_v62 = vld [vmem:[#allocation4 + $0xf0] sm:$0xff] }
 0x314   :  { %v2981_v33 = vsel %vm89_vm0, %v2899_v6, 0.0 }
 0x315   :  { %v7552_v35 = vadd.s32 4294967288, %v7547_v2  ;;  %v2794_v18 = vperm.slane %v7093_v39, %v7547_v2  ;;  %v7571_v41 = vadd.s32 4294967280, %v7547_v2  ;;  %v7583_v39 = vadd.s32 4294967272, %v7547_v2 }
 0x316   :  { %2967 = vadd.xlane.f32.xlu1 %v2966_v16  ;;  %v7535_v5 = vpop.permute.xlu2 %2772 }
 0x317   :  { %v2796_v56 = vperm.slane %v7189_v44, %v7552_v35  ;;  %v2807_v44 = vperm.slane %v7132_v51, %v7547_v2  ;;  %v2814_v51 = vperm.slane %v7292_v60, %v7547_v2  ;;  %v2810_v34 = vperm.slane %v7277_v0, %v7571_v41 }
 0x319   :  { %v2798_v46 = vsel %vm2797_vm4, %v2796_v56, %v2794_v18  ;;  %v2829_v18 = vperm.slane %v7357_v43, %v7552_v35  ;;  %v2828_v43 = vperm.slane %v7347_v47, %v7547_v2  ;;  %v2840_v47 = vperm.slane %v7485_v21, %v7583_v39 }
 0x31a   :  { %2955 = vadd.xlane.f32.xlu2 %v2954_v49 }
 0x31b   :  { %2970 = vadd.xlane.f32.xlu0 %v2969_v8  ;;  %v2808_v8 = vperm.slane %v7287_v42, %v7552_v35 }
 0x31d   :  { %v2809_v6 = vsel %vm2797_vm4, %v2808_v8, %v2807_v44  ;;  %v2824_v8 = vperm.slane %v7332_v22, %v7571_v41 }
 0x31e   :  { %2976 = vadd.xlane.f32.xlu1 %v2975_v61  ;;  %v7575_v61 = vld [vmem:[#allocation4 + $0xf8] sm:$0xff] }
 0x322   :  { %2964 = vadd.xlane.f32.xlu2 %v2963_v24 }
 0x323   :  { %2979 = vadd.xlane.f32.xlu0 %v2978_v32 }
 0x326   :  { %2985 = vadd.xlane.f32.xlu1 %v2984_v9  ;;  %v2815_v9 = vperm.slane %v7285_v63, %v7552_v35  ;;  %v2811_v63 = vsel %vm2801_vm6, %v2810_v34, %v2809_v6 }
 0x32a   :  { %2973 = vadd.xlane.f32.xlu2 %v2972_v55 }
 0x32b   :  { %2988 = vadd.xlane.f32.xlu0 %v2987_v31 }
 0x32e   :  { %v7568_v32 = vpop.xlane.xlu1 %2931 }
 0x330   :  { %v7544_v17 = vpop.xlane.xlu0 %2934 }
 0x332   :  { %2982 = vadd.xlane.f32.xlu2 %v2981_v33 }
 0x334   :  { %v7542_v25 = vpop.xlane.xlu2 %2937 }
 0x336   :  { %v7623_v44 = vpop.xlane.xlu1 %2940 }
 0x33c   :  { %v4550_v7 = vpop.permute.xlu2 %4549 }
 0x33d   :  { %v4552_v53 = vunpack.i.h.bf16 %v4550_v7  ;;  %v4551_v50 = vunpack.i.l.bf16 %v4550_v7  ;;  %v2804_v7 = vperm.slane %v7230_v20, %v7583_v39  ;;  %v2812_v20 = vperm.slane %v7158_v48, %v7583_v39 }
 0x33e   :  { %v2819_v48 = vperm.slane %v7299_v11, %v7583_v39  ;;  %v2843_v11 = vperm.slane %v7535_v5, %v7552_v35  ;;  %v2830_v5 = vsel %vm2797_vm4, %v2829_v18, %v2828_v43 }
 0x33f   :  { %v2013_v58 = vmul.f32 %v7554_v28, %v4552_v53  ;;  %v2012_v49 = vmul.f32 %v7557_v12, %v4551_v50  ;;  %v2821_v53 = vperm.slane %v7296_v26, %v7547_v2  ;;  %v2816_v26 = vsel %vm2797_vm4, %v2815_v9, %v2814_v51 }
 0x341   :  { %v2108_v3 = vsel %vm89_vm0, %v2013_v58, 0.0  ;;  %v2107_v16 = vsel %vm89_vm0, %v2012_v49, 0.0  ;;  %v2800_v58 = vperm.slane %v6930_v29, %v7571_v41  ;;  %v2822_v49 = vperm.slane %v7302_v37, %v7552_v35 }
 0x342   :  { %v2109_v31 = vadd.f32 %v2108_v3, %v2107_v16 }
 0x343   :  { %v4555_v30 = vpop.permute.xlu0 %4554  ;;  %v2802_v0 = vsel %vm2801_vm6, %v2800_v58, %v2798_v46  ;;  %v2823_v3 = vsel %vm2797_vm4, %v2822_v49, %v2821_v53  ;;  %v2831_v46 = vperm.slane %v7359_v40, %v7571_v41  ;;  %v2833_v53 = vperm.slane %v7388_v57, %v7583_v39 }
 0x344   :  { %v4557_v52 = vunpack.i.h.bf16 %v4555_v30  ;;  %v4556_v24 = vunpack.i.l.bf16 %v4555_v30  ;;  %v2806_v29 = vsel %vm2805_vm14, %v2804_v7, %v2802_v0  ;;  %v2817_v30 = vperm.slane %v7294_v13, %v7571_v41  ;;  %v2782_v37 = vpop.permute.xlu2 %2781 }
 0x345   :  { %v2836_v13 = vperm.slane %v7465_v15, %v7552_v35  ;;  %v2835_v15 = vperm.slane %v7463_v54, %v7547_v2  ;;  %v2849_v57 = vperm.slane %v2782_v37, %v7547_v2 }
 0x346   :  { %v2015_v42 = vmul.f32 %v7575_v61, %v4557_v52  ;;  %v2014_v55 = vmul.f32 %v7578_v62, %v4556_v24  ;;  %v2813_v52 = vsel %vm2805_vm14, %v2812_v20, %v2811_v63  ;;  %v2826_v24 = vperm.slane %v7311_v45, %v7583_v39 }
 0x347   :  { %v2818_v22 = vsel %vm2801_vm6, %v2817_v30, %v2816_v26  ;;  %v2842_v45 = vperm.slane %v7531_v59, %v7547_v2  ;;  %v2837_v59 = vsel %vm2797_vm4, %v2836_v13, %v2835_v15  ;;  %v2857_v54 = vsel %vm2856_vm7, %v2813_v52, %v2806_v29 }
 0x348   :  { %v2110_v33 = vsel %vm89_vm0, %v2014_v55, 0.0  ;;  %v2112_v60 = vsel %vm89_vm0, %v2015_v42, 0.0  ;;  %v2825_v55 = vsel %vm2801_vm6, %v2824_v8, %v2823_v3  ;;  %v2820_v51 = vsel %vm2805_vm14, %v2819_v48, %v2818_v22 }
 0x349   :  { %v2111_v50 = vadd.f32 %v2110_v33, %v2109_v31  ;;  %v2845_v31 = vperm.slane %v7549_v27, %v7571_v41  ;;  %v2827_v40 = vsel %vm2805_vm14, %v2826_v24, %v2825_v55  ;;  %v2832_v33 = vsel %vm2801_vm6, %v2831_v46, %v2830_v5 }
 0x34a   :  { %v2838_v27 = vperm.slane %v7509_v10, %v7571_v41  ;;  %v2844_v7 = vsel %vm2797_vm4, %v2843_v11, %v2842_v45  ;;  %v2859_v34 = vsel %vm2858_vm8, %v2820_v51, %v2857_v54  ;;  %v2847_v63 = vperm.slane %v7540_v1, %v7583_v39 }
 0x34b   :  { %v2113_v56 = vadd.f32 %v2112_v60, %v2111_v50  ;;  %v2846_v50 = vsel %vm2801_vm6, %v2845_v31, %v2844_v7  ;;  %v2861_v21 = vsel %vm2860_vm15, %v2827_v40, %v2859_v34  ;;  %v2788_v49 = vpop.permute.xlu0 %2787  ;;  %v2834_v10 = vsel %vm2805_vm14, %v2833_v53, %v2832_v33 }
 0x34c   :  { %v2839_v60 = vsel %vm2801_vm6, %v2838_v27, %v2837_v59  ;;  %v2791_v20 = vpop.permute.xlu2 %2790  ;;  %v2848_v29 = vsel %vm2805_vm14, %v2847_v63, %v2846_v50  ;;  %v2852_v30 = vperm.slane %v2788_v49, %v7571_v41  ;;  %v2863_v48 = vsel %vm2862_vm11, %v2834_v10, %v2861_v21  ;;  %v9119_v59 = vld [vmem:[#allocation25_spill] sm:$0xff]  ;;  %v9127_v49 = vld [vmem:[#allocation50_spill] sm:$0xff]  ;;  %v9128_v10 = vld [vmem:[#allocation111_spill] sm:$0xff] }
 0x34d   :  { %v2114_v16 = vrot.slane %v2113_v56, 4 }
 0x34e   :  { %v2785_v0 = vpop.permute.xlu1 %2784 }
 0x34f   :  { %v2115_v42 = vadd.f32 %v2114_v16, %v2113_v56  ;;  %v2841_v56 = vsel %vm2805_vm14, %v2840_v47, %v2839_v60  ;;  %v2850_v8 = vperm.slane %v2785_v0, %v7552_v35  ;;  %v2854_v16 = vperm.slane %v2791_v20, %v7583_v39  ;;  %v9120_v47 = vld [vmem:[#allocation105_spill] sm:$0xff]  ;;  %v9126_v60 = vld [vmem:[#allocation38_spill] sm:$0xff] }
 0x350   :  { %v2865_v24 = vsel %vm2864_vm9, %v2841_v56, %v2863_v48  ;;  %v3006_v63 = vmul.f32 %v7517_v4, %v9126_v60  ;;  %v3007_v56 = vmul.f32 %v9128_v10, %v9127_v49 }
 0x351   :  { %v2116_v6 = vrot.slane %v2115_v42, 2  ;;  %v2851_v52 = vsel %vm2797_vm4, %v2850_v8, %v2849_v57 }
 0x352   :  { %v2853_v37 = vsel %vm2801_vm6, %v2852_v30, %v2851_v52  ;;  %v9132_v52 = vld [vmem:[#allocation43_spill] sm:$0xff] }
 0x353   :  { %v2117_v9 = vadd.f32 %v2116_v6, %v2115_v42  ;;  %v2855_v13 = vsel %vm2805_vm14, %v2854_v16, %v2853_v37  ;;  %v3009_v48 = vmul.f32 %v7525_v19, %v9132_v52  ;;  %v9133_v37 = vld [vmem:[#allocation54_spill] sm:$0xff] }
 0x355   :  { %v2118_v58 = vrot.slane %v2117_v9, 1 }
 0x357   :  { %v2119_v26 = vadd.f32 %v2118_v58, %v2117_v9  ;;  %v3004_v9 = vmul.f32 %v9120_v47, %v9119_v59  ;;  %v9125_v58 = vld [vmem:[#allocation107_spill] sm:$0xff] }
 0x359   :  { %v2904_v1 = vmul.f32 %v7578_v62, %v2119_v26  ;;  %v2902_v3 = vmul.f32 %v7557_v12, %v2119_v26  ;;  %v2867_v62 = vsel %vm2866_vm10, %v2848_v29, %v2865_v24  ;;  %v2905_v55 = vmul.f32 %v7575_v61, %v2119_v26 }
 0x35a   :  { %v2869_v12 = vsel %vm2868_vm13, %v2855_v13, %v2867_v62  ;;  %v2903_v46 = vmul.f32 %v7554_v28, %v2119_v26  ;;  %v3002_v28 = vmul.f32 %v7393_v36, %v6015_v23  ;;  %v3003_v61 = vmul.f32 %v7422_v14, %v6114_v38  ;;  %v9124_v14 = vld [vmem:[#allocation32_spill] sm:$0xff] }
 0x35b   :  { %v2996_v22 = vsel %vm89_vm0, %v2904_v1, 0.0  ;;  %v2990_v18 = vsel %vm89_vm0, %v2902_v3, 0.0  ;;  %v2871_v42 = vsel %vm89_vm0, %v2869_v12, 0.0  ;;  %v2999_v11 = vsel %vm89_vm0, %v2905_v55, 0.0  ;;  %v9130_v1 = vld [vmem:[#allocation40_spill] sm:$0xff]  ;;  %v9131_v3 = vld [vmem:[#allocation110_spill] sm:$0xff] }
 0x35c   :  { %2997 = vadd.xlane.f32.xlu0 %v2996_v22  ;;  %2991 = vadd.xlane.f32.xlu2 %v2990_v18  ;;  %v2993_v45 = vsel %vm89_vm0, %v2903_v46, 0.0  ;;  %v3005_v21 = vmul.f32 %v9125_v58, %v9124_v14  ;;  %v3008_v16 = vmul.f32 %v9131_v3, %v9130_v1  ;;  %v3010_v24 = vmul.f32 %v7568_v32, %v9133_v37  ;;  %v9134_v32 = vld [vmem:[#allocation53_spill] sm:$0xff]  ;;  %v9140_v1 = vld [vmem:[#allocation83_spill] sm:$0xff] }
 0x35d   :  { %2872 = vadd.xlane.f32.xlu1 %v2871_v42  ;;  %v3011_v46 = vmul.f32 %v7544_v17, %v9134_v32  ;;  %v9138_v14 = vld [vmem:[#allocation57_spill] sm:$0xff] }
 0x364   :  { %3000 = vadd.xlane.f32.xlu2 %v2999_v11  ;;  %v9135_v11 = vld [vmem:[#allocation73_spill] sm:$0xff] }
 0x365   :  { %2994 = vadd.xlane.f32.xlu1 %v2993_v45  ;;  %v3012_v45 = vmul.f32 %v7542_v25, %v9135_v11  ;;  %v9143_v11 = vld [vmem:[#allocation86_spill] sm:$0xff] }
 0x376   :  { %v2944_v22 = vpop.xlane.xlu0 %2943 }
 0x379   :  { %v7680_v43 = vpop.xlane.xlu1 %2949 }
 0x37e   :  { %v2953_v47 = vpop.xlane.xlu0 %2952 }
 0x37f   :  { %v3017_v3 = vmul.f32 %v2953_v47, %v9140_v1 }
 0x381   :  { %v7682_v15 = vpop.xlane.xlu1 %2958 }
 0x385   :  { %v2947_v18 = vpop.xlane.xlu2 %2946 }
 0x386   :  { %v3015_v58 = vmul.f32 %v2947_v18, %v9138_v14 }
 0x389   :  { %v7684_v31 = vpop.xlane.xlu1 %2967 }
 0x391   :  { %v7686_v6 = vpop.xlane.xlu1 %2976 }
 0x399   :  { %v7688_v51 = vpop.xlane.xlu1 %2985 }
 0x3d0   :  { %v7690_v40 = vpop.xlane.xlu1 %2872 }
 0x3d1   :  { %v3035_v5 = vperm.slane %v7690_v40, 0  ;;  %v3036_v23 = vperm.slane %v7690_v40, 1  ;;  %v3037_v30 = vperm.slane %v7690_v40, 2  ;;  %v3038_v25 = vperm.slane %v7690_v40, 3 }
 0x3d3   :  { %v3052_v54 = vmul.f32 %v3035_v5, %v3003_v61  ;;  %v3051_v33 = vmul.f32 %v3035_v5, %v3002_v28  ;;  %v3053_v27 = vmul.f32 %v3035_v5, %v3004_v9  ;;  %v3054_v20 = vmul.f32 %v3035_v5, %v3005_v21  ;;  %v9136_v28 = vld [vmem:[#allocation68_spill] sm:$0xff]  ;;  %v2956_v9 = vpop.xlane.xlu2 %2955 }
 0x3d4   :  { %v3055_v0 = vmul.f32 %v3036_v23, %v3006_v63  ;;  %v3056_v26 = vmul.f32 %v3036_v23, %v3007_v56  ;;  %v3057_v13 = vmul.f32 %v3036_v23, %v3008_v16  ;;  %v3058_v62 = vmul.f32 %v3036_v23, %v3009_v48  ;;  %v9139_v21 = vld [vmem:[#allocation60_spill] sm:$0xff]  ;;  %v2962_v56 = vpop.xlane.xlu0 %2961  ;;  %v9141_v16 = vld [vmem:[#allocation85_spill] sm:$0xff] }
 0x3d5   :  { %v7701_v34 = vsel %vm5745_vm1, %v3052_v54, -1e+30  ;;  %v7705_v50 = vsel %vm5761_vm2, %v3051_v33, -1e+30  ;;  %v7712_v36 = vsel %vm5766_vm3, %v3053_v27, -1e+30  ;;  %v3059_v12 = vmul.f32 %v3037_v30, %v3010_v24 }
 0x3d6   :  { %3151 = vperm.xlu0 %4475, %v7701_v34   ;;  %3148 = vperm.xlu1 %4487, %v7705_v50   ;;  %v7723_v8 = vsel %vm5806_vm5, %v3054_v20, -1e+30  ;;  %v7727_v29 = vsel %vm5761_vm2, %v3055_v0, -1e+30  ;;  %v7733_v4 = vsel %vm5745_vm1, %v3056_v26, -1e+30  ;;  %v3013_v61 = vmul.f32 %v7623_v44, %v9136_v28 }
 0x3d7   :  { %3154 = vperm.xlu2 %4486, %v7712_v36   ;;  %v7745_v42 = vsel %vm5766_vm3, %v3057_v13, -1e+30  ;;  %v7749_v55 = vsel %vm5806_vm5, %v3058_v62, -1e+30  ;;  %v7755_v19 = vsel %vm5761_vm2, %v3059_v12, -1e+30  ;;  %v3060_v5 = vmul.f32 %v3037_v30, %v3011_v46 }
 0x3d8   :  { %v3061_v59 = vmul.f32 %v3037_v30, %v3012_v45  ;;  %v3062_v54 = vmul.f32 %v3037_v30, %v3013_v61  ;;  %v9137_v27 = vld [vmem:[#allocation77_spill] sm:$0xff]  ;;  %v3016_v60 = vmul.f32 %v7680_v43, %v9139_v21  ;;  %v3064_v49 = vmul.f32 %v3038_v25, %v3015_v58  ;;  %v9142_v48 = vld [vmem:[#allocation84_spill] sm:$0xff]  ;;  %v9144_v28 = vld [vmem:[#allocation87_spill] sm:$0xff] }
 0x3d9   :  { %v7766_v33 = vsel %vm5745_vm1, %v3060_v5, -1e+30  ;;  %v3014_v23 = vmul.f32 %v2944_v22, %v9137_v27  ;;  %v3039_v30 = vperm.slane %v7690_v40, 4  ;;  %v3018_v52 = vmul.f32 %v2956_v9, %v9141_v16  ;;  %v9145_v5 = vld [vmem:[#allocation93_spill] sm:$0xff]  ;;  %v9147_v58 = vld [vmem:[#allocation95_spill] sm:$0xff] }
 0x3da   :  { %v7770_v17 = vsel %vm5766_vm3, %v3061_v59, -1e+30  ;;  %v7777_v44 = vsel %vm5806_vm5, %v3062_v54, -1e+30  ;;  %v3065_v10 = vmul.f32 %v3038_v25, %v3016_v60  ;;  %v7790_v26 = vsel %vm5745_vm1, %v3064_v49, -1e+30 }
 0x3db   :  { %v3063_v63 = vmul.f32 %v3038_v25, %v3014_v23  ;;  %v2965_v20 = vpop.xlane.xlu2 %2964  ;;  %v3019_v37 = vmul.f32 %v7682_v15, %v9142_v48  ;;  %v3066_v24 = vmul.f32 %v3038_v25, %v3017_v3  ;;  %v3067_v22 = vmul.f32 %v3039_v30, %v3018_v52  ;;  %v9148_v60 = vld [vmem:[#allocation94_spill] sm:$0xff]  ;;  %v9149_v52 = vld [vmem:[#allocation100_spill] sm:$0xff] }
 0x3dc   :  { %v7797_v43 = vsel %vm5766_vm3, %v3065_v10, -1e+30  ;;  %v2971_v12 = vpop.xlane.xlu0 %2970  ;;  %v3040_v15 = vperm.slane %v7690_v40, 5  ;;  %v3020_v45 = vmul.f32 %v2962_v56, %v9143_v11  ;;  %v3021_v61 = vmul.f32 %v2965_v20, %v9144_v28  ;;  %v2995_v28 = vpop.xlane.xlu1 %2994 }
 0x3dd   :  { %v7786_v0 = vsel %vm5761_vm2, %v3063_v63, -1e+30  ;;  %v3068_v18 = vmul.f32 %v3039_v30, %v3019_v37  ;;  %v7806_v13 = vsel %vm5806_vm5, %v3066_v24, -1e+30  ;;  %v7810_v62 = vsel %vm5761_vm2, %v3067_v22, -1e+30 }
 0x3de   :  { %3157 = vperm.xlu0 %4475, %v7723_v8   ;;  %3160 = vperm.xlu1 %4487, %v7727_v29   ;;  %v3022_v59 = vmul.f32 %v7684_v31, %v9145_v5  ;;  %v3069_v47 = vmul.f32 %v3039_v30, %v3020_v45  ;;  %v3070_v9 = vmul.f32 %v3039_v30, %v3021_v61  ;;  %v9146_v31 = vld [vmem:[#allocation92_spill] sm:$0xff]  ;;  %v3041_v16 = vperm.slane %v7690_v40, 6  ;;  %v9150_v37 = vld [vmem:[#allocation102_spill] sm:$0xff]  ;;  %v9151_v22 = vld [vmem:[#allocation103_spill] sm:$0xff] }
 0x3df   :  { %3163 = vperm.xlu2 %4486, %v7733_v4   ;;  %v7815_v46 = vsel %vm5745_vm1, %v3068_v18, -1e+30  ;;  %v3023_v14 = vmul.f32 %v2971_v12, %v9146_v31  ;;  %v3025_v63 = vmul.f32 %v7686_v6, %v9148_v60  ;;  %v3028_v18 = vmul.f32 %v7688_v51, %v9151_v22  ;;  %v9152_v61 = vld [vmem:[#allocation106_spill] sm:$0xff]  ;;  %v9154_v31 = vld [vmem:[#allocation101_spill] sm:$0xff] }
 0x3e0   :  { %v3071_v54 = vmul.f32 %v3040_v15, %v3022_v59  ;;  %v7826_v25 = vsel %vm5766_vm3, %v3069_v47, -1e+30  ;;  %v7830_v27 = vsel %vm5806_vm5, %v3070_v9, -1e+30  ;;  %v9153_v9 = vld [vmem:[#allocation108_spill] sm:$0xff] }
 0x3e1   :  { %v3072_v56 = vmul.f32 %v3040_v15, %v3023_v14  ;;  %v3074_v30 = vmul.f32 %v3040_v15, %v3025_v63  ;;  %v3077_v45 = vmul.f32 %v3041_v16, %v3028_v18 }
 0x3e2   :  { %v7835_v23 = vsel %vm5761_vm2, %v3071_v54, -1e+30  ;;  %v3031_v54 = vmul.f32 %v2995_v28, %v9153_v9 }
 0x3e3   :  { %v2974_v32 = vpop.xlane.xlu2 %2973  ;;  %v7845_v1 = vsel %vm5745_vm1, %v3072_v56, -1e+30  ;;  %v7855_v6 = vsel %vm5806_vm5, %v3074_v30, -1e+30  ;;  %v7876_v51 = vsel %vm5766_vm3, %v3077_v45, -1e+30 }
 0x3e4   :  { %v3024_v21 = vmul.f32 %v2974_v32, %v9147_v58  ;;  %v2980_v49 = vpop.xlane.xlu0 %2979  ;;  %v3042_v58 = vperm.slane %v7690_v40, 7  ;;  %v9155_v56 = vld [vmem:[#allocation104_spill] sm:$0xff]  ;;  %v9156_v30 = vld [vmem:[#allocation109_spill] sm:$0xff] }
 0x3e5   :  { %v3026_v48 = vmul.f32 %v2980_v49, %v9149_v52 }
 0x3e6   :  { %3166 = vperm.xlu0 %4475, %v7745_v42   ;;  %3169 = vperm.xlu1 %4487, %v7749_v55   ;;  %v3073_v20 = vmul.f32 %v3040_v15, %v3024_v21 }
 0x3e7   :  { %3172 = vperm.xlu2 %4486, %v7755_v19   ;;  %v3075_v32 = vmul.f32 %v3041_v16, %v3026_v48 }
 0x3e8   :  { %v7849_v3 = vsel %vm5766_vm3, %v3073_v20, -1e+30 }
 0x3e9   :  { %v7866_v59 = vsel %vm5761_vm2, %v3075_v32, -1e+30 }
 0x3eb   :  { %v2983_v10 = vpop.xlane.xlu2 %2982 }
 0x3ec   :  { %v3027_v24 = vmul.f32 %v2983_v10, %v9150_v37  ;;  %v2989_v11 = vpop.xlane.xlu0 %2988  ;;  %v3080_v10 = vmul.f32 %v3042_v58, %v3031_v54 }
 0x3ed   :  { %v3029_v14 = vmul.f32 %v2989_v11, %v9154_v31 }
 0x3ee   :  { %3175 = vperm.xlu0 %4475, %v7766_v33   ;;  %3178 = vperm.xlu1 %4487, %v7770_v17   ;;  %v3076_v15 = vmul.f32 %v3041_v16, %v3027_v24  ;;  %v7895_v40 = vsel %vm5745_vm1, %v3080_v10, -1e+30 }
 0x3ef   :  { %3181 = vperm.xlu2 %4486, %v7777_v44   ;;  %v3078_v60 = vmul.f32 %v3041_v16, %v3029_v14 }
 0x3f0   :  { %v7870_v47 = vsel %vm5745_vm1, %v3076_v15, -1e+30  ;;  %vm4420_vm1 = vcmask 15360  }
 0x3f1   :  { %v7886_v48 = vsel %vm5806_vm5, %v3078_v60, -1e+30 }
 0x3f3   :  { %v2992_v12 = vpop.xlane.xlu2 %2991 }
 0x3f4   :  { %v3030_v5 = vmul.f32 %v2992_v12, %v9152_v61  ;;  %v2998_v63 = vpop.xlane.xlu0 %2997 }
 0x3f5   :  { %v3032_v20 = vmul.f32 %v2998_v63, %v9155_v56 }
 0x3f6   :  { %3184 = vperm.xlu0 %4475, %v7786_v0   ;;  %3187 = vperm.xlu1 %4487, %v7790_v26   ;;  %v3079_v21 = vmul.f32 %v3042_v58, %v3030_v5 }
 0x3f7   :  { %3190 = vperm.xlu2 %4486, %v7797_v43   ;;  %v3081_v16 = vmul.f32 %v3042_v58, %v3032_v20 }
 0x3f8   :  { %v7890_v37 = vsel %vm5761_vm2, %v3079_v21, -1e+30 }
 0x3f9   :  { %9157 = vst [vmem:[#allocation25_spill] sm:$0xff] %v7890_v37  ;;  %v7901_v22 = vsel %vm5766_vm3, %v3081_v16, -1e+30 }
 0x3fa   :  { %9158 = vst [vmem:[#allocation105_spill] sm:$0xff] %v7901_v22 }
 0x3fb   :  { %v3001_v49 = vpop.xlane.xlu2 %3000 }
 0x3fc   :  { %v3033_v52 = vmul.f32 %v3001_v49, %v9156_v30 }
 0x3fe   :  { %3193 = vperm.xlu0 %4475, %v7806_v13   ;;  %3196 = vperm.xlu1 %4487, %v7810_v62   ;;  %v3082_v24 = vmul.f32 %v3042_v58, %v3033_v52 }
 0x3ff   :  { %3199 = vperm.xlu2 %4486, %v7815_v46  }
 0x400   :  { %v7905_v53 = vsel %vm5806_vm5, %v3082_v24, -1e+30 }
 0x401   :  { %9159 = vst [vmem:[#allocation36_spill] sm:$0xff] %v7905_v53 }
 0x406   :  { %3202 = vperm.xlu0 %4475, %v7826_v25   ;;  %3205 = vperm.xlu1 %4487, %v7830_v27  }
 0x407   :  { %3208 = vperm.xlu2 %4486, %v7835_v23  }
 0x40e   :  { %3211 = vperm.xlu0 %4475, %v7845_v1   ;;  %3214 = vperm.xlu1 %4487, %v7849_v3  }
 0x40f   :  { %3217 = vperm.xlu2 %4486, %v7855_v6  }
 0x416   :  { %3220 = vperm.xlu0 %4475, %v7866_v59   ;;  %3223 = vperm.xlu1 %4487, %v7870_v47  }
 0x417   :  { %3226 = vperm.xlu2 %4486, %v7876_v51  }
 0x41e   :  { %3229 = vperm.xlu0 %4475, %v7886_v48   ;;  %3232 = vperm.xlu1 %4487, %v7890_v37  }
 0x41f   :  { %3235 = vperm.xlu2 %4486, %v7895_v40  }
 0x426   :  { %3238 = vperm.xlu0 %4475, %v7901_v22   ;;  %3241 = vperm.xlu1 %4487, %v7905_v53  }
 0x431   :  { %v3155_v7 = vpop.permute.xlu2 %3154 }
 0x432   :  { %v3246_v38 = vperm.slane %v3155_v7, %v7571_v41 }
 0x439   :  { %v3164_v18 = vpop.permute.xlu2 %3163 }
 0x43a   :  { %v3251_v14 = vperm.slane %v3164_v18, %v7552_v35 }
 0x441   :  { %v3173_v28 = vpop.permute.xlu2 %3172 }
 0x448   :  { %v3152_v12 = vpop.permute.xlu0 %3151  ;;  %v3149_v32 = vpop.permute.xlu1 %3148 }
 0x449   :  { %v3244_v15 = vperm.slane %v3152_v12, %v7552_v35  ;;  %v3243_v11 = vperm.slane %v3149_v32, %v7547_v2  ;;  %v3182_v60 = vpop.permute.xlu2 %3181 }
 0x44b   :  { %v3245_v45 = vsel %vm2797_vm4, %v3244_v15, %v3243_v11 }
 0x44c   :  { %v3247_v57 = vsel %vm2801_vm6, %v3246_v38, %v3245_v45 }
 0x450   :  { %v3158_v61 = vpop.permute.xlu0 %3157  ;;  %v3161_v5 = vpop.permute.xlu1 %3160 }
 0x451   :  { %v3248_v9 = vperm.slane %v3158_v61, %v7583_v39  ;;  %v3250_v31 = vperm.slane %v3161_v5, %v7547_v2  ;;  %v3191_v24 = vpop.permute.xlu2 %3190 }
 0x453   :  { %v3249_v54 = vsel %vm2805_vm14, %v3248_v9, %v3247_v57  ;;  %v3252_v10 = vsel %vm2797_vm4, %v3251_v14, %v3250_v31 }
 0x458   :  { %v3167_v58 = vpop.permute.xlu0 %3166  ;;  %v3170_v21 = vpop.permute.xlu1 %3169 }
 0x459   :  { %v3253_v63 = vperm.slane %v3167_v58, %v7571_v41  ;;  %v3255_v49 = vperm.slane %v3170_v21, %v7583_v39  ;;  %v3200_v12 = vpop.permute.xlu2 %3199 }
 0x45a   :  { %v3272_v53 = vperm.slane %v3200_v12, %v7552_v35 }
 0x45b   :  { %v3254_v56 = vsel %vm2801_vm6, %v3253_v63, %v3252_v10 }
 0x45c   :  { %v3256_v20 = vsel %vm2805_vm14, %v3255_v49, %v3254_v56 }
 0x45d   :  { %v3299_v30 = vsel %vm2856_vm7, %v3256_v20, %v3249_v54  ;;  %v3257_v54 = vperm.slane %v3173_v28, %v7547_v2 }
 0x460   :  { %v3176_v52 = vpop.permute.xlu0 %3175  ;;  %v3179_v16 = vpop.permute.xlu1 %3178 }
 0x461   :  { %v3209_v11 = vpop.permute.xlu2 %3208  ;;  %v3258_v14 = vperm.slane %v3176_v52, %v7552_v35  ;;  %v3260_v21 = vperm.slane %v3179_v16, %v7571_v41 }
 0x462   :  { %v3278_v22 = vperm.slane %v3209_v11, %v7547_v2 }
 0x463   :  { %v3259_v63 = vsel %vm2797_vm4, %v3258_v14, %v3257_v54 }
 0x464   :  { %v3261_v16 = vsel %vm2801_vm6, %v3260_v21, %v3259_v63 }
 0x468   :  { %v3185_v7 = vpop.permute.xlu0 %3184  ;;  %v3188_v18 = vpop.permute.xlu1 %3187 }
 0x469   :  { %v3218_v5 = vpop.permute.xlu2 %3217  ;;  %v3264_v49 = vperm.slane %v3185_v7, %v7547_v2  ;;  %v3265_v10 = vperm.slane %v3188_v18, %v7552_v35 }
 0x470   :  { %v3194_v32 = vpop.permute.xlu0 %3193  ;;  %v3197_v15 = vpop.permute.xlu1 %3196 }
 0x471   :  { %v3227_v58 = vpop.permute.xlu2 %3226  ;;  %v3271_v20 = vperm.slane %v3197_v15, %v7547_v2  ;;  %v3266_v15 = vsel %vm2797_vm4, %v3265_v10, %v3264_v49  ;;  %v3269_v12 = vperm.slane %v3194_v32, %v7583_v39 }
 0x473   :  { %v3273_v54 = vsel %vm2797_vm4, %v3272_v53, %v3271_v20  ;;  %v3288_v53 = vperm.slane %v3227_v58, %v7571_v41 }
 0x478   :  { %v3203_v38 = vpop.permute.xlu0 %3202  ;;  %v3206_v45 = vpop.permute.xlu1 %3205 }
 0x479   :  { %v3274_v52 = vperm.slane %v3203_v38, %v7571_v41  ;;  %v3267_v38 = vperm.slane %v3191_v24, %v7571_v41  ;;  %v3276_v21 = vperm.slane %v3206_v45, %v7583_v39  ;;  %v3236_v63 = vpop.permute.xlu2 %3235 }
 0x47a   :  { %v3293_v20 = vperm.slane %v3236_v63, %v7552_v35 }
 0x480   :  { %v3212_v57 = vpop.permute.xlu0 %3211  ;;  %v3215_v61 = vpop.permute.xlu1 %3214 }
 0x481   :  { %v3279_v56 = vperm.slane %v3212_v57, %v7552_v35  ;;  %v3281_v14 = vperm.slane %v3215_v61, %v7571_v41  ;;  %v3262_v57 = vperm.slane %v3182_v60, %v7583_v39 }
 0x483   :  { %v3280_v11 = vsel %vm2797_vm4, %v3279_v56, %v3278_v22  ;;  %v3263_v61 = vsel %vm2805_vm14, %v3262_v57, %v3261_v16  ;;  %v3283_v22 = vperm.slane %v3218_v5, %v7583_v39 }
 0x484   :  { %v3282_v60 = vsel %vm2801_vm6, %v3281_v14, %v3280_v11  ;;  %v3300_v56 = vsel %vm2858_vm8, %v3263_v61, %v3299_v30 }
 0x488   :  { %v3221_v9 = vpop.permute.xlu0 %3220  ;;  %v3224_v31 = vpop.permute.xlu1 %3223 }
 0x489   :  { %v3285_v7 = vperm.slane %v3221_v9, %v7547_v2  ;;  %v3286_v18 = vperm.slane %v3224_v31, %v7552_v35  ;;  %v3275_v9 = vsel %vm2801_vm6, %v3274_v52, %v3273_v54  ;;  %v3268_v31 = vsel %vm2801_vm6, %v3267_v38, %v3266_v15 }
 0x48a   :  { %v3270_v24 = vsel %vm2805_vm14, %v3269_v12, %v3268_v31  ;;  %v3277_v10 = vsel %vm2805_vm14, %v3276_v21, %v3275_v9  ;;  %v3284_v52 = vsel %vm2805_vm14, %v3283_v22, %v3282_v60 }
 0x48b   :  { %v3287_v49 = vsel %vm2797_vm4, %v3286_v18, %v3285_v7  ;;  %v3301_v5 = vsel %vm2860_vm15, %v3270_v24, %v3300_v56 }
 0x48c   :  { %v3289_v16 = vsel %vm2801_vm6, %v3288_v53, %v3287_v49  ;;  %v3302_v18 = vsel %vm2862_vm11, %v3277_v10, %v3301_v5 }
 0x48d   :  { %v3303_v15 = vsel %vm2864_vm9, %v3284_v52, %v3302_v18 }
 0x490   :  { %v3230_v37 = vpop.permute.xlu0 %3229  ;;  %v3233_v28 = vpop.permute.xlu1 %3232 }
 0x491   :  { %v3290_v32 = vperm.slane %v3230_v37, %v7583_v39  ;;  %v3292_v45 = vperm.slane %v3233_v28, %v7547_v2 }
 0x493   :  { %v3291_v7 = vsel %vm2805_vm14, %v3290_v32, %v3289_v16  ;;  %v3294_v30 = vsel %vm2797_vm4, %v3293_v20, %v3292_v45 }
 0x494   :  { %v3304_v11 = vsel %vm2866_vm10, %v3291_v7, %v3303_v15 }
 0x498   :  { %v3239_v14 = vpop.permute.xlu0 %3238  ;;  %v3242_v37 = vpop.permute.xlu1 %3241 }
 0x499   :  { %v3295_v58 = vperm.slane %v3239_v14, %v7571_v41  ;;  %v3297_v28 = vperm.slane %v3242_v37, %v7583_v39 }
 0x49b   :  { %v3296_v57 = vsel %vm2801_vm6, %v3295_v58, %v3294_v30 }
 0x49c   :  { %v3298_v12 = vsel %vm2805_vm14, %v3297_v28, %v3296_v57 }
 0x49d   :  { %v3305_v38 = vsel %vm2868_vm13, %v3298_v12, %v3304_v11 }
 0x49e   :  { %v3307_v54 = vsel %vm89_vm0, %v3305_v38, -inf }
 0x49f   :  { %3308 = vmax.xlane.f32.xlu2 %v3307_v54 }
 0x512   :  { %v7973_v21 = vpop.xlane.xlu2 %3308 }
 0x513   :  { %v7976_v61 = vperm.slane %v7973_v21, 2  ;;  %v3311_v9 = vperm.slane %v7973_v21, 0  ;;  %v7983_v60 = vperm.slane %v7973_v21, 4  ;;  %v3312_v56 = vperm.slane %v7973_v21, 1 }
 0x514   :  { %v8021_v30 = vperm.slane %v7973_v21, 6 }
 0x515   :  { %v3337_v31 = vsub.f32 %v7770_v17, %v7976_v61  ;;  %v3327_v63 = vsub.f32 %v7705_v50, %v3311_v9  ;;  %v3328_v32 = vsub.f32 %v7701_v34, %v3311_v9  ;;  %v3344_v24 = vsub.f32 %v7815_v46, %v7983_v60 }
 0x516   :  { %v3329_v53 = vsub.f32 %v7712_v36, %v3311_v9  ;;  %v3330_v10 = vsub.f32 %v7723_v8, %v3311_v9  ;;  %v7991_v50 = vperm.slane %v7973_v21, 5  ;;  %v3331_v16 = vsub.f32 %v7727_v29, %v3312_v56 }
 0x517   :  { %v3379_v49 = vmul.f32 1.442695, %v3337_v31  ;;  %v3359_v22 = vmul.f32 1.442695, %v3327_v63  ;;  %v3361_v45 = vmul.f32 1.442695, %v3328_v32  ;;  %v3332_v14 = vsub.f32 %v7733_v4, %v3312_v56 }
 0x518   :  { %v3393_v17 = vmul.f32 1.442695, %v3344_v24  ;;  %v3363_v20 = vmul.f32 1.442695, %v3329_v53  ;;  %v3365_v46 = vmul.f32 1.442695, %v3330_v10  ;;  %v3347_v36 = vsub.f32 %v7835_v23, %v7991_v50 }
 0x519   :  { %4622 = vpow2.f32 %v3379_v49  ;;  %v3367_v5 = vmul.f32 1.442695, %v3331_v16  ;;  %v3369_v23 = vmul.f32 1.442695, %v3332_v14  ;;  %v3350_v28 = vsub.f32 %v7855_v6, %v7991_v50 }
 0x51a   :  { %4624 = vpow2.f32 %v3359_v22  ;;  %v3399_v37 = vmul.f32 1.442695, %v3347_v36  ;;  %v3333_v4 = vsub.f32 %v7745_v42, %v3312_v56  ;;  %v3334_v18 = vsub.f32 %v7749_v55, %v3312_v56 }
 0x51b   :  { %4626 = vpow2.f32 %v3361_v45  ;;  %v3405_v57 = vmul.f32 1.442695, %v3350_v28  ;;  %v3353_v42 = vsub.f32 %v7876_v51, %v8021_v30  ;;  %v3335_v38 = vsub.f32 %v7755_v19, %v7976_v61 }
 0x51c   :  { %4628 = vpow2.f32 %v3393_v17  ;;  %v3371_v15 = vmul.f32 1.442695, %v3333_v4  ;;  %v3373_v11 = vmul.f32 1.442695, %v3334_v18  ;;  %v3336_v54 = vsub.f32 %v7766_v33, %v7976_v61 }
 0x51d   :  { %4630 = vpow2.f32 %v3363_v20  ;;  %v8039_v9 = vperm.slane %v7973_v21, 7  ;;  %v3411_v31 = vmul.f32 1.442695, %v3353_v42  ;;  %v3375_v51 = vmul.f32 1.442695, %v3335_v38 }
 0x51e   :  { %4632 = vpow2.f32 %v3365_v46  ;;  %v3314_v32 = vperm.slane %v7973_v21, 3  ;;  %v3377_v19 = vmul.f32 1.442695, %v3336_v54  ;;  %v3338_v24 = vsub.f32 %v7777_v44, %v7976_v61 }
 0x51f   :  { %v7994_v34 = vpop.eup %4622  ;;  %4634 = vpow2.f32 %v3399_v37  ;;  %v3356_v22 = vsub.f32 %v7895_v40, %v8039_v9  ;;  %v3345_v28 = vsub.f32 %v7826_v25, %v7983_v60  ;;  %v3349_v25 = vsub.f32 %v7849_v3, %v7991_v50 }
 0x520   :  { %v7996_v52 = vpop.eup %4624  ;;  %3486 = vperm.xlu2 %4486, %v7994_v34   ;;  %4636 = vpow2.f32 %v3367_v5  ;;  %v3339_v53 = vsub.f32 %v7786_v0, %v3314_v32  ;;  %v3381_v45 = vmul.f32 1.442695, %v3338_v24  ;;  %v3340_v44 = vsub.f32 %v7790_v26, %v3314_v32 }
 0x521   :  { %3456 = vperm.xlu0 %4475, %v7996_v52   ;;  %v8002_v8 = vpop.eup %4626  ;;  %4638 = vpow2.f32 %v3369_v23  ;;  %v3417_v21 = vmul.f32 1.442695, %v3356_v22  ;;  %v3341_v0 = vsub.f32 %v7797_v43, %v3314_v32  ;;  %v3342_v26 = vsub.f32 %v7806_v13, %v3314_v32 }
 0x522   :  { %3459 = vperm.xlu1 %4487, %v8002_v8   ;;  %v8007_v7 = vpop.eup %4628  ;;  %4640 = vpow2.f32 %v3405_v57  ;;  %v3383_v40 = vmul.f32 1.442695, %v3339_v53  ;;  %v3385_v61 = vmul.f32 1.442695, %v3340_v44  ;;  %v3343_v43 = vsub.f32 %v7810_v62, %v7983_v60  ;;  %v9163_v53 = vld [vmem:[#allocation105_spill] sm:$0xff] }
 0x523   :  { %v8009_v58 = vpop.eup %4630  ;;  %4642 = vpow2.f32 %v3371_v15  ;;  %v3387_v36 = vmul.f32 1.442695, %v3341_v0  ;;  %v3389_v14 = vmul.f32 1.442695, %v3342_v26  ;;  %v3346_v13 = vsub.f32 %v7830_v27, %v7983_v60 }
 0x524   :  { %v8015_v29 = vpop.eup %4632  ;;  %4644 = vpow2.f32 %v3373_v11  ;;  %v3391_v5 = vmul.f32 1.442695, %v3343_v43  ;;  %v3395_v62 = vmul.f32 1.442695, %v3345_v28  ;;  %v3348_v15 = vsub.f32 %v7845_v1, %v7991_v50 }
 0x525   :  { %v8023_v12 = vpop.eup %4634  ;;  %4646 = vpow2.f32 %v3411_v31  ;;  %v3397_v18 = vmul.f32 1.442695, %v3346_v13  ;;  %v3403_v11 = vmul.f32 1.442695, %v3349_v25  ;;  %v3351_v38 = vsub.f32 %v7866_v59, %v8021_v30  ;;  %v9161_v59 = vld [vmem:[#allocation25_spill] sm:$0xff] }
 0x526   :  { %v8025_v6 = vpop.eup %4636  ;;  %4648 = vpow2.f32 %v3375_v51  ;;  %v3401_v27 = vmul.f32 1.442695, %v3348_v15  ;;  %v3352_v1 = vsub.f32 %v7870_v47, %v8021_v30  ;;  %v3354_v51 = vsub.f32 %v7886_v48, %v8021_v30  ;;  %v9164_v48 = vld [vmem:[#allocation36_spill] sm:$0xff] }
 0x527   :  { %v8031_v55 = vpop.eup %4638  ;;  %4650 = vpow2.f32 %v3377_v19  ;;  %v3407_v3 = vmul.f32 1.442695, %v3351_v38  ;;  %v3355_v32 = vsub.f32 %v9161_v59, %v8039_v9  ;;  %v3358_v30 = vsub.f32 %v9164_v48, %v8039_v9 }
 0x528   :  { %3507 = vperm.xlu2 %4486, %v8007_v7   ;;  %v8041_v63 = vpop.eup %4640  ;;  %4652 = vpow2.f32 %v3417_v21  ;;  %v3409_v54 = vmul.f32 1.442695, %v3352_v1  ;;  %v3413_v47 = vmul.f32 1.442695, %v3354_v51  ;;  %v3357_v21 = vsub.f32 %v9163_v53, %v8039_v9 }
 0x529   :  { %3462 = vperm.xlu0 %4475, %v8009_v58   ;;  %v8043_v49 = vpop.eup %4642  ;;  %4654 = vpow2.f32 %v3381_v45  ;;  %v3415_v22 = vmul.f32 1.442695, %v3355_v32  ;;  %v3421_v44 = vmul.f32 1.442695, %v3358_v30 }
 0x52a   :  { %3465 = vperm.xlu1 %4487, %v8015_v29   ;;  %v8050_v33 = vpop.eup %4644  ;;  %4656 = vpow2.f32 %v3383_v40  ;;  %v3419_v45 = vmul.f32 1.442695, %v3357_v21 }
 0x52b   :  { %v8056_v10 = vpop.eup %4646  ;;  %4658 = vpow2.f32 %v3385_v61 }
 0x52c   :  { %v8058_v17 = vpop.eup %4648  ;;  %4660 = vpow2.f32 %v3387_v36 }
 0x52d   :  { %v8062_v56 = vpop.eup %4650  ;;  %4662 = vpow2.f32 %v3389_v14 }
 0x52e   :  { %v8067_v20 = vpop.eup %4652  ;;  %4664 = vpow2.f32 %v3391_v5 }
 0x52f   :  { %9160 = vst [vmem:[#allocation11_spill] sm:$0xff] %v8067_v20  ;;  %v8069_v46 = vpop.eup %4654  ;;  %4666 = vpow2.f32 %v3395_v62 }
 0x530   :  { %3516 = vperm.xlu2 %4486, %v8023_v12   ;;  %v8073_v16 = vpop.eup %4656  ;;  %4668 = vpow2.f32 %v3397_v18 }
 0x531   :  { %3468 = vperm.xlu0 %4475, %v8025_v6   ;;  %v8079_v37 = vpop.eup %4658  ;;  %4670 = vpow2.f32 %v3401_v27 }
 0x532   :  { %3471 = vperm.xlu1 %4487, %v8031_v55   ;;  %v8082_v23 = vpop.eup %4660  ;;  %4672 = vpow2.f32 %v3403_v11 }
 0x533   :  { %v8089_v4 = vpop.eup %4662  ;;  %4674 = vpow2.f32 %v3407_v3 }
 0x534   :  { %v8092_v57 = vpop.eup %4664  ;;  %4676 = vpow2.f32 %v3409_v54 }
 0x535   :  { %v8099_v60 = vpop.eup %4666  ;;  %4678 = vpow2.f32 %v3413_v47 }
 0x536   :  { %v8102_v42 = vpop.eup %4668  ;;  %4680 = vpow2.f32 %v3415_v22 }
 0x537   :  { %v8109_v50 = vpop.eup %4670  ;;  %4682 = vpow2.f32 %v3419_v45 }
 0x538   :  { %3525 = vperm.xlu2 %4486, %v8041_v63   ;;  %v8112_v31 = vpop.eup %4672  ;;  %4684 = vpow2.f32 %v3421_v44 }
 0x539   :  { %3474 = vperm.xlu0 %4475, %v8043_v49   ;;  %v8119_v19 = vpop.eup %4674 }
 0x53a   :  { %3477 = vperm.xlu1 %4487, %v8050_v33   ;;  %v8122_v24 = vpop.eup %4676 }
 0x53b   :  { %9162 = vst [vmem:[#allocation30_spill] sm:$0xff] %v8122_v24  ;;  %v8129_v40 = vpop.eup %4678 }
 0x53c   :  { %v8132_v0 = vpop.eup %4680 }
 0x53d   :  { %9165 = vst [vmem:[#allocation32_spill] sm:$0xff] %v8132_v0  ;;  %v8135_v61 = vpop.eup %4682 }
 0x53e   :  { %v8138_v36 = vpop.eup %4684 }
 0x53f   :  { %9166 = vst [vmem:[#allocation107_spill] sm:$0xff] %v8138_v36 }
 0x540   :  { %3534 = vperm.xlu2 %4486, %v8056_v10  }
 0x541   :  { %3480 = vperm.xlu0 %4475, %v8058_v17  }
 0x542   :  { %3483 = vperm.xlu1 %4487, %v8062_v56  }
 0x548   :  { %3543 = vperm.xlu2 %4486, %v8067_v20  }
 0x549   :  { %3489 = vperm.xlu0 %4475, %v8069_v46  }
 0x54a   :  { %3492 = vperm.xlu1 %4487, %v8073_v16  }
 0x551   :  { %3495 = vperm.xlu0 %4475, %v8079_v37  }
 0x552   :  { %3498 = vperm.xlu1 %4487, %v8082_v23  }
 0x559   :  { %3501 = vperm.xlu0 %4475, %v8089_v4  }
 0x55a   :  { %3504 = vperm.xlu1 %4487, %v8092_v57  }
 0x561   :  { %3510 = vperm.xlu0 %4475, %v8099_v60  }
 0x562   :  { %3513 = vperm.xlu1 %4487, %v8102_v42  }
 0x569   :  { %3519 = vperm.xlu0 %4475, %v8109_v50  }
 0x56a   :  { %3522 = vperm.xlu1 %4487, %v8112_v31  }
 0x571   :  { %3528 = vperm.xlu0 %4475, %v8119_v19  }
 0x572   :  { %3531 = vperm.xlu1 %4487, %v8122_v24  }
 0x579   :  { %3537 = vperm.xlu0 %4475, %v8129_v40  }
 0x57a   :  { %3540 = vperm.xlu1 %4487, %v8132_v0   ;;  %v3487_v44 = vpop.permute.xlu2 %3486 }
 0x581   :  { %3546 = vperm.xlu0 %4475, %v8135_v61  }
 0x582   :  { %3549 = vperm.xlu1 %4487, %v8138_v36  }
 0x593   :  { %v3457_v9 = vpop.permute.xlu0 %3456 }
 0x594   :  { %v3551_v26 = vperm.slane %v3457_v9, %v7547_v2  ;;  %v3460_v43 = vpop.permute.xlu1 %3459 }
 0x595   :  { %v3552_v14 = vperm.slane %v3460_v43, %v7552_v35  ;;  %v3508_v43 = vpop.permute.xlu2 %3507 }
 0x597   :  { %v3553_v5 = vsel %vm2797_vm4, %v3552_v14, %v3551_v26 }
 0x59b   :  { %v3463_v28 = vpop.permute.xlu0 %3462 }
 0x59c   :  { %v3554_v13 = vperm.slane %v3463_v28, %v7571_v41  ;;  %v3466_v62 = vpop.permute.xlu1 %3465 }
 0x59d   :  { %v3556_v18 = vperm.slane %v3466_v62, %v7583_v39  ;;  %v3517_v28 = vpop.permute.xlu2 %3516 }
 0x59e   :  { %v3555_v15 = vsel %vm2801_vm6, %v3554_v13, %v3553_v5 }
 0x59f   :  { %v3557_v25 = vsel %vm2805_vm14, %v3556_v18, %v3555_v15 }
 0x5a3   :  { %v3469_v27 = vpop.permute.xlu0 %3468 }
 0x5a4   :  { %v3558_v11 = vperm.slane %v3469_v27, %v7547_v2  ;;  %v3472_v38 = vpop.permute.xlu1 %3471 }
 0x5a5   :  { %v3559_v1 = vperm.slane %v3472_v38, %v7552_v35  ;;  %v3526_v15 = vpop.permute.xlu2 %3525 }
 0x5a7   :  { %v3560_v3 = vsel %vm2797_vm4, %v3559_v1, %v3558_v11 }
 0x5ab   :  { %v3475_v54 = vpop.permute.xlu0 %3474 }
 0x5ac   :  { %v3561_v51 = vperm.slane %v3475_v54, %v7571_v41  ;;  %v3478_v59 = vpop.permute.xlu1 %3477 }
 0x5ad   :  { %v3563_v32 = vperm.slane %v3478_v59, %v7583_v39  ;;  %v3535_v1 = vpop.permute.xlu2 %3534 }
 0x5ae   :  { %v3562_v47 = vsel %vm2801_vm6, %v3561_v51, %v3560_v3  ;;  %v3568_v51 = vperm.slane %v3487_v44, %v7571_v41 }
 0x5af   :  { %v3564_v22 = vsel %vm2805_vm14, %v3563_v32, %v3562_v47  ;;  %v3580_v32 = vperm.slane %v3508_v43, %v7552_v35  ;;  %v3586_v47 = vperm.slane %v3517_v28, %v7547_v2 }
 0x5b0   :  { %v3607_v53 = vsel %vm2856_vm7, %v3564_v22, %v3557_v25 }
 0x5b3   :  { %v3481_v21 = vpop.permute.xlu0 %3480 }
 0x5b4   :  { %v3484_v48 = vpop.permute.xlu1 %3483  ;;  %v3565_v3 = vperm.slane %v3481_v21, %v7547_v2 }
 0x5b5   :  { %v3566_v25 = vperm.slane %v3484_v48, %v7552_v35 }
 0x5b7   :  { %v3567_v0 = vsel %vm2797_vm4, %v3566_v25, %v3565_v3 }
 0x5b8   :  { %v3569_v25 = vsel %vm2801_vm6, %v3568_v51, %v3567_v0  ;;  %v3591_v0 = vperm.slane %v3526_v15, %v7583_v39 }
 0x5bb   :  { %v3490_v30 = vpop.permute.xlu0 %3489 }
 0x5bc   :  { %v3493_v45 = vpop.permute.xlu1 %3492  ;;  %v3570_v48 = vperm.slane %v3490_v30, %v7583_v39 }
 0x5bd   :  { %v3572_v22 = vperm.slane %v3493_v45, %v7547_v2 }
 0x5be   :  { %v3571_v3 = vsel %vm2805_vm14, %v3570_v48, %v3569_v25 }
 0x5c3   :  { %v3496_v9 = vpop.permute.xlu0 %3495 }
 0x5c4   :  { %v3499_v26 = vpop.permute.xlu1 %3498  ;;  %v3573_v54 = vperm.slane %v3496_v9, %v7552_v35 }
 0x5c5   :  { %v3575_v21 = vperm.slane %v3499_v26, %v7571_v41 }
 0x5c6   :  { %v3574_v44 = vsel %vm2797_vm4, %v3573_v54, %v3572_v22  ;;  %v3608_v22 = vsel %vm2858_vm8, %v3571_v3, %v3607_v53 }
 0x5cb   :  { %v3502_v14 = vpop.permute.xlu0 %3501 }
 0x5cc   :  { %v3505_v5 = vpop.permute.xlu1 %3504 }
 0x5cd   :  { %v3579_v20 = vperm.slane %v3505_v5, %v7547_v2  ;;  %v3577_v5 = vperm.slane %v3502_v14, %v7583_v39 }
 0x5cf   :  { %v3581_v30 = vsel %vm2797_vm4, %v3580_v32, %v3579_v20  ;;  %v3596_v20 = vperm.slane %v3535_v1, %v7571_v41 }
 0x5d3   :  { %v3511_v13 = vpop.permute.xlu0 %3510 }
 0x5d4   :  { %v3514_v62 = vpop.permute.xlu1 %3513  ;;  %v3582_v9 = vperm.slane %v3511_v13, %v7571_v41  ;;  %v3544_v13 = vpop.permute.xlu2 %3543 }
 0x5d5   :  { %v3584_v26 = vperm.slane %v3514_v62, %v7583_v39  ;;  %v3601_v51 = vperm.slane %v3544_v13, %v7552_v35  ;;  %v9168_v13 = vld [vmem:[#allocation10_spill] sm:$0xff] }
 0x5d6   :  { %v3669_v3 = vsub.f32 0.0, %v9168_v13  ;;  %v9176_v13 = vld [vmem:[#allocation47_spill] sm:$0xff] }
 0x5db   :  { %v3520_v18 = vpop.permute.xlu0 %3519 }
 0x5dc   :  { %v3523_v27 = vpop.permute.xlu1 %3522  ;;  %v3587_v59 = vperm.slane %v3520_v18, %v7552_v35 }
 0x5dd   :  { %v3589_v18 = vperm.slane %v3523_v27, %v7571_v41  ;;  %v3576_v27 = vsel %vm2801_vm6, %v3575_v21, %v3574_v44 }
 0x5de   :  { %v3588_v24 = vsel %vm2797_vm4, %v3587_v59, %v3586_v47  ;;  %v3578_v62 = vsel %vm2805_vm14, %v3577_v5, %v3576_v27  ;;  %v9169_v27 = vld [vmem:[#allocation35_spill] sm:$0xff] }
 0x5e3   :  { %v3529_v11 = vpop.permute.xlu0 %3528 }
 0x5e4   :  { %v3532_v38 = vpop.permute.xlu1 %3531  ;;  %v3593_v28 = vperm.slane %v3529_v11, %v7547_v2  ;;  %v3590_v11 = vsel %vm2801_vm6, %v3589_v18, %v3588_v24 }
 0x5e5   :  { %v3594_v43 = vperm.slane %v3532_v38, %v7552_v35  ;;  %v3583_v38 = vsel %vm2801_vm6, %v3582_v9, %v3581_v30  ;;  %v3592_v21 = vsel %vm2805_vm14, %v3591_v0, %v3590_v11  ;;  %v9167_v30 = vld [vmem:[#allocation33_spill] sm:$0xff] }
 0x5e6   :  { %v3585_v32 = vsel %vm2805_vm14, %v3584_v26, %v3583_v38  ;;  %v3668_v26 = vsub.f32 0.0, %v9167_v30  ;;  %v3679_v38 = vsub.f32 0.0, %v9169_v27  ;;  %v9177_v27 = vld [vmem:[#allocation20_spill] sm:$0xff] }
 0x5e7   :  { %v3595_v54 = vsel %vm2797_vm4, %v3594_v43, %v3593_v28 }
 0x5e8   :  { %v3597_v24 = vsel %vm2801_vm6, %v3596_v20, %v3595_v54  ;;  %v3700_v11 = vmul.f32 1.442695, %v3668_v26  ;;  %v3702_v54 = vmul.f32 1.442695, %v3669_v3  ;;  %v3722_v0 = vmul.f32 1.442695, %v3679_v38 }
 0x5e9   :  { %v9171_v20 = vld [vmem:[#allocation13_spill] sm:$0xff]  ;;  %v3674_v3 = vsub.f32 0.0, %v9176_v13  ;;  %v3675_v38 = vsub.f32 0.0, %v9177_v27 }
 0x5ea   :  { %4686 = vpow2.f32 %v3700_v11 }
 0x5eb   :  { %v3538_v36 = vpop.permute.xlu0 %3537  ;;  %4688 = vpow2.f32 %v3702_v54 }
 0x5ec   :  { %v3541_v45 = vpop.permute.xlu1 %3540  ;;  %v3598_v59 = vperm.slane %v3538_v36, %v7583_v39  ;;  %v3609_v36 = vsel %vm2860_vm15, %v3578_v62, %v3608_v22  ;;  %v3670_v62 = vsub.f32 0.0, %v9171_v20  ;;  %4690 = vpow2.f32 %v3722_v0 }
 0x5ed   :  { %v3600_v14 = vperm.slane %v3541_v45, %v7547_v2  ;;  %v3610_v43 = vsel %vm2862_vm11, %v3585_v32, %v3609_v36  ;;  %v9172_v32 = vld [vmem:[#allocation72_spill] sm:$0xff]  ;;  %v3712_v0 = vmul.f32 1.442695, %v3674_v3  ;;  %v9180_v3 = vld [vmem:[#allocation91_spill] sm:$0xff] }
 0x5ee   :  { %v3599_v1 = vsel %vm2805_vm14, %v3598_v59, %v3597_v24  ;;  %v3611_v53 = vsel %vm2864_vm9, %v3592_v21, %v3610_v43  ;;  %v3704_v24 = vmul.f32 1.442695, %v3670_v62  ;;  %v9173_v21 = vld [vmem:[#allocation49_spill] sm:$0xff]  ;;  %v3714_v62 = vmul.f32 1.442695, %v3675_v38 }
 0x5ef   :  { %v3602_v15 = vsel %vm2797_vm4, %v3601_v51, %v3600_v14  ;;  %v3612_v45 = vsel %vm2866_vm10, %v3599_v1, %v3611_v53  ;;  %v9170_v14 = vld [vmem:[#allocation16_spill] sm:$0xff]  ;;  %v3672_v36 = vsub.f32 0.0, %v9173_v21  ;;  %v3695_v27 = vsub.f32 0.0, %v9180_v3 }
 0x5f0   :  { %v3671_v59 = vsub.f32 0.0, %v9170_v14  ;;  %v4687_v22 = vpop.eup %4686 }
 0x5f1   :  { %v3708_v53 = vmul.f32 1.442695, %v3672_v36 }
 0x5f2   :  { %v3706_v51 = vmul.f32 1.442695, %v3671_v59 }
 0x5f3   :  { %v3547_v47 = vpop.permute.xlu0 %3546 }
 0x5f4   :  { %v3603_v48 = vperm.slane %v3547_v47, %v7571_v41  ;;  %v3550_v9 = vpop.permute.xlu1 %3549  ;;  %v3686_v47 = vsub.f32 0.0, %v9172_v32  ;;  %4692 = vpow2.f32 %v3706_v51  ;;  %v9178_v51 = vld [vmem:[#allocation89_spill] sm:$0xff] }
 0x5f5   :  { %v3605_v44 = vperm.slane %v3550_v9, %v7583_v39  ;;  %v3764_v9 = vadd.f32 1.0, %v4687_v22  ;;  %4694 = vpow2.f32 %v3704_v24  ;;  %v3692_v32 = vsub.f32 0.0, %v9178_v51 }
 0x5f6   :  { %v3604_v18 = vsel %vm2801_vm6, %v3603_v48, %v3602_v15  ;;  %v4689_v48 = vpop.eup %4688  ;;  %v3736_v15 = vmul.f32 1.442695, %v3686_v47 }
 0x5f7   :  { %v3606_v28 = vsel %vm2805_vm14, %v3605_v44, %v3604_v18  ;;  %v4691_v1 = vpop.eup %4690  ;;  %v9174_v44 = vld [vmem:[#allocation19_spill] sm:$0xff]  ;;  %v3765_v43 = vadd.f32 1.0, %v4689_v48 }
 0x5f8   :  { %v3613_v5 = vsel %vm2868_vm13, %v3606_v28, %v3612_v45  ;;  %v3673_v18 = vsub.f32 0.0, %v9174_v44  ;;  %4696 = vpow2.f32 %v3736_v15  ;;  %v9175_v28 = vld [vmem:[#allocation76_spill] sm:$0xff] }
 0x5f9   :  { %v3615_v25 = vsel %vm89_vm0, %v3613_v5, 0.0  ;;  %v3689_v45 = vsub.f32 0.0, %v9175_v28 }
 0x5fa   :  { %3616 = vadd.xlane.f32.xlu2 %v3615_v25  ;;  %v3775_v25 = vadd.f32 1.0, %v4691_v1  ;;  %v4693_v30 = vpop.eup %4692  ;;  %v3710_v26 = vmul.f32 1.442695, %v3673_v18 }
 0x5fb   :  { %v3742_v11 = vmul.f32 1.442695, %v3689_v45  ;;  %v4695_v54 = vpop.eup %4694  ;;  %v3767_v14 = vadd.f32 1.0, %v4693_v30 }
 0x5fc   :  { %v3766_v21 = vadd.f32 1.0, %v4695_v54 }
 0x5fe   :  { %v4697_v59 = vpop.eup %4696 }
 0x5ff   :  { %v3782_v36 = vadd.f32 1.0, %v4697_v59  ;;  %v9181_v59 = vld [vmem:[#allocation29_spill] sm:$0xff] }
 0x66d   :  { %v3617_v5 = vpop.xlane.xlu2 %3616 }
 0x66e   :  { %4698 = vrcp.f32 %v3617_v5 }
 0x66f   :  { %4700 = vrcp.f32 %v3764_v9 }
 0x670   :  { %4702 = vrcp.f32 %v3765_v43  ;;  %v3748_v43 = vmul.f32 1.442695, %v3692_v32 }
 0x671   :  { %4704 = vpow2.f32 %v3708_v53 }
 0x672   :  { %4706 = vrcp.f32 %v3775_v25 }
 0x673   :  { %4708 = vpow2.f32 %v3710_v26 }
 0x674   :  { %v8216_v20 = vpop.eup %4698  ;;  %4710 = vpow2.f32 %v3742_v11 }
 0x675   :  { %v4701_v47 = vpop.eup %4700  ;;  %v8220_v22 = vperm.slane %v8216_v20, 2  ;;  %v3620_v24 = vperm.slane %v8216_v20, 0  ;;  %4712 = vrcp.f32 %v3767_v14  ;;  %v8234_v25 = vperm.slane %v8216_v20, 4 }
 0x676   :  { %v4703_v48 = vpop.eup %4702  ;;  %4714 = vpow2.f32 %v3712_v0  ;;  %v3676_v0 = vsub.f32 0.0, %v9181_v59 }
 0x677   :  { %v4705_v15 = vpop.eup %4704  ;;  %v3647_v1 = vmul.f32 %v8069_v46, %v8220_v22  ;;  %v3637_v9 = vmul.f32 %v8002_v8, %v3620_v24  ;;  %v3636_v44 = vmul.f32 %v7996_v52, %v3620_v24  ;;  %4716 = vpow2.f32 %v3714_v62  ;;  %v9179_v8 = vld [vmem:[#allocation26_spill] sm:$0xff] }
 0x678   :  { %v4707_v18 = vpop.eup %4706  ;;  %4718 = vrcp.f32 %v3782_v36  ;;  %v3768_v46 = vadd.f32 1.0, %v4705_v15  ;;  %v3677_v26 = vsub.f32 0.0, %v9179_v8  ;;  %v3654_v11 = vmul.f32 %v8099_v60, %v8234_v25 }
 0x679   :  { %v4709_v53 = vpop.eup %4708  ;;  %v8227_v28 = vmul.f32 %v4707_v18, %v3647_v1  ;;  %v8229_v45 = vmul.f32 %v4703_v48, %v3637_v9  ;;  %v8231_v5 = vmul.f32 %v4701_v47, %v3636_v44  ;;  %4720 = vrcp.f32 %v3766_v21  ;;  %v9182_v21 = vld [vmem:[#allocation34_spill] sm:$0xff] }
 0x67a   :  { %v4711_v30 = vpop.eup %4710  ;;  %v3769_v13 = vadd.f32 1.0, %v4709_v53  ;;  %4722 = vpow2.f32 %v3748_v43  ;;  %v3639_v54 = vmul.f32 %v8015_v29, %v3620_v24  ;;  %v3638_v51 = vmul.f32 %v8009_v58, %v3620_v24  ;;  %v9183_v53 = vld [vmem:[#allocation67_spill] sm:$0xff] }
 0x67b   :  { %3926 = vperm.xlu2 %4486, %v8227_v28   ;;  %3896 = vperm.xlu1 %4487, %v8229_v45   ;;  %v4713_v52 = vpop.eup %4712  ;;  %v3785_v62 = vadd.f32 1.0, %v4711_v30  ;;  %4724 = vrcp.f32 %v3768_v46  ;;  %v3718_v32 = vmul.f32 1.442695, %v3677_v26  ;;  %v3678_v36 = vsub.f32 0.0, %v9182_v21  ;;  %v9184_v26 = vld [vmem:[#allocation98_spill] sm:$0xff] }
 0x67c   :  { %3893 = vperm.xlu0 %4475, %v8231_v5   ;;  %v4715_v38 = vpop.eup %4714  ;;  %4726 = vrcp.f32 %v3769_v13  ;;  %v3754_v15 = vmul.f32 1.442695, %v3695_v27  ;;  %v8249_v60 = vmul.f32 %v4713_v52, %v3639_v54  ;;  %v8252_v29 = vperm.slane %v8216_v20, 5 }
 0x67d   :  { %v4717_v14 = vpop.eup %4716  ;;  %v3770_v48 = vadd.f32 1.0, %v4715_v38  ;;  %v3621_v44 = vperm.slane %v8216_v20, 1  ;;  %v3716_v18 = vmul.f32 1.442695, %v3676_v0  ;;  %4728 = vrcp.f32 %v3785_v62  ;;  %v9185_v38 = vld [vmem:[#allocation82_spill] sm:$0xff] }
 0x67e   :  { %v4719_v47 = vpop.eup %4718  ;;  %v3771_v43 = vadd.f32 1.0, %v4717_v14  ;;  %4730 = vpow2.f32 %v3718_v32  ;;  %v3680_v30 = vsub.f32 0.0, %v9183_v53  ;;  %v3720_v46 = vmul.f32 1.442695, %v3678_v36  ;;  %v9186_v0 = vld [vmem:[#allocation90_spill] sm:$0xff]  ;;  %v9187_v53 = vld [vmem:[#allocation52_spill] sm:$0xff] }
 0x67f   :  { %v4721_v1 = vpop.eup %4720  ;;  %v8247_v9 = vmul.f32 %v4719_v47, %v3654_v11  ;;  %4732 = vrcp.f32 %v3770_v48  ;;  %v3698_v52 = vsub.f32 0.0, %v9184_v26  ;;  %v3657_v13 = vmul.f32 %v8109_v50, %v8252_v29 }
 0x680   :  { %v8255_v58 = vmul.f32 %v4721_v1, %v3638_v51  ;;  %v4723_v24 = vpop.eup %4722  ;;  %4734 = vpow2.f32 %v3754_v15  ;;  %v3641_v3 = vmul.f32 %v8031_v55, %v3621_v44  ;;  %v3691_v11 = vsub.f32 0.0, %v9185_v38 }
 0x681   :  { %v4725_v8 = vpop.eup %4724  ;;  %4736 = vpow2.f32 %v3716_v18  ;;  %v3788_v54 = vadd.f32 1.0, %v4723_v24  ;;  %v3640_v14 = vmul.f32 %v8025_v6, %v3621_v44  ;;  %v3724_v59 = vmul.f32 1.442695, %v3680_v30 }
 0x682   :  { %v4727_v27 = vpop.eup %4726  ;;  %4738 = vrcp.f32 %v3771_v43  ;;  %v3694_v62 = vsub.f32 0.0, %v9186_v0  ;;  %v3760_v47 = vmul.f32 1.442695, %v3698_v52  ;;  %v8273_v55 = vperm.slane %v8216_v20, 6  ;;  %v9188_v52 = vld [vmem:[#allocation44_spill] sm:$0xff] }
 0x683   :  { %3947 = vperm.xlu2 %4486, %v8247_v9   ;;  %3902 = vperm.xlu1 %4487, %v8249_v60   ;;  %v4729_v51 = vpop.eup %4728  ;;  %4740 = vpow2.f32 %v3720_v46  ;;  %v8270_v50 = vmul.f32 %v4727_v27, %v3641_v3  ;;  %v3746_v36 = vmul.f32 1.442695, %v3691_v11  ;;  %v8275_v15 = vmul.f32 %v4725_v8, %v3640_v14 }
 0x684   :  { %3899 = vperm.xlu0 %4475, %v8255_v58   ;;  %v4731_v32 = vpop.eup %4730  ;;  %v8268_v48 = vmul.f32 %v4729_v51, %v3657_v13  ;;  %4742 = vrcp.f32 %v3788_v54  ;;  %v3752_v1 = vmul.f32 1.442695, %v3694_v62  ;;  %v3682_v30 = vsub.f32 0.0, %v9187_v53 }
 0x685   :  { %v4733_v21 = vpop.eup %4732  ;;  %4744 = vpow2.f32 %v3724_v59  ;;  %v3773_v24 = vadd.f32 1.0, %v4731_v32  ;;  %v3660_v46 = vmul.f32 %v8119_v19, %v8273_v55  ;;  %v3643_v8 = vmul.f32 %v8050_v33, %v3621_v44  ;;  %v9189_v32 = vld [vmem:[#allocation71_spill] sm:$0xff] }
 0x686   :  { %v4735_v6 = vpop.eup %4734  ;;  %4746 = vpow2.f32 %v3760_v47  ;;  %v3681_v13 = vsub.f32 0.0, %v9188_v52  ;;  %v3642_v27 = vmul.f32 %v8043_v49, %v3621_v44  ;;  %v3728_v14 = vmul.f32 1.442695, %v3682_v30 }
 0x687   :  { %v4737_v18 = vpop.eup %4736  ;;  %4748 = vpow2.f32 %v3746_v36  ;;  %v3791_v3 = vadd.f32 1.0, %v4735_v6  ;;  %v3684_v47 = vsub.f32 0.0, %v9189_v32  ;;  %v3663_v6 = vmul.f32 %v8129_v40, %v8273_v55 }
 0x688   :  { %v4739_v43 = vpop.eup %4738  ;;  %v3772_v38 = vadd.f32 1.0, %v4737_v18  ;;  %4750 = vpow2.f32 %v3752_v1  ;;  %v3726_v19 = vmul.f32 1.442695, %v3681_v13  ;;  %v8290_v33 = vmul.f32 %v4733_v21, %v3642_v27  ;;  %v9190_v1 = vld [vmem:[#allocation15_spill] sm:$0xff] }
 0x689   :  { %v4741_v26 = vpop.eup %4740  ;;  %4752 = vrcp.f32 %v3773_v24  ;;  %v8288_v0 = vmul.f32 %v4739_v43, %v3643_v8  ;;  %v3645_v21 = vmul.f32 %v8062_v56, %v8220_v22  ;;  %v3683_v18 = vsub.f32 0.0, %v9190_v1 }
 0x68a   :  { %v4743_v11 = vpop.eup %4742  ;;  %4754 = vrcp.f32 %v3791_v3  ;;  %v3774_v51 = vadd.f32 1.0, %v4741_v26  ;;  %v3644_v43 = vmul.f32 %v8058_v17, %v8220_v22  ;;  %v3732_v30 = vmul.f32 1.442695, %v3684_v47  ;;  %v9193_v47 = vld [vmem:[#allocation70_spill] sm:$0xff] }
 0x68b   :  { %3956 = vperm.xlu2 %4486, %v8268_v48   ;;  %3908 = vperm.xlu1 %4487, %v8270_v50   ;;  %v4745_v54 = vpop.eup %4744  ;;  %v8286_v59 = vmul.f32 %v4743_v11, %v3660_v46  ;;  %4756 = vrcp.f32 %v3772_v38  ;;  %v8308_v56 = vperm.slane %v8216_v20, 7  ;;  %v8311_v3 = vperm.slane %v8216_v20, 3 }
 0x68c   :  { %3905 = vperm.xlu0 %4475, %v8275_v15   ;;  %v4747_v62 = vpop.eup %4746  ;;  %v3776_v44 = vadd.f32 1.0, %v4745_v54  ;;  %4758 = vpow2.f32 %v3728_v14  ;;  %v3730_v27 = vmul.f32 1.442695, %v3683_v18  ;;  %v9192_v14 = vld [vmem:[#allocation75_spill] sm:$0xff] }
 0x68d   :  { %v4749_v49 = vpop.eup %4748  ;;  %4760 = vpow2.f32 %v3726_v19  ;;  %v3794_v24 = vadd.f32 1.0, %v4747_v62  ;;  %v3687_v19 = vsub.f32 0.0, %v9192_v14  ;;  %v3666_v20 = vmul.f32 %v8135_v61, %v8308_v56 }
 0x68e   :  { %v4751_v36 = vpop.eup %4750  ;;  %4762 = vrcp.f32 %v3774_v51  ;;  %v3787_v8 = vadd.f32 1.0, %v4749_v49  ;;  %v3648_v62 = vmul.f32 %v8073_v16, %v8311_v3  ;;  %v3685_v49 = vsub.f32 0.0, %v9193_v47 }
 0x68f   :  { %v4753_v53 = vpop.eup %4752  ;;  %4764 = vrcp.f32 %v3776_v44  ;;  %v3790_v26 = vadd.f32 1.0, %v4751_v36  ;;  %v3646_v44 = vmul.f32 %v7994_v34, %v8220_v22  ;;  %v3738_v1 = vmul.f32 1.442695, %v3687_v19 }
 0x690   :  { %v4755_v46 = vpop.eup %4754  ;;  %v8305_v40 = vmul.f32 %v4753_v53, %v3645_v21  ;;  %4766 = vrcp.f32 %v3794_v24  ;;  %v3659_v61 = vmul.f32 %v8041_v63, %v8252_v29 }
 0x691   :  { %v4757_v52 = vpop.eup %4756  ;;  %v8303_v13 = vmul.f32 %v4755_v46, %v3663_v6  ;;  %4768 = vpow2.f32 %v3732_v30  ;;  %v3662_v30 = vmul.f32 %v8056_v10, %v8273_v55 }
 0x692   :  { %v8313_v17 = vmul.f32 %v4757_v52, %v3644_v43  ;;  %v4759_v38 = vpop.eup %4758  ;;  %4770 = vrcp.f32 %v3787_v8  ;;  %v3734_v43 = vmul.f32 1.442695, %v3685_v49  ;;  %v9196_v8 = vld [vmem:[#allocation80_spill] sm:$0xff]  ;;  %v3650_v52 = vmul.f32 %v8082_v23, %v8311_v3 }
 0x693   :  { %3965 = vperm.xlu2 %4486, %v8286_v59   ;;  %3914 = vperm.xlu1 %4487, %v8288_v0   ;;  %9191 = vst [vmem:[#allocation38_spill] sm:$0xff] %v8303_v13  ;;  %v4761_v11 = vpop.eup %4760  ;;  %4772 = vrcp.f32 %v3790_v26  ;;  %v3778_v32 = vadd.f32 1.0, %v4759_v38  ;;  %v3690_v26 = vsub.f32 0.0, %v9196_v8  ;;  %v9198_v49 = vld [vmem:[#allocation64_spill] sm:$0xff] }
 0x694   :  { %3911 = vperm.xlu0 %4475, %v8290_v33   ;;  %v4763_v54 = vpop.eup %4762  ;;  %4774 = vpow2.f32 %v3730_v27  ;;  %v3777_v36 = vadd.f32 1.0, %v4761_v11  ;;  %v9197_v27 = vld [vmem:[#allocation79_spill] sm:$0xff]  ;;  %v3649_v11 = vmul.f32 %v8079_v37, %v8311_v3  ;;  %v3693_v37 = vsub.f32 0.0, %v9198_v49 }
 0x695   :  { %v4765_v51 = vpop.eup %4764  ;;  %4776 = vrcp.f32 %v3778_v32  ;;  %v8332_v53 = vmul.f32 %v4763_v54, %v3646_v44  ;;  %v3688_v38 = vsub.f32 0.0, %v9197_v27  ;;  %v3652_v44 = vmul.f32 %v8092_v57, %v8234_v25  ;;  %v9199_v57 = vld [vmem:[#allocation97_spill] sm:$0xff] }
 0x696   :  { %v4767_v6 = vpop.eup %4766  ;;  %v8328_v24 = vmul.f32 %v4765_v51, %v3648_v62  ;;  %4778 = vrcp.f32 %v3777_v36  ;;  %v3696_v8 = vsub.f32 0.0, %v9199_v57 }
 0x697   :  { %v4769_v21 = vpop.eup %4768  ;;  %v8326_v18 = vmul.f32 %v4767_v6, %v3666_v20  ;;  %4780 = vpow2.f32 %v3738_v1  ;;  %v3744_v20 = vmul.f32 1.442695, %v3690_v26  ;;  %v3740_v51 = vmul.f32 1.442695, %v3688_v38 }
 0x698   :  { %v4771_v16 = vpop.eup %4770  ;;  %v3780_v10 = vadd.f32 1.0, %v4769_v21  ;;  %4782 = vpow2.f32 %v3734_v43  ;;  %v3651_v6 = vmul.f32 %v8089_v4, %v8311_v3  ;;  %v3655_v4 = vmul.f32 %v8102_v42, %v8234_v25  ;;  %v9200_v42 = vld [vmem:[#allocation99_spill] sm:$0xff] }
 0x699   :  { %v4773_v34 = vpop.eup %4772  ;;  %v8338_v22 = vmul.f32 %v4771_v16, %v3659_v61  ;;  %v3750_v16 = vmul.f32 1.442695, %v3693_v37  ;;  %v3653_v26 = vmul.f32 %v8007_v7, %v8234_v25  ;;  %v3756_v38 = vmul.f32 1.442695, %v3696_v8 }
 0x69a   :  { %v4775_v46 = vpop.eup %4774  ;;  %v8341_v63 = vmul.f32 %v4773_v34, %v3662_v30  ;;  %4784 = vrcp.f32 %v3780_v10  ;;  %v3658_v7 = vmul.f32 %v8112_v31, %v8252_v29  ;;  %v9202_v31 = vld [vmem:[#allocation30_spill] sm:$0xff] }
 0x69b   :  { %3974 = vperm.xlu2 %4486, %v8303_v13   ;;  %3920 = vperm.xlu1 %4487, %v8305_v40   ;;  %9194 = vst [vmem:[#allocation50_spill] sm:$0xff] %v8338_v22  ;;  %v3779_v54 = vadd.f32 1.0, %v4775_v46  ;;  %v4777_v14 = vpop.eup %4776 }
 0x69c   :  { %3917 = vperm.xlu0 %4475, %v8313_v17   ;;  %9195 = vst [vmem:[#allocation111_spill] sm:$0xff] %v8341_v63  ;;  %v4779_v19 = vpop.eup %4778  ;;  %v8349_v62 = vmul.f32 %v4777_v14, %v3650_v52 }
 0x69d   :  { %v8351_v32 = vmul.f32 %v4779_v19, %v3649_v11  ;;  %v4781_v47 = vpop.eup %4780  ;;  %4786 = vrcp.f32 %v3779_v54  ;;  %v3699_v19 = vsub.f32 0.0, %v9200_v42 }
 0x69e   :  { %v4783_v23 = vpop.eup %4782  ;;  %4788 = vpow2.f32 %v3744_v20  ;;  %v3783_v36 = vadd.f32 1.0, %v4781_v47  ;;  %v9201_v20 = vld [vmem:[#allocation27_spill] sm:$0xff]  ;;  %v3656_v47 = vmul.f32 %v8023_v12, %v8252_v29 }
 0x69f   :  { %4790 = vpow2.f32 %v3740_v51  ;;  %v3781_v21 = vadd.f32 1.0, %v4783_v23  ;;  %v3697_v51 = vsub.f32 0.0, %v9201_v20  ;;  %v3762_v37 = vmul.f32 1.442695, %v3699_v19 }
 0x6a0   :  { %v4785_v1 = vpop.eup %4784  ;;  %4792 = vrcp.f32 %v3783_v36 }
 0x6a1   :  { %v8360_v43 = vmul.f32 %v4785_v1, %v3652_v44  ;;  %4794 = vrcp.f32 %v3781_v21  ;;  %v3758_v36 = vmul.f32 1.442695, %v3697_v51  ;;  %v3661_v1 = vmul.f32 %v9202_v31, %v8273_v55  ;;  %v9204_v55 = vld [vmem:[#allocation107_spill] sm:$0xff] }
 0x6a2   :  { %4796 = vpow2.f32 %v3750_v16 }
 0x6a3   :  { %3983 = vperm.xlu2 %4486, %v8326_v18   ;;  %3929 = vperm.xlu1 %4487, %v8328_v24   ;;  %v4787_v61 = vpop.eup %4786 }
 0x6a4   :  { %3923 = vperm.xlu0 %4475, %v8332_v53   ;;  %v8362_v30 = vmul.f32 %v4787_v61, %v3651_v6  ;;  %v4789_v34 = vpop.eup %4788 }
 0x6a5   :  { %v4791_v46 = vpop.eup %4790  ;;  %v3786_v3 = vadd.f32 1.0, %v4789_v34 }
 0x6a6   :  { %v3784_v52 = vadd.f32 1.0, %v4791_v46  ;;  %v4793_v10 = vpop.eup %4792  ;;  %v9203_v46 = vld [vmem:[#allocation32_spill] sm:$0xff] }
 0x6a7   :  { %v4795_v27 = vpop.eup %4794  ;;  %v8371_v11 = vmul.f32 %v4793_v10, %v3655_v4  ;;  %4798 = vrcp.f32 %v3786_v3  ;;  %v3664_v57 = vmul.f32 %v9203_v46, %v8308_v56  ;;  %v9205_v10 = vld [vmem:[#allocation11_spill] sm:$0xff] }
 0x6a8   :  { %v8373_v54 = vmul.f32 %v4795_v27, %v3653_v26  ;;  %v4797_v14 = vpop.eup %4796  ;;  %4800 = vrcp.f32 %v3784_v52  ;;  %v3667_v52 = vmul.f32 %v9204_v55, %v8308_v56  ;;  %v3665_v27 = vmul.f32 %v9205_v10, %v8308_v56 }
 0x6a9   :  { %4802 = vpow2.f32 %v3756_v38  ;;  %v3789_v25 = vadd.f32 1.0, %v4797_v14 }
 0x6ab   :  { %3935 = vperm.xlu1 %4487, %v8349_v62   ;;  %4804 = vrcp.f32 %v3789_v25 }
 0x6ac   :  { %3932 = vperm.xlu0 %4475, %v8351_v32   ;;  %4806 = vpow2.f32 %v3762_v37 }
 0x6ad   :  { %v4799_v23 = vpop.eup %4798  ;;  %4808 = vpow2.f32 %v3758_v36 }
 0x6ae   :  { %v4801_v49 = vpop.eup %4800  ;;  %v8383_v44 = vmul.f32 %v4799_v23, %v3658_v7 }
 0x6af   :  { %v8385_v6 = vmul.f32 %v4801_v49, %v3656_v47  ;;  %v4803_v21 = vpop.eup %4802 }
 0x6b0   :  { %v3792_v61 = vadd.f32 1.0, %v4803_v21 }
 0x6b1   :  { %v4805_v12 = vpop.eup %4804 }
 0x6b2   :  { %v8391_v29 = vmul.f32 %v4805_v12, %v3661_v1  ;;  %4810 = vrcp.f32 %v3792_v61  ;;  %v4807_v16 = vpop.eup %4806 }
 0x6b3   :  { %3941 = vperm.xlu1 %4487, %v8360_v43   ;;  %v4809_v34 = vpop.eup %4808  ;;  %v3795_v8 = vadd.f32 1.0, %v4807_v16 }
 0x6b4   :  { %3938 = vperm.xlu0 %4475, %v8362_v30   ;;  %v3793_v4 = vadd.f32 1.0, %v4809_v34 }
 0x6b5   :  { %4812 = vrcp.f32 %v3795_v8 }
 0x6b6   :  { %4814 = vrcp.f32 %v3793_v4 }
 0x6b8   :  { %v4811_v3 = vpop.eup %4810 }
 0x6b9   :  { %v8397_v26 = vmul.f32 %v4811_v3, %v3664_v57 }
 0x6bb   :  { %3950 = vperm.xlu1 %4487, %v8371_v11   ;;  %v4813_v38 = vpop.eup %4812 }
 0x6bc   :  { %3944 = vperm.xlu0 %4475, %v8373_v54   ;;  %v4815_v14 = vpop.eup %4814  ;;  %v8405_v42 = vmul.f32 %v4813_v38, %v3667_v52 }
 0x6bd   :  { %v8407_v19 = vmul.f32 %v4815_v14, %v3665_v27 }
 0x6be   :  { %9206 = vst [vmem:[#allocation42_spill] sm:$0xff] %v8405_v42 }
 0x6c3   :  { %3959 = vperm.xlu1 %4487, %v8383_v44  }
 0x6c4   :  { %3953 = vperm.xlu0 %4475, %v8385_v6  }
 0x6cb   :  { %3968 = vperm.xlu1 %4487, %v8391_v29  }
 0x6cc   :  { %3962 = vperm.xlu0 %4475, %v8338_v22  }
 0x6d3   :  { %3977 = vperm.xlu1 %4487, %v8397_v26  }
 0x6d4   :  { %3971 = vperm.xlu0 %4475, %v8341_v63  }
 0x6d5   :  { %v3927_v14 = vpop.permute.xlu2 %3926 }
 0x6db   :  { %3986 = vperm.xlu1 %4487, %v8405_v42  }
 0x6dc   :  { %3980 = vperm.xlu0 %4475, %v8407_v19  }
 0x6ed   :  { %v3897_v7 = vpop.permute.xlu1 %3896 }
 0x6ee   :  { %v3989_v25 = vperm.slane %v3897_v7, %v7552_v35  ;;  %v3894_v20 = vpop.permute.xlu0 %3893 }
 0x6ef   :  { %v3988_v51 = vperm.slane %v3894_v20, %v7547_v2  ;;  %v3948_v20 = vpop.permute.xlu2 %3947 }
 0x6f0   :  { %v4019_v13 = vperm.slane %v3948_v20, %v7571_v41 }
 0x6f1   :  { %v3990_v47 = vsel %vm2797_vm4, %v3989_v25, %v3988_v51 }
 0x6f5   :  { %v3903_v23 = vpop.permute.xlu1 %3902 }
 0x6f6   :  { %v3993_v56 = vperm.slane %v3903_v23, %v7583_v39  ;;  %v3900_v49 = vpop.permute.xlu0 %3899 }
 0x6f7   :  { %v3991_v37 = vperm.slane %v3900_v49, %v7571_v41  ;;  %v3957_v49 = vpop.permute.xlu2 %3956 }
 0x6f8   :  { %v4024_v42 = vperm.slane %v3957_v49, %v7552_v35 }
 0x6f9   :  { %v3992_v36 = vsel %vm2801_vm6, %v3991_v37, %v3990_v47 }
 0x6fa   :  { %v3994_v21 = vsel %vm2805_vm14, %v3993_v56, %v3992_v36 }
 0x6fd   :  { %v3909_v31 = vpop.permute.xlu1 %3908 }
 0x6fe   :  { %v3996_v1 = vperm.slane %v3909_v31, %v7552_v35  ;;  %v3906_v61 = vpop.permute.xlu0 %3905 }
 0x6ff   :  { %v3995_v12 = vperm.slane %v3906_v61, %v7547_v2  ;;  %v3966_v31 = vpop.permute.xlu2 %3965 }
 0x701   :  { %v3997_v16 = vsel %vm2797_vm4, %v3996_v1, %v3995_v12 }
 0x705   :  { %v3915_v34 = vpop.permute.xlu1 %3914 }
 0x706   :  { %v4000_v46 = vperm.slane %v3915_v34, %v7583_v39  ;;  %v3912_v57 = vpop.permute.xlu0 %3911 }
 0x707   :  { %v3998_v8 = vperm.slane %v3912_v57, %v7571_v41  ;;  %v3975_v12 = vpop.permute.xlu2 %3974 }
 0x709   :  { %v3999_v4 = vsel %vm2801_vm6, %v3998_v8, %v3997_v16 }
 0x70a   :  { %v4001_v3 = vsel %vm2805_vm14, %v4000_v46, %v3999_v4 }
 0x70b   :  { %v4044_v55 = vsel %vm2856_vm7, %v4001_v3, %v3994_v21 }
 0x70d   :  { %v3921_v52 = vpop.permute.xlu1 %3920 }
 0x70e   :  { %v3918_v10 = vpop.permute.xlu0 %3917  ;;  %v4003_v21 = vperm.slane %v3921_v52, %v7552_v35 }
 0x70f   :  { %v4002_v16 = vperm.slane %v3918_v10, %v7547_v2 }
 0x711   :  { %v4004_v10 = vsel %vm2797_vm4, %v4003_v21, %v4002_v16 }
 0x715   :  { %v3930_v27 = vpop.permute.xlu1 %3929 }
 0x716   :  { %v3924_v38 = vpop.permute.xlu0 %3923  ;;  %v4009_v63 = vperm.slane %v3930_v27, %v7547_v2  ;;  %v4007_v27 = vperm.slane %v3927_v14, %v7583_v39 }
 0x717   :  { %v4005_v46 = vperm.slane %v3924_v38, %v7571_v41 }
 0x719   :  { %v4006_v22 = vsel %vm2801_vm6, %v4005_v46, %v4004_v10 }
 0x71d   :  { %v3936_v7 = vpop.permute.xlu1 %3935 }
 0x71e   :  { %v3933_v25 = vpop.permute.xlu0 %3932 }
 0x71f   :  { %v4010_v57 = vperm.slane %v3933_v25, %v7552_v35 }
 0x725   :  { %v3942_v51 = vpop.permute.xlu1 %3941 }
 0x726   :  { %v3939_v47 = vpop.permute.xlu0 %3938  ;;  %v4016_v4 = vperm.slane %v3942_v51, %v7547_v2  ;;  %v4011_v51 = vsel %vm2797_vm4, %v4010_v57, %v4009_v63  ;;  %v3984_v57 = vpop.permute.xlu2 %3983 }
 0x727   :  { %v4014_v20 = vperm.slane %v3939_v47, %v7583_v39  ;;  %v4040_v10 = vperm.slane %v3984_v57, %v7571_v41 }
 0x72d   :  { %v3951_v23 = vpop.permute.xlu1 %3950 }
 0x72e   :  { %v3945_v56 = vpop.permute.xlu0 %3944  ;;  %v4021_v47 = vperm.slane %v3951_v23, %v7583_v39 }
 0x72f   :  { %v4017_v34 = vperm.slane %v3945_v56, %v7552_v35  ;;  %v4012_v56 = vperm.slane %v3936_v7, %v7571_v41 }
 0x731   :  { %v4018_v38 = vsel %vm2797_vm4, %v4017_v34, %v4016_v4  ;;  %v4008_v34 = vsel %vm2805_vm14, %v4007_v27, %v4006_v22  ;;  %v4013_v63 = vsel %vm2801_vm6, %v4012_v56, %v4011_v51 }
 0x732   :  { %v4020_v7 = vsel %vm2801_vm6, %v4019_v13, %v4018_v38  ;;  %v4015_v14 = vsel %vm2805_vm14, %v4014_v20, %v4013_v63  ;;  %v4045_v22 = vsel %vm2858_vm8, %v4008_v34, %v4044_v55 }
 0x733   :  { %v4022_v13 = vsel %vm2805_vm14, %v4021_v47, %v4020_v7  ;;  %v4046_v56 = vsel %vm2860_vm15, %v4015_v14, %v4045_v22 }
 0x734   :  { %v4047_v51 = vsel %vm2862_vm11, %v4022_v13, %v4046_v56 }
 0x735   :  { %v3960_v37 = vpop.permute.xlu1 %3959 }
 0x736   :  { %v3954_v36 = vpop.permute.xlu0 %3953  ;;  %v4026_v21 = vperm.slane %v3960_v37, %v7571_v41  ;;  %v4035_v37 = vperm.slane %v3975_v12, %v7583_v39 }
 0x737   :  { %v4023_v52 = vperm.slane %v3954_v36, %v7547_v2  ;;  %v4030_v36 = vperm.slane %v3966_v31, %v7547_v2 }
 0x739   :  { %v4025_v16 = vsel %vm2797_vm4, %v4024_v42, %v4023_v52 }
 0x73a   :  { %v4027_v42 = vsel %vm2801_vm6, %v4026_v21, %v4025_v16 }
 0x73d   :  { %v3969_v1 = vpop.permute.xlu1 %3968 }
 0x73e   :  { %v3963_v61 = vpop.permute.xlu0 %3962  ;;  %v4031_v25 = vperm.slane %v3969_v1, %v7552_v35 }
 0x73f   :  { %v4028_v1 = vperm.slane %v3963_v61, %v7583_v39 }
 0x740   :  { %v4032_v46 = vsel %vm2797_vm4, %v4031_v25, %v4030_v36 }
 0x745   :  { %v3978_v8 = vpop.permute.xlu1 %3977 }
 0x746   :  { %v3972_v3 = vpop.permute.xlu0 %3971  ;;  %v4037_v23 = vperm.slane %v3978_v8, %v7547_v2 }
 0x747   :  { %v4033_v49 = vperm.slane %v3972_v3, %v7571_v41  ;;  %v4029_v3 = vsel %vm2805_vm14, %v4028_v1, %v4027_v42 }
 0x748   :  { %v4048_v20 = vsel %vm2864_vm9, %v4029_v3, %v4047_v51 }
 0x749   :  { %v4034_v31 = vsel %vm2801_vm6, %v4033_v49, %v4032_v46 }
 0x74a   :  { %v4036_v12 = vsel %vm2805_vm14, %v4035_v37, %v4034_v31 }
 0x74d   :  { %v3987_v61 = vpop.permute.xlu1 %3986 }
 0x74e   :  { %v3981_v4 = vpop.permute.xlu0 %3980  ;;  %v4042_v38 = vperm.slane %v3987_v61, %v7583_v39 }
 0x74f   :  { %v4038_v52 = vperm.slane %v3981_v4, %v7552_v35  ;;  %v4049_v35 = vsel %vm2866_vm10, %v4036_v12, %v4048_v20  ;;  %v9209_v4 = vld [vmem:[#allocation42_spill] sm:$0xff]  ;;  %v9213_v12 = vld [vmem:[#allocation24_spill] sm:$0xff] }
 0x751   :  { %v4039_v25 = vsel %vm2797_vm4, %v4038_v52, %v4037_v23 }
 0x752   :  { %v4041_v55 = vsel %vm2801_vm6, %v4040_v10, %v4039_v25  ;;  %v9212_v10 = vld [vmem:[#allocation21_spill] sm:$0xff] }
 0x753   :  { %v4043_v2 = vsel %vm2805_vm14, %v4042_v38, %v4041_v55 }
 0x754   :  { %v4050_v41 = vsel %vm2868_vm13, %v4043_v2, %v4049_v35 }
 0x755   :  { %v4052_v8 = vsel %vm89_vm0, %v4050_v41, 0.0  ;;  %vm4297_vm0 = vcmask 23560  }
 0x756   :  { %4053 = vadd.xlane.f32.xlu0 %v4052_v8  ;;  %v9214_v8 = vld [vmem:[#allocation45_spill] sm:$0xff] }
 0x7c9   :  { %v4054_v49 = vpop.xlane.xlu0 %4053 }
 0x7ca   :  { %4816 = vrcp.f32 %v4054_v49 }
 0x7d0   :  { %v4817_v39 = vpop.eup %4816 }
 0x7d1   :  { %v4059_v27 = vperm.slane %v4817_v39, 2  ;;  %v4057_v36 = vperm.slane %v4817_v39, 0  ;;  %v4061_v1 = vperm.slane %v4817_v39, 4  ;;  %v4058_v46 = vperm.slane %v4817_v39, 1 }
 0x7d2   :  { %v4062_v57 = vperm.slane %v4817_v39, 5  ;;  %v4060_v31 = vperm.slane %v4817_v39, 3 }
 0x7d3   :  { %v4084_v21 = vmul.f32 %v4059_v27, %v8227_v28  ;;  %v4074_v7 = vmul.f32 %v4057_v36, %v8229_v45  ;;  %v4073_v16 = vmul.f32 %v4057_v36, %v8231_v5  ;;  %v4090_v34 = vmul.f32 %v4061_v1, %v8373_v54 }
 0x7d4   :  { %v4076_v63 = vmul.f32 %v4057_v36, %v8249_v60  ;;  %v4075_v47 = vmul.f32 %v4057_v36, %v8255_v58  ;;  %v4091_v28 = vmul.f32 %v4061_v1, %v8247_v9  ;;  %v4078_v45 = vmul.f32 %v4058_v46, %v8270_v50 }
 0x7d5   :  { %4162 = vperm.xlu0 %4475, %v4084_v21   ;;  %4112 = vperm.xlu1 %4487, %v4074_v7   ;;  %v4077_v5 = vmul.f32 %v4058_v46, %v8275_v15  ;;  %v4095_v54 = vmul.f32 %v4062_v57, %v8383_v44  ;;  %v4080_v60 = vmul.f32 %v4058_v46, %v8288_v0  ;;  %v4064_v15 = vperm.slane %v4817_v39, 7  ;;  %v9215_v21 = vld [vmem:[#allocation39_spill] sm:$0xff] }
 0x7d6   :  { %4107 = vperm.xlu2 %4486, %v4073_v16   ;;  %v4079_v58 = vmul.f32 %v4058_v46, %v8290_v33  ;;  %v4092_v14 = vmul.f32 %v4061_v1, %v8371_v11  ;;  %v4082_v9 = vmul.f32 %v4059_v27, %v8305_v40  ;;  %v4081_v50 = vmul.f32 %v4059_v27, %v8313_v17 }
 0x7d7   :  { %v4103_v44 = vmul.f32 %v4064_v15, %v8326_v18  ;;  %v4085_v0 = vmul.f32 %v4060_v31, %v8328_v24  ;;  %v4083_v33 = vmul.f32 %v4059_v27, %v8332_v53  ;;  %v4087_v11 = vmul.f32 %v4060_v31, %v8349_v62 }
 0x7d8   :  { %v4086_v40 = vmul.f32 %v4060_v31, %v8351_v32  ;;  %v4089_v17 = vmul.f32 %v4061_v1, %v8360_v43  ;;  %v4088_v37 = vmul.f32 %v4060_v31, %v8362_v30  ;;  %v4094_v18 = vmul.f32 %v4062_v57, %v8268_v48  ;;  %v9207_v30 = vld [vmem:[#allocation50_spill] sm:$0xff]  ;;  %v9208_v48 = vld [vmem:[#allocation111_spill] sm:$0xff]  ;;  %v9216_v1 = vld [vmem:[#allocation17_spill] sm:$0xff] }
 0x7d9   :  { %v4093_v24 = vmul.f32 %v4062_v57, %v8385_v6  ;;  %v4063_v53 = vperm.slane %v4817_v39, 6  ;;  %v4102_v32 = vmul.f32 %v4064_v15, %v8407_v19  ;;  %v4101_v43 = vmul.f32 %v4064_v15, %v8397_v26  ;;  %v9211_v19 = vld [vmem:[#allocation12_spill] sm:$0xff] }
 0x7da   :  { %v4096_v42 = vmul.f32 %v4062_v57, %v9207_v30  ;;  %v4104_v22 = vmul.f32 %v4064_v15, %v9209_v4 }
 0x7db   :  { %v4098_v13 = vmul.f32 %v4063_v53, %v8391_v29  ;;  %v4097_v62 = vmul.f32 %v4063_v53, %v8286_v59  ;;  %v4099_v61 = vmul.f32 %v4063_v53, %v9208_v48  ;;  %v9210_v29 = vld [vmem:[#allocation38_spill] sm:$0xff] }
 0x7dc   :  { %v4100_v3 = vmul.f32 %v4063_v53, %v9210_v29 }
 0x7dd   :  { %4192 = vperm.xlu0 %4475, %v4090_v34   ;;  %4122 = vperm.xlu1 %4487, %v4076_v63   ;;  %v9217_v63 = vld [vmem:[#allocation14_spill] sm:$0xff] }
 0x7de   :  { %4117 = vperm.xlu2 %4486, %v4075_v47  }
 0x7e5   :  { %4197 = vperm.xlu0 %4475, %v4091_v28   ;;  %4132 = vperm.xlu1 %4487, %v4078_v45  }
 0x7e6   :  { %4127 = vperm.xlu2 %4486, %v4077_v5  }
 0x7ed   :  { %4217 = vperm.xlu0 %4475, %v4095_v54   ;;  %4142 = vperm.xlu1 %4487, %v4080_v60  }
 0x7ee   :  { %4137 = vperm.xlu2 %4486, %v4079_v58  }
 0x7f5   :  { %4202 = vperm.xlu0 %4475, %v4092_v14   ;;  %4152 = vperm.xlu1 %4487, %v4082_v9   ;;  %v9218_v9 = vld [vmem:[#allocation22_spill] sm:$0xff] }
 0x7f6   :  { %4147 = vperm.xlu2 %4486, %v4081_v50  }
 0x7fd   :  { %4257 = vperm.xlu0 %4475, %v4103_v44   ;;  %4167 = vperm.xlu1 %4487, %v4085_v0  }
 0x7fe   :  { %4157 = vperm.xlu2 %4486, %v4083_v33  }
 0x805   :  { %4177 = vperm.xlu1 %4487, %v4087_v11  }
 0x806   :  { %4172 = vperm.xlu2 %4486, %v4086_v40  }
 0x80d   :  { %4187 = vperm.xlu1 %4487, %v4089_v17  }
 0x80e   :  { %4182 = vperm.xlu2 %4486, %v4088_v37  }
 0x815   :  { %4212 = vperm.xlu1 %4487, %v4094_v18  }
 0x816   :  { %4207 = vperm.xlu2 %4486, %v4093_v24  }
 0x81d   :  { %4232 = vperm.xlu1 %4487, %v4098_v13  }
 0x81e   :  { %4227 = vperm.xlu2 %4486, %v4097_v62  }
 0x825   :  { %4252 = vperm.xlu1 %4487, %v4102_v32  }
 0x826   :  { %4247 = vperm.xlu2 %4486, %v4101_v43  }
 0x82d   :  { %4222 = vperm.xlu1 %4487, %v4096_v42  }
 0x82e   :  { %4237 = vperm.xlu2 %4486, %v4099_v61  }
 0x830   :  { %v4108_v6 = vpop.permute.xlu2 %4107 }
 0x831   :  { %v4265_v52 = vmul.f32 %v4108_v6, %v9211_v19 }
 0x833   :  { %v4298_v51 = vsel %vm4297_vm0, %v4265_v52, 0.0 }
 0x835   :  { %4262 = vperm.xlu1 %4487, %v4104_v22  }
 0x836   :  { %4242 = vperm.xlu2 %4486, %v4100_v3  }
 0x838   :  { %v4118_v59 = vpop.permute.xlu2 %4117 }
 0x839   :  { %v4267_v56 = vmul.f32 %v4118_v59, %v9212_v10 }
 0x83b   :  { %v4301_v2 = vsel %vm4297_vm0, %v4267_v56, 0.0  ;;  %v9221_v56 = vld [vmem:[#allocation69_spill] sm:$0xff] }
 0x840   :  { %v4128_v23 = vpop.permute.xlu2 %4127 }
 0x841   :  { %v4269_v7 = vmul.f32 %v4128_v23, %v9215_v21  ;;  %v9219_v23 = vld [vmem:[#allocation23_spill] sm:$0xff] }
 0x843   :  { %v4311_v28 = vsel %vm4297_vm0, %v4269_v7, 0.0 }
 0x847   :  { %v4113_v26 = vpop.permute.xlu1 %4112  ;;  %v4163_v37 = vpop.permute.xlu0 %4162 }
 0x848   :  { %v4266_v38 = vmul.f32 %v4113_v26, %v9213_v12  ;;  %v4138_v25 = vpop.permute.xlu2 %4137  ;;  %v9220_v26 = vld [vmem:[#allocation28_spill] sm:$0xff] }
 0x849   :  { %v4271_v34 = vmul.f32 %v4138_v25, %v9216_v1 }
 0x84a   :  { %v4299_v55 = vsel %vm4297_vm0, %v4266_v38, 0.0  ;;  %v9222_v38 = vld [vmem:[#allocation46_spill] sm:$0xff] }
 0x84b   :  { %v4300_v20 = vadd.f32 %v4299_v55, %v4298_v51  ;;  %v4314_v54 = vsel %vm4297_vm0, %v4271_v34, 0.0  ;;  %v9223_v51 = vld [vmem:[#allocation55_spill] sm:$0xff]  ;;  %v9227_v34 = vld [vmem:[#allocation56_spill] sm:$0xff] }
 0x84d   :  { %v4302_v35 = vadd.f32 %v4301_v2, %v4300_v20  ;;  %v9224_v2 = vld [vmem:[#allocation41_spill] sm:$0xff] }
 0x84f   :  { %v4123_v41 = vpop.permute.xlu1 %4122  ;;  %v4193_v61 = vpop.permute.xlu0 %4192 }
 0x850   :  { %v4268_v49 = vmul.f32 %v4123_v41, %v9214_v8  ;;  %v4148_v39 = vpop.permute.xlu2 %4147  ;;  %v4282_v55 = vmul.f32 %v4193_v61, %v9223_v51  ;;  %v9225_v41 = vld [vmem:[#allocation48_spill] sm:$0xff]  ;;  %v9234_v61 = vld [vmem:[#allocation58_spill] sm:$0xff] }
 0x851   :  { %v4273_v10 = vmul.f32 %v4148_v39, %v9220_v26 }
 0x852   :  { %v4303_v27 = vsel %vm4297_vm0, %v4268_v49, 0.0  ;;  %v4351_v1 = vsel %vm4297_vm0, %v4282_v55, 0.0 }
 0x853   :  { %v4304_v36 = vadd.f32 %v4303_v27, %v4302_v35  ;;  %v4324_v27 = vsel %vm4297_vm0, %v4273_v10, 0.0 }
 0x855   :  { %v4305_v5 = vrot.slane %v4304_v36, 4 }
 0x857   :  { %v4133_v16 = vpop.permute.xlu1 %4132  ;;  %v4306_v58 = vadd.f32 %v4305_v5, %v4304_v36  ;;  %v4198_v22 = vpop.permute.xlu0 %4197  ;;  %v9226_v36 = vld [vmem:[#allocation31_spill] sm:$0xff] }
 0x858   :  { %v4270_v47 = vmul.f32 %v4133_v16, %v9217_v63  ;;  %v4158_v46 = vpop.permute.xlu2 %4157  ;;  %v4283_v63 = vmul.f32 %v4198_v22, %v9227_v34  ;;  %v9239_v34 = vld [vmem:[#allocation65_spill] sm:$0xff] }
 0x859   :  { %v4307_v44 = vrot.slane %v4306_v58, 2  ;;  %v4275_v21 = vmul.f32 %v4158_v46, %v9226_v36  ;;  %v9238_v36 = vld [vmem:[#allocation66_spill] sm:$0xff] }
 0x85a   :  { %v4312_v45 = vsel %vm4297_vm0, %v4270_v47, 0.0 }
 0x85b   :  { %v4313_v57 = vadd.f32 %v4312_v45, %v4311_v28  ;;  %v4308_v11 = vadd.f32 %v4307_v44, %v4306_v58  ;;  %v9229_v58 = vld [vmem:[#allocation37_spill] sm:$0xff]  ;;  %v9231_v44 = vld [vmem:[#allocation51_spill] sm:$0xff] }
 0x85c   :  { %v4276_v46 = vmul.f32 %v4163_v37, %v9229_v58 }
 0x85d   :  { %v4315_v60 = vadd.f32 %v4314_v54, %v4313_v57  ;;  %v4309_v53 = vrot.slane %v4308_v11, 1  ;;  %v9228_v54 = vld [vmem:[#allocation62_spill] sm:$0xff] }
 0x85f   :  { %v4143_v14 = vpop.permute.xlu1 %4142  ;;  %v4310_v32 = vadd.f32 %v4309_v53, %v4308_v11  ;;  %v4218_v59 = vpop.permute.xlu0 %4217  ;;  %v9232_v11 = vld [vmem:[#allocation74_spill] sm:$0xff] }
 0x860   :  { %v4272_v50 = vmul.f32 %v4143_v14, %v9218_v9  ;;  %v4173_v15 = vpop.permute.xlu2 %4172  ;;  %v4327_v14 = vsel %vm4297_vm0, %v4275_v21, 0.0 }
 0x861   :  { %v4278_v35 = vmul.f32 %v4173_v15, %v9224_v2  ;;  %v9237_v2 = vld [vmem:[#allocation78_spill] sm:$0xff] }
 0x862   :  { %v4316_v31 = vsel %vm4297_vm0, %v4272_v50, 0.0  ;;  %v9230_v50 = vld [vmem:[#allocation61_spill] sm:$0xff] }
 0x863   :  { %v4317_v0 = vadd.f32 %v4316_v31, %v4315_v60  ;;  %v4338_v28 = vsel %vm4297_vm0, %v4278_v35, 0.0 }
 0x865   :  { %v4318_v33 = vrot.slane %v4317_v0, 4 }
 0x867   :  { %v4319_v40 = vadd.f32 %v4318_v33, %v4317_v0  ;;  %v4153_v17 = vpop.permute.xlu1 %4152  ;;  %v4203_v45 = vpop.permute.xlu0 %4202  ;;  %v4353_v33 = vsel %vm4297_vm0, %v4283_v63, 0.0 }
 0x868   :  { %v4183_v18 = vpop.permute.xlu2 %4182  ;;  %v4274_v19 = vmul.f32 %v4153_v17, %v9219_v23 }
 0x869   :  { %v4320_v24 = vrot.slane %v4319_v40, 2  ;;  %v4280_v0 = vmul.f32 %v4183_v18, %v9231_v44 }
 0x86a   :  { %v4325_v20 = vsel %vm4297_vm0, %v4274_v19, 0.0  ;;  %v9235_v19 = vld [vmem:[#allocation59_spill] sm:$0xff] }
 0x86b   :  { %v4321_v13 = vadd.f32 %v4320_v24, %v4319_v40  ;;  %v4326_v39 = vadd.f32 %v4325_v20, %v4324_v27  ;;  %v4284_v40 = vmul.f32 %v4203_v45, %v9232_v11 }
 0x86d   :  { %v4322_v62 = vrot.slane %v4321_v13, 1  ;;  %v4328_v31 = vadd.f32 %v4327_v14, %v4326_v39  ;;  %v4355_v22 = vsel %vm4297_vm0, %v4284_v40, 0.0  ;;  %v9241_v14 = vld [vmem:[#allocation18_spill] sm:$0xff] }
 0x86f   :  { %v4323_v43 = vadd.f32 %v4322_v62, %v4321_v13  ;;  %v4168_v30 = vpop.permute.xlu1 %4167  ;;  %v4329_v13 = vsel %vm4297_vm0, %v4276_v46, 0.0  ;;  %v9233_v62 = vld [vmem:[#allocation63_spill] sm:$0xff] }
 0x870   :  { %v4208_v42 = vpop.permute.xlu2 %4207  ;;  %v4277_v25 = vmul.f32 %v4168_v30, %v9222_v38  ;;  %v4342_v30 = vsel %vm4297_vm0, %v4280_v0, 0.0 }
 0x871   :  { %v8524_v48 = vsel %vm2856_vm7, %v4323_v43, %v4310_v32  ;;  %v4330_v43 = vadd.f32 %v4329_v13, %v4328_v31  ;;  %v4285_v26 = vmul.f32 %v4208_v42, %v9235_v19 }
 0x872   :  { %v4337_v16 = vsel %vm4297_vm0, %v4277_v25, 0.0 }
 0x873   :  { %v4339_v9 = vadd.f32 %v4338_v28, %v4337_v16  ;;  %v4331_v25 = vrot.slane %v4330_v43, 4  ;;  %v4363_v35 = vsel %vm4297_vm0, %v4285_v26, 0.0  ;;  %v4258_v28 = vpop.permute.xlu0 %4257 }
 0x875   :  { %v4332_v27 = vadd.f32 %v4331_v25, %v4330_v43 }
 0x877   :  { %v4178_v6 = vpop.permute.xlu1 %4177 }
 0x878   :  { %v4228_v4 = vpop.permute.xlu2 %4227  ;;  %v4279_v8 = vmul.f32 %v4178_v6, %v9225_v41 }
 0x879   :  { %v4289_v15 = vmul.f32 %v4228_v4, %v9230_v50 }
 0x87a   :  { %v4340_v5 = vsel %vm4297_vm0, %v4279_v8, 0.0 }
 0x87b   :  { %v4341_v17 = vadd.f32 %v4340_v5, %v4339_v9  ;;  %v4376_v37 = vsel %vm4297_vm0, %v4289_v15, 0.0  ;;  %v4333_v5 = vrot.slane %v4332_v27, 2  ;;  %v4295_v9 = vmul.f32 %v4258_v28, %v9241_v14 }
 0x87f   :  { %v4188_v29 = vpop.permute.xlu1 %4187 }
 0x880   :  { %v8526_v3 = vpop.permute.xlu2 %4247  ;;  %v4281_v12 = vmul.f32 %v4188_v29, %v9221_v56  ;;  %v4343_v29 = vadd.f32 %v4342_v30, %v4341_v17  ;;  %v4392_v17 = vsel %vm4297_vm0, %v4295_v9, 0.0 }
 0x881   :  { %v4293_v63 = vmul.f32 %v8526_v3, %v9239_v34  ;;  %v4334_v3 = vadd.f32 %v4333_v5, %v4332_v27 }
 0x882   :  { %v4350_v7 = vsel %vm4297_vm0, %v4281_v12, 0.0  ;;  %v9236_v12 = vld [vmem:[#allocation88_spill] sm:$0xff]  ;;  %v4344_v20 = vrot.slane %v4343_v29, 4 }
 0x883   :  { %v4352_v57 = vadd.f32 %v4351_v1, %v4350_v7  ;;  %v4389_v15 = vsel %vm4297_vm0, %v4293_v63, 0.0 }
 0x884   :  { %v4345_v7 = vadd.f32 %v4344_v20, %v4343_v29 }
 0x885   :  { %v4354_v53 = vadd.f32 %v4353_v33, %v4352_v57 }
 0x886   :  { %v4346_v58 = vrot.slane %v4345_v7, 2 }
 0x887   :  { %v4213_v52 = vpop.permute.xlu1 %4212  ;;  %v4356_v10 = vadd.f32 %v4355_v22, %v4354_v53  ;;  %v9242_v53 = vld [vmem:[#allocation96_spill] sm:$0xff] }
 0x888   :  { %v4238_v49 = vpop.permute.xlu2 %4237  ;;  %v4286_v6 = vmul.f32 %v4213_v52, %v9234_v61  ;;  %v4287_v52 = vmul.f32 %v4218_v59, %v9237_v2  ;;  %v4347_v33 = vadd.f32 %v4346_v58, %v4345_v7 }
 0x889   :  { %v4291_v32 = vmul.f32 %v4238_v49, %v9233_v62  ;;  %v4357_v41 = vrot.slane %v4356_v10, 4 }
 0x88a   :  { %v4364_v51 = vsel %vm4297_vm0, %v4286_v6, 0.0  ;;  %v4366_v16 = vsel %vm4297_vm0, %v4287_v52, 0.0  ;;  %v4348_v61 = vrot.slane %v4347_v33, 1 }
 0x88b   :  { %v4379_v56 = vsel %vm4297_vm0, %v4291_v32, 0.0  ;;  %v4365_v8 = vadd.f32 %v4364_v51, %v4363_v35  ;;  %v4358_v1 = vadd.f32 %v4357_v41, %v4356_v10  ;;  %v4335_v32 = vrot.slane %v4334_v3, 1 }
 0x88c   :  { %v4349_v26 = vadd.f32 %v4348_v61, %v4347_v33 }
 0x88d   :  { %v4367_v45 = vadd.f32 %v4366_v16, %v4365_v8  ;;  %v4359_v50 = vrot.slane %v4358_v1, 2 }
 0x88f   :  { %v4233_v47 = vpop.permute.xlu1 %4232 }
 0x890   :  { %v4290_v60 = vmul.f32 %v4233_v47, %v9228_v54  ;;  %v4243_v4 = vpop.permute.xlu2 %4242  ;;  %v9240_v47 = vld [vmem:[#allocation81_spill] sm:$0xff] }
 0x891   :  { %v4292_v38 = vmul.f32 %v4243_v4, %v9236_v12 }
 0x892   :  { %v4377_v24 = vsel %vm4297_vm0, %v4290_v60, 0.0 }
 0x893   :  { %v4378_v18 = vadd.f32 %v4377_v24, %v4376_v37  ;;  %v4381_v49 = vsel %vm4297_vm0, %v4292_v38, 0.0  ;;  %v4360_v24 = vadd.f32 %v4359_v50, %v4358_v1 }
 0x895   :  { %v4380_v55 = vadd.f32 %v4379_v56, %v4378_v18  ;;  %v4361_v4 = vrot.slane %v4360_v24, 1 }
 0x897   :  { %v4253_v23 = vpop.permute.xlu1 %4252  ;;  %v4382_v42 = vadd.f32 %v4381_v49, %v4380_v55  ;;  %v4362_v56 = vadd.f32 %v4361_v4, %v4360_v24 }
 0x898   :  { %v4294_v21 = vmul.f32 %v4253_v23, %v9238_v36  ;;  %v4336_v23 = vadd.f32 %v4335_v32, %v4334_v3 }
 0x899   :  { %v4383_v57 = vrot.slane %v4382_v42, 4 }
 0x89a   :  { %v4390_v54 = vsel %vm4297_vm0, %v4294_v21, 0.0  ;;  %v4411_v51 = vsel %vm2858_vm8, %v4336_v23, %v8524_v48 }
 0x89b   :  { %v4391_v31 = vadd.f32 %v4390_v54, %v4389_v15  ;;  %v4384_v0 = vadd.f32 %v4383_v57, %v4382_v42  ;;  %v4412_v20 = vsel %vm2860_vm15, %v4349_v26, %v4411_v51 }
 0x89c   :  { %v4413_v2 = vsel %vm2862_vm11, %v4362_v56, %v4412_v20 }
 0x89d   :  { %v4393_v62 = vadd.f32 %v4392_v17, %v4391_v31  ;;  %v4385_v43 = vrot.slane %v4384_v0, 2 }
 0x89f   :  { %v4223_v39 = vpop.permute.xlu1 %4222  ;;  %v4386_v19 = vadd.f32 %v4385_v43, %v4384_v0 }
 0x8a0   :  { %v4288_v59 = vmul.f32 %v4223_v39, %v9240_v47 }
 0x8a1   :  { %v4387_v25 = vrot.slane %v4386_v19, 1 }
 0x8a2   :  { %v4368_v60 = vsel %vm4297_vm0, %v4288_v59, 0.0 }
 0x8a3   :  { %v4369_v46 = vadd.f32 %v4368_v60, %v4367_v45  ;;  %v4388_v41 = vadd.f32 %v4387_v25, %v4386_v19 }
 0x8a5   :  { %v4370_v44 = vrot.slane %v4369_v46, 4 }
 0x8a7   :  { %v4371_v11 = vadd.f32 %v4370_v44, %v4369_v46  ;;  %v4263_v40 = vpop.permute.xlu1 %4262 }
 0x8a8   :  { %v4296_v13 = vmul.f32 %v4263_v40, %v9242_v53 }
 0x8a9   :  { %v4372_v37 = vrot.slane %v4371_v11, 2 }
 0x8aa   :  { %v4394_v30 = vsel %vm4297_vm0, %v4296_v13, 0.0 }
 0x8ab   :  { %v4373_v6 = vadd.f32 %v4372_v37, %v4371_v11  ;;  %v4395_v18 = vadd.f32 %v4394_v30, %v4393_v62 }
 0x8ad   :  { %v4374_v22 = vrot.slane %v4373_v6, 1  ;;  %v4396_v29 = vrot.slane %v4395_v18, 4 }
 0x8af   :  { %v4397_v10 = vadd.f32 %v4396_v29, %v4395_v18  ;;  %v4375_v12 = vadd.f32 %v4374_v22, %v4373_v6 }
 0x8b1   :  { %v4398_v38 = vrot.slane %v4397_v10, 2  ;;  %v4414_v35 = vsel %vm2864_vm9, %v4375_v12, %v4413_v2 }
 0x8b2   :  { %v4415_v49 = vsel %vm2866_vm10, %v4388_v41, %v4414_v35 }
 0x8b3   :  { %v4399_v55 = vadd.f32 %v4398_v38, %v4397_v10 }
 0x8b5   :  { %v4400_v52 = vrot.slane %v4399_v55, 1 }
 0x8b7   :  { %v4401_v8 = vadd.f32 %v4400_v52, %v4399_v55 }
 0x8b9   :  { %v4416_v27 = vsel %vm2868_vm13, %v4401_v8, %v4415_v49 }
 0x8ba   :  { %4417 = vrot.lane.b32.xlu0 %v4416_v27, %s4909_s2 }
 0x92c   :  { %v4418_v42 = vpop.permute.xlu0 %4417 }
 0x92d   :  { %4421 = vst.msk [vmem:[%s8591_s4] sm:$0xff] %vm4420_vm1, %v4418_v42 }
 0x92e   :  { %4426 = vsyncpa [#allocation5], 1 }
 0x92f   :  { %4427 = vsyncpa [#allocation7], 1 }

</bundles_post_ra>
